<compile_context>
chip_gen: v6e
topology: v6e:2x2x1
jax: 0.10.0
libtpu: 0.0.40
codegen_flags: <defaults>
</compile_context>

<pallas_src>
import numpy as np
import jax
import jax.numpy as jnp
from jax.experimental import pallas as pl
from jax.experimental.pallas import tpu as pltpu

N_QUBITS = 5
N_LAYERS = 3
N_HEADS = 4
DIM = 1 << N_QUBITS          # 32
QLANES = N_HEADS * DIM       # 128
KSIZE = 5                    # conv kernel size
PAD = 2
NFC1 = 128                   # fc1 outputs zero-padded 120 -> 128 lanes


def _round_up(v, m):
    return ((v + m - 1) // m) * m


def _pick_tile(n, candidates):
    for c in candidates:
        if c <= n and n % c == 0:
            return c
    return n


def _vmem_limit(need_bytes):
    # computed per-kernel VMEM limit with headroom, capped for v7x's 64 MiB
    return int(min(64 << 20, max(need_bytes + (4 << 20), 16 << 20)))


# ---------------------------------------------------------------------------
# Probe: can constant-index operands be single-buffered (pl.Buffered(1))?
# Saves VMEM (important for v7x); falls back to default double buffering.
# ---------------------------------------------------------------------------
def _probe_buffered_one():
    try:
        mode = pl.Buffered(1)

        def k(x_ref, o_ref):
            o_ref[...] = x_ref[...]

        out = pl.pallas_call(
            k,
            out_shape=jax.ShapeDtypeStruct((8, 128), jnp.float32),
            grid=(2,),
            in_specs=[pl.BlockSpec((8, 128), lambda i: (0, 0),
                                   pipeline_mode=mode)],
            out_specs=pl.BlockSpec((8, 128), lambda i: (0, 0)),
        )(jnp.zeros((8, 128), jnp.float32))
        jax.block_until_ready(out)
        return mode
    except Exception:
        return None


_CONST_BUF = _probe_buffered_one()


def _const_spec(shape, index_map):
    if _CONST_BUF is not None:
        return pl.BlockSpec(shape, index_map, pipeline_mode=_CONST_BUF)
    return pl.BlockSpec(shape, index_map)


# ---------------------------------------------------------------------------
# Static planning helpers (pure Python on shapes; used at init AND in forward)
# ---------------------------------------------------------------------------
def _pick_wt(W, cin, cout, budget=8 << 20):
    """Largest even divisor of W whose per-tile Toeplitz weight fits budget
    and whose pooled lane width is a multiple of 128 (or the full width)."""
    cands = [wt for wt in range(W, 1, -1)
             if W % wt == 0 and wt % 2 == 0
             and (wt == W or ((wt // 2) * cout) % 128 == 0)]
    if not cands:
        return W
    for wt in cands:                                   # largest first
        kwp = _round_up((wt + 2 * PAD) * cin, 128)
        if KSIZE * kwp * wt * cout * 2 <= budget:
            return wt
    return cands[-1]


def _conv_plan(W, cin, cout):
    Wt = _pick_wt(W, cin, cout)
    kwp = _round_up((Wt + 2 * PAD) * cin, 128)         # lane-padded slab width
    return Wt, kwp, W // Wt


def _pick_bt(B, H, n_wtiles):
    """Images per conv grid step: target M = Bt*H ~ 256, but keep >= 2 grid
    steps when possible so both v7x TensorCores get work."""
    divs = [d for d in range(B, 0, -1) if B % d == 0]
    fitting = [d for d in divs if d * H <= 256] or [1]
    for d in fitting:
        if (B // d) * n_wtiles >= 2:
            return d
    return fitting[0]


# ---------------------------------------------------------------------------
# Pallas kernels
# ---------------------------------------------------------------------------
def _make_conv_kernel(Bt, H, half, kwp):
    """Fused conv(5x5, pad 2) + folded BN + ReLU + 2x2 maxpool, one matmul."""
    H2 = H // 2

    def kernel(x_ref, t_ref, s_ref, b_ref, o_ref):
        # x_ref : (Bt, 1, 2, H2+2, kwp) bf16 row-parity-split padded slab
        # t_ref : (5*kwp, 2*half)       bf16 fused block-Toeplitz weights,
        #         output columns ordered (parity(w), w//2, cout)
        # s_ref, b_ref : (1, 2*half) f32 folded BatchNorm scale / bias
        # For output row h = 2r + par, tap ky needs padded row h + ky, which
        # lives at parity (par+ky)&1, index r + ((par+ky)>>1) of the slab.
        rows = []
        for b in range(Bt):
            for par in range(2):                       # output-row parity
                taps = []
                for ky in range(KSIZE):
                    src_par = (par + ky) & 1
                    dy = (par + ky) >> 1
                    taps.append(x_ref[b, 0, src_par, pl.ds(dy, H2), :])
                rows.append(jnp.concatenate(taps, axis=-1))   # (H2, 5*kwp)
        lhs = jnp.concatenate(rows, axis=0)                   # (Bt*H, 5*kwp)
        acc = jnp.dot(lhs, t_ref[...], preferred_element_type=jnp.float32)
        y = jnp.maximum(acc * s_ref[...] + b_ref[...], 0.0)   # BN + ReLU (f32)
        for b in range(Bt):
            r0 = 2 * b * H2
            t = jnp.maximum(y[r0:r0 + H2], y[r0 + H2:r0 + 2 * H2])  # pool h
            o_ref[b] = jnp.maximum(t[:, :half], t[:, half:]         # pool w
                                   ).astype(o_ref.dtype)

    return kernel


def conv_bn_relu_pool(slab, t_w, s_row, b_row, *, H, Wt, kwp, nW, cout):
    """slab (B, nW, 2, H//2+2, kwp) bf16 -> (B, H//2, (W//2)*cout) bf16."""
    B = slab.shape[0]
    H2 = H // 2
    half = (Wt // 2) * cout
    Nt = Wt * cout
    Bt = _pick_bt(B, H, nW)
    const_buf = 1 if _CONST_BUF is not None else 2
    need = (2 * Bt * 2 * (H2 + 2) * kwp * 2                    # x blocks
            + const_buf * (KSIZE * kwp * Nt * 2 + 2 * Nt * 4)  # weights, BN
            + 2 * Bt * H2 * half * 2                           # out blocks
            + Bt * H * (KSIZE * kwp * 2 + 2 * Nt * 4))         # lhs + acc/y
    return pl.pallas_call(
        _make_conv_kernel(Bt, H, half, kwp),
        out_shape=jax.ShapeDtypeStruct((B, H2, nW * half), jnp.bfloat16),
        grid=(B // Bt, nW),
        in_specs=[
            pl.BlockSpec((Bt, 1, 2, H2 + 2, kwp),
                         lambda b, j: (b, j, 0, 0, 0)),
            _const_spec((KSIZE * kwp, Nt), lambda b, j: (0, 0)),
            _const_spec((1, Nt), lambda b, j: (0, 0)),
            _const_spec((1, Nt), lambda b, j: (0, 0)),
        ],
        out_specs=pl.BlockSpec((Bt, H2, half), lambda b, j: (b, 0, j)),
        compiler_params=pltpu.CompilerParams(
            dimension_semantics=("parallel", "parallel"),
            vmem_limit_bytes=_vmem_limit(need)),
        cost_estimate=pl.CostEstimate(
            flops=2 * B * H * (KSIZE * kwp) * Nt * nW,
            transcendentals=0,
            bytes_accessed=(slab.size * 2 + KSIZE * kwp * Nt * 2
                            + B * H2 * nW * half * 2)),
    )(slab, t_w, s_row, b_row)


def _fc1_head_kernel(x_ref, w_ref, b1_ref, w2_ref, b2_ref, selc_ref, sels_ref,
                     ure_ref, uim_ref, zw3_ref, b3_ref, o_ref, acc_ref):
    # K-tiled fc1 with resident f32 accumulator.
    @pl.when(pl.program_id(1) == 0)
    def _():
        acc_ref[...] = jnp.zeros_like(acc_ref)

    acc_ref[...] += jnp.dot(x_ref[...], w_ref[...],
                            preferred_element_type=jnp.float32)

    # fc2 -> AngleEmbedding -> precomposed entangler -> <Z> -> fc3 epilogue
    @pl.when(pl.program_id(1) == pl.num_programs(1) - 1)
    def _():
        h1 = jnp.maximum(acc_ref[...] + b1_ref[...], 0.0)          # (M, 128)
        h2 = jnp.dot(h1, w2_ref[...],
                     preferred_element_type=jnp.float32) + b2_ref[...]
        half_ang = 0.5 * jnp.maximum(h2, 0.0)                      # (M, 20)
        # product-state magnitudes: 4 heads x 32 amplitudes in 128 lanes,
        # grouped per qubit (5 * 128 columns)
        f = (jnp.dot(jnp.cos(half_ang), selc_ref[...],
                     preferred_element_type=jnp.float32)
             + jnp.dot(jnp.sin(half_ang), sels_ref[...],
                       preferred_element_type=jnp.float32))        # (M, 640)
        m = f[:, 0:QLANES]
        for q in range(1, N_QUBITS):
            m = m * f[:, q * QLANES:(q + 1) * QLANES]              # (M, 128)
        # precomposed BasicEntanglerLayers unitary (phases folded in),
        # block-diagonal over the 4 heads: psi_row = m @ U'^T
        re = jnp.dot(m, ure_ref[...], preferred_element_type=jnp.float32)
        im = jnp.dot(m, uim_ref[...], preferred_element_type=jnp.float32)
        probs = re * re + im * im
        # <Z_w> projection fused with fc3: zw3 = zsign(128x20) @ fc3_w(20xC)
        o_ref[...] = (jnp.dot(probs, zw3_ref[...],
                              preferred_element_type=jnp.float32)
                      + b3_ref[...])


def fc1_head_pallas(x, p):
    M, K = x.shape
    C = p["fc3_b"].shape[1]
    tm = _pick_tile(M, (256, 128, 64, 32, 16, 8))
    tk = _pick_tile(K, (16384, 8192, 7168, 4096, 3584, 2048, 1792,
                        1024, 512, 256, 128))
    grid = (M // tm, K // tk)
    consts = (p["fc1_b"], p["fc2_w"], p["fc2_b"], p["q_selc"], p["q_sels"],
              p["q_ure"], p["q_uim"], p["q_zw3"], p["fc3_b"])
    const_specs = [_const_spec(tuple(c.shape), lambda i, k: (0, 0))
                   for c in consts]
    const_buf = 1 if _CONST_BUF is not None else 2
    const_bytes = sum(int(np.prod(c.shape)) * 4 for c in consts)
    need = (2 * tm * tk * 2 + 2 * tk * NFC1 * 2 + tm * NFC1 * 4
            + const_buf * const_bytes + 2 * tm * C * 4
            + tm * (N_QUBITS * QLANES + 6 * NFC1) * 4)
    return pl.pallas_call(
        _fc1_head_kernel,
        out_shape=jax.ShapeDtypeStruct((M, C), jnp.float32),
        grid=grid,
        in_specs=[pl.BlockSpec((tm, tk), lambda i, k: (i, k)),
                  pl.BlockSpec((tk, NFC1), lambda i, k: (k, 0))]
                 + const_specs,
        out_specs=pl.BlockSpec((tm, C), lambda i, k: (i, 0)),
        scratch_shapes=[pltpu.VMEM((tm, NFC1), jnp.float32)],
        compiler_params=pltpu.CompilerParams(
            dimension_semantics=("parallel", "arbitrary"),
            vmem_limit_bytes=_vmem_limit(need)),
        cost_estimate=pl.CostEstimate(
            flops=2 * M * K * NFC1,
            transcendentals=2 * M * N_HEADS * N_QUBITS,
            bytes_accessed=(M * K * 2 + K * NFC1 * 2 + M * C * 4
                            + const_bytes)),
    )(x, p["fc1_w"], *consts)


# ---------------------------------------------------------------------------
# Host-side constant builders (run once at init)
# ---------------------------------------------------------------------------
def _build_toeplitz_fused(conv_w, Wt, kwp):
    """torch conv weight (O,Cin,5,5) -> (5*kwp, Wt*O) fused block-Toeplitz,
    one W tile (shared by all tiles), output columns (parity(w), w//2, O)."""
    wt_ = np.asarray(conv_w, np.float32)
    O, Cin, KH, KW = wt_.shape
    Wt2 = Wt // 2
    T = np.zeros((KH, kwp, Wt * O), np.float32)
    for ky in range(KH):
        for w in range(Wt):
            col0 = (w % 2) * (Wt2 * O) + (w // 2) * O
            for kx in range(KW):
                j = w + kx
                T[ky, j * Cin:(j + 1) * Cin, col0:col0 + O] = wt_[:, :, ky, kx].T
    return jnp.asarray(T.reshape(KH * kwp, Wt * O), jnp.bfloat16)


def _fold_bn_rows(conv_b, gamma, beta, mean, var, Wt, eps=1e-5):
    scale = np.asarray(gamma, np.float32) / np.sqrt(
        np.asarray(var, np.float32) + eps)
    bias = (np.asarray(beta, np.float32)
            + scale * (np.asarray(conv_b, np.float32)
                       - np.asarray(mean, np.float32)))
    return (jnp.asarray(np.tile(scale, Wt)[None, :]),
            jnp.asarray(np.tile(bias, Wt)[None, :]))


def _build_quantum_constants(q_w, fc3_w):
    """Precompose the fixed entangler unitaries and pack 4 heads into 128
    lanes.  Wire convention: wire 0 = most significant bit (PennyLane)."""
    qw = np.asarray(q_w, np.float64)           # (4, 3, 5)
    w3 = np.asarray(fc3_w, np.float64)         # (20, C)
    I2 = np.eye(2, dtype=np.complex128)
    X = np.array([[0., 1.], [1., 0.]], dtype=np.complex128)

    def rx(theta):
        return np.cos(theta / 2) * I2 - 1j * np.sin(theta / 2) * X

    def on_wire(g, wire):
        m = np.array([[1.0 + 0j]])
        for w in range(N_QUBITS):
            m = np.kron(m, g if w == wire else I2)
        return m

    def cnot(ctrl, tgt):
        m = np.zeros((DIM, DIM), np.complex128)
        cb, tb = N_QUBITS - 1 - ctrl, N_QUBITS - 1 - tgt
        for x in range(DIM):
            y = x ^ (1 << tb) if (x >> cb) & 1 else x
            m[y, x] = 1.0
        return m

    ring = np.eye(DIM, dtype=np.complex128)
    for c in range(N_QUBITS):                  # (0,1),(1,2),(2,3),(3,4),(4,0)
        ring = cnot(c, (c + 1) % N_QUBITS) @ ring

    phase = np.array([(-1j) ** bin(x).count("1") for x in range(DIM)])

    ure = np.zeros((QLANES, QLANES), np.float32)
    uim = np.zeros((QLANES, QLANES), np.float32)
    zs = np.zeros((QLANES, N_HEADS * N_QUBITS), np.float32)
    selc = np.zeros((N_HEADS * N_QUBITS, N_QUBITS * QLANES), np.float32)
    sels = np.zeros((N_HEADS * N_QUBITS, N_QUBITS * QLANES), np.float32)

    for h in range(N_HEADS):
        U = np.eye(DIM, dtype=np.complex128)
        for l in range(N_LAYERS):
            rl = np.eye(DIM, dtype=np.complex128)
            for q in range(N_QUBITS):
                rl = on_wire(rx(qw[h, l, q]), q) @ rl
            U = ring @ rl @ U
        Up = U * phase[None, :]                # fold product-state phases
        ure[h * DIM:(h + 1) * DIM, h * DIM:(h + 1) * DIM] = np.real(Up).T
        uim[h * DIM:(h + 1) * DIM, h * DIM:(h + 1) * DIM] = np.imag(Up).T
        for x in range(DIM):
            for w in range(N_QUBITS):
                zs[h * DIM + x, h * N_QUBITS + w] = \
                    1.0 - 2.0 * ((x >> (N_QUBITS - 1 - w)) & 1)
            for q in range(N_QUBITS):
                bit = (x >> (N_QUBITS - 1 - q)) & 1
                tgt = sels if bit else selc
                tgt[h * N_QUBITS + q, q * QLANES + h * DIM + x] = 1.0

    zw3 = (zs.astype(np.float64) @ w3).astype(np.float32)     # (128, C)
    return (jnp.asarray(ure), jnp.asarray(uim),
            jnp.asarray(selc), jnp.asarray(sels), jnp.asarray(zw3))


def init_params(key, num_classes, img_hw):
    ks = jax.random.split(key, 20)
    f32 = jnp.float32
    hw1 = img_hw // 2          # after pool1
    hw2 = img_hw // 4          # after pool2
    fc1_in = 32 * hw2 * hw2
    raw = {
        "conv1_w": jax.random.normal(ks[0], (16, 3, 5, 5), f32) * 0.1,
        "conv1_b": jax.random.normal(ks[1], (16,), f32) * 0.05,
        "bn1_gamma": 1.0 + 0.1 * jax.random.normal(ks[2], (16,), f32),
        "bn1_beta": 0.05 * jax.random.normal(ks[3], (16,), f32),
        "bn1_mean": 0.05 * jax.random.normal(ks[4], (16,), f32),
        "bn1_var": 0.5 + jax.random.uniform(ks[5], (16,), f32),
        "conv2_w": jax.random.normal(ks[6], (32, 16, 5, 5), f32) * 0.05,
        "conv2_b": jax.random.normal(ks[7], (32,), f32) * 0.05,
        "bn2_gamma": 1.0 + 0.1 * jax.random.normal(ks[8], (32,), f32),
        "bn2_beta": 0.05 * jax.random.normal(ks[9], (32,), f32),
        "bn2_mean": 0.05 * jax.random.normal(ks[10], (32,), f32),
        "bn2_var": 0.5 + jax.random.uniform(ks[11], (32,), f32),
        "fc1_w": jax.random.normal(ks[12], (fc1_in, 120), f32) * 0.02,
        "fc1_b": jax.random.normal(ks[13], (120,), f32) * 0.05,
        "fc2_w": jax.random.normal(ks[14], (120, 20), f32) * 0.1,
        "fc2_b": jax.random.normal(ks[15], (20,), f32) * 0.05,
        "q_w": jax.random.uniform(ks[16], (N_HEADS, N_LAYERS, N_QUBITS), f32,
                                  0.0, 2.0 * np.pi),
        "fc3_w": jax.random.normal(ks[17], (20, num_classes), f32) * 0.2,
        "fc3_b": jax.random.normal(ks[18], (num_classes,), f32) * 0.05,
    }

    p = {}
    # conv layers: fused block-Toeplitz weights + folded BN scale/bias rows
    Wt1, kwp1, _ = _conv_plan(img_hw, 3, 16)
    p["t1"] = _build_toeplitz_fused(raw["conv1_w"], Wt1, kwp1)
    p["bn1_s"], p["bn1_b"] = _fold_bn_rows(
        raw["conv1_b"], raw["bn1_gamma"], raw["bn1_beta"],
        raw["bn1_mean"], raw["bn1_var"], Wt1)
    Wt2, kwp2, _ = _conv_plan(hw1, 16, 32)
    p["t2"] = _build_toeplitz_fused(raw["conv2_w"], Wt2, kwp2)
    p["bn2_s"], p["bn2_b"] = _fold_bn_rows(
        raw["conv2_b"], raw["bn2_gamma"], raw["bn2_beta"],
        raw["bn2_mean"], raw["bn2_var"], Wt2)

    # fc1: permute rows from torch's NCHW flatten order to our NHWC-flatten
    # input order, zero-pad outputs 120 -> 128 lanes, bf16 for the MXU.
    w1 = np.asarray(raw["fc1_w"], np.float32).reshape(32, hw2, hw2, 120)
    w1 = np.transpose(w1, (1, 2, 0, 3)).reshape(fc1_in, 120)
    w1 = np.concatenate([w1, np.zeros((fc1_in, NFC1 - 120), np.float32)], 1)
    p["fc1_w"] = jnp.asarray(w1, jnp.bfloat16)
    p["fc1_b"] = jnp.asarray(
        np.concatenate([np.asarray(raw["fc1_b"], np.float32),
                        np.zeros((NFC1 - 120,), np.float32)])[None, :])

    # fused fc2 + quantum heads + fc3
    w2 = np.zeros((NFC1, 20), np.float32)
    w2[:120] = np.asarray(raw["fc2_w"], np.float32)
    p["fc2_w"] = jnp.asarray(w2)
    p["fc2_b"] = jnp.asarray(np.asarray(raw["fc2_b"], np.float32)[None, :])
    (p["q_ure"], p["q_uim"], p["q_selc"], p["q_sels"],
     p["q_zw3"]) = _build_quantum_constants(raw["q_w"], raw["fc3_w"])
    p["fc3_b"] = jnp.asarray(np.asarray(raw["fc3_b"], np.float32)[None, :])
    return p


# ---------------------------------------------------------------------------
# Forward pass
# ---------------------------------------------------------------------------
def _make_slab(x_nhwc, Wt, kwp):
    """(B,H,W,C) -> bf16 padded slab, row-parity split and W-tiled with halo:
       (B, nW, 2, H//2+2, kwp)."""
    B, H, W, C = x_nhwc.shape
    nW = W // Wt
    xp = jnp.pad(x_nhwc.astype(jnp.bfloat16),
                 ((0, 0), (PAD, PAD), (PAD, PAD), (0, 0)))
    Hp, Wp = H + 2 * PAD, W + 2 * PAD
    xp = xp.reshape(B, Hp // 2, 2, Wp, C).transpose(0, 2, 1, 3, 4)
    tiles = [xp[:, :, :, j * Wt:j * Wt + Wt + 2 * PAD, :] for j in range(nW)]
    slab = jnp.stack(tiles, axis=1)                # (B,nW,2,Hp/2,Wt+4,C)
    slab = slab.reshape(B, nW, 2, Hp // 2, (Wt + 2 * PAD) * C)
    lane_pad = kwp - (Wt + 2 * PAD) * C
    if lane_pad:
        slab = jnp.pad(slab, ((0, 0),) * 4 + ((0, lane_pad),))
    return slab


def forward(x_nchw, p):
    B, cin, H, W = x_nchw.shape
    H1, W1 = H // 2, W // 2
    H2_, W2_ = H // 4, W // 4

    # conv1 + bn1 + relu + pool (fused)
    Wt1, kwp1, nW1 = _conv_plan(W, cin, 16)
    slab1 = _make_slab(jnp.transpose(x_nchw, (0, 2, 3, 1)), Wt1, kwp1)
    y = conv_bn_relu_pool(slab1, p["t1"], p["bn1_s"], p["bn1_b"],
                          H=H, Wt=Wt1, kwp=kwp1, nW=nW1, cout=16)

    # conv2 + bn2 + relu + pool (fused); activations stay bf16
    Wt2, kwp2, nW2 = _conv_plan(W1, 16, 32)
    slab2 = _make_slab(y.reshape(B, H1, W1, 16), Wt2, kwp2)
    y = conv_bn_relu_pool(slab2, p["t2"], p["bn2_s"], p["bn2_b"],
                          H=H1, Wt=Wt2, kwp=kwp2, nW=nW2, cout=32)

    # fc1 (+ReLU) -> fc2 (+ReLU) -> 4 quantum layers -> fc3, fused kernel
    flat = y.reshape(B, H2_ * W2_ * 32)
    return fc1_head_pallas(flat, p)


if __name__ == "__main__":
    num_classes = 10
    key = jax.random.PRNGKey(0)
    kx, kp = jax.random.split(key)
    x = jax.random.normal(kx, (2, 3, 32, 32), jnp.float32)   # NCHW input
    params = init_params(kp, num_classes, img_hw=32)

    out = jax.jit(forward)(x, params)
    out = jax.block_until_ready(out)
    assert out.shape == (2, num_classes), out.shape
    assert bool(jnp.all(jnp.isfinite(out)))
    print("KERNEL_OK")
</pallas_src>

<mosaic_0001>
module attributes {stable_mosaic.version = 11 : i64} {
  func.func @k(%arg0: i32, %arg1: memref<8x128xf32, #tpu.memory_space<vmem>>, %arg2: memref<8x128xf32, #tpu.memory_space<vmem>>) attributes {dimension_semantics = [#tpu.dimension_semantics<arbitrary>], iteration_bounds = array<i64: 2>, scalar_prefetch = 0 : i64, scratch_operands = 0 : i64, tpu.core_type = #tpu.core_type<tc>, window_params = [{pipeline_mode = #tpu.pipeline_mode<synchronous>, transform_indices = @transform_0, window_bounds = array<i64: 8, 128>}, {pipeline_mode = #tpu.pipeline_mode<synchronous>, transform_indices = @transform_1, window_bounds = array<i64: 8, 128>}]} {
    %c0 = arith.constant 0 : index
    %c0_0 = arith.constant 0 : index
    %0 = vector.load %arg1[%c0, %c0_0] : memref<8x128xf32, #tpu.memory_space<vmem>>, vector<8x128xf32>
    %c0_1 = arith.constant 0 : index
    %c0_2 = arith.constant 0 : index
    %1 = vector.load %arg2[%c0_1, %c0_2] : memref<8x128xf32, #tpu.memory_space<vmem>>, vector<8x128xf32>
    tpu.vector_store %arg2[%c0_1, %c0_2], %0 {strides = array<i32>} : memref<8x128xf32, #tpu.memory_space<vmem>>, vector<8x128xf32>,
    return
  }
  func.func @transform_0(%arg0: i32) -> (i32, i32) {
    %c0_i32 = arith.constant 0 : i32
    %c0_i32_0 = arith.constant 0 : i32
    %c0_i32_1 = arith.constant 0 : i32
    return %c0_i32, %c0_i32_0 : i32, i32
  }
  func.func @transform_1(%arg0: i32) -> (i32, i32) {
    %c0_i32 = arith.constant 0 : i32
    %c0_i32_0 = arith.constant 0 : i32
    %c0_i32_1 = arith.constant 0 : i32
    return %c0_i32, %c0_i32_0 : i32, i32
  }
}

module attributes {stable_mosaic.version = 11 : i64} {
  func.func @kernel(%arg0: i32, %arg1: i32, %arg2: memref<1x1x2x18x128xbf16, #tpu.memory_space<vmem>>, %arg3: memref<640x512xbf16, #tpu.memory_space<vmem>>, %arg4: memref<1x512xf32, #tpu.memory_space<vmem>>, %arg5: memref<1x512xf32, #tpu.memory_space<vmem>>, %arg6: memref<1x16x256xbf16, #tpu.memory_space<vmem>>) attributes {dimension_semantics = [#tpu.dimension_semantics<parallel>, #tpu.dimension_semantics<parallel>], iteration_bounds = array<i64: 2, 1>, scalar_prefetch = 0 : i64, scratch_operands = 0 : i64, tpu.core_type = #tpu.core_type<tc>, window_params = [{transform_indices = @transform_0, window_bounds = array<i64: 1, 1, 2, 18, 128>}, {pipeline_mode = #tpu.pipeline_mode<synchronous>, transform_indices = @transform_1, window_bounds = array<i64: 640, 512>}, {pipeline_mode = #tpu.pipeline_mode<synchronous>, transform_indices = @transform_2, window_bounds = array<i64: 1, 512>}, {pipeline_mode = #tpu.pipeline_mode<synchronous>, transform_indices = @transform_3, window_bounds = array<i64: 1, 512>}, {transform_indices = @transform_4, window_bounds = array<i64: 1, 16, 256>}]} {
    %c0 = arith.constant 0 : index
    %c0_0 = arith.constant 0 : index
    %c0_1 = arith.constant 0 : index
    %c0_2 = arith.constant 0 : index
    %c0_3 = arith.constant 0 : index
    %0 = vector.load %arg2[%c0, %c0_0, %c0_1, %c0_2, %c0_3] : memref<1x1x2x18x128xbf16, #tpu.memory_space<vmem>>, vector<1x1x1x16x128xbf16>
    %1 = vector.shape_cast %0 : vector<1x1x1x16x128xbf16> to vector<16x128xbf16>
    %c0_4 = arith.constant 0 : index
    %c0_5 = arith.constant 0 : index
    %c1 = arith.constant 1 : index
    %c0_6 = arith.constant 0 : index
    %c0_7 = arith.constant 0 : index
    %2 = vector.load %arg2[%c0_4, %c0_5, %c1, %c0_6, %c0_7] : memref<1x1x2x18x128xbf16, #tpu.memory_space<vmem>>, vector<1x1x1x16x128xbf16>
    %3 = vector.shape_cast %2 : vector<1x1x1x16x128xbf16> to vector<16x128xbf16>
    %c0_8 = arith.constant 0 : index
    %c0_9 = arith.constant 0 : index
    %c0_10 = arith.constant 0 : index
    %c1_11 = arith.constant 1 : index
    %c0_12 = arith.constant 0 : index
    %4 = vector.load %arg2[%c0_8, %c0_9, %c0_10, %c1_11, %c0_12] : memref<1x1x2x18x128xbf16, #tpu.memory_space<vmem>>, vector<1x1x1x16x128xbf16>
    %5 = vector.shape_cast %4 : vector<1x1x1x16x128xbf16> to vector<16x128xbf16>
    %c0_13 = arith.constant 0 : index
    %c0_14 = arith.constant 0 : index
    %c1_15 = arith.constant 1 : index
    %c1_16 = arith.constant 1 : index
    %c0_17 = arith.constant 0 : index
    %6 = vector.load %arg2[%c0_13, %c0_14, %c1_15, %c1_16, %c0_17] : memref<1x1x2x18x128xbf16, #tpu.memory_space<vmem>>, vector<1x1x1x16x128xbf16>
    %7 = vector.shape_cast %6 : vector<1x1x1x16x128xbf16> to vector<16x128xbf16>
    %c0_18 = arith.constant 0 : index
    %c0_19 = arith.constant 0 : index
    %c0_20 = arith.constant 0 : index
    %c2 = arith.constant 2 : index
    %c0_21 = arith.constant 0 : index
    %8 = vector.load %arg2[%c0_18, %c0_19, %c0_20, %c2, %c0_21] : memref<1x1x2x18x128xbf16, #tpu.memory_space<vmem>>, vector<1x1x1x16x128xbf16>
    %9 = vector.shape_cast %8 : vector<1x1x1x16x128xbf16> to vector<16x128xbf16>
    %10 = tpu.concatenate %1, %3, %5, %7, %9 in 1 : vector<16x128xbf16>, vector<16x128xbf16>, vector<16x128xbf16>, vector<16x128xbf16>, vector<16x128xbf16> -> vector<16x640xbf16>
    %c0_22 = arith.constant 0 : index
    %c0_23 = arith.constant 0 : index
    %c1_24 = arith.constant 1 : index
    %c0_25 = arith.constant 0 : index
    %c0_26 = arith.constant 0 : index
    %11 = vector.load %arg2[%c0_22, %c0_23, %c1_24, %c0_25, %c0_26] : memref<1x1x2x18x128xbf16, #tpu.memory_space<vmem>>, vector<1x1x1x16x128xbf16>
    %12 = vector.shape_cast %11 : vector<1x1x1x16x128xbf16> to vector<16x128xbf16>
    %c0_27 = arith.constant 0 : index
    %c0_28 = arith.constant 0 : index
    %c0_29 = arith.constant 0 : index
    %c1_30 = arith.constant 1 : index
    %c0_31 = arith.constant 0 : index
    %13 = vector.load %arg2[%c0_27, %c0_28, %c0_29, %c1_30, %c0_31] : memref<1x1x2x18x128xbf16, #tpu.memory_space<vmem>>, vector<1x1x1x16x128xbf16>
    %14 = vector.shape_cast %13 : vector<1x1x1x16x128xbf16> to vector<16x128xbf16>
    %c0_32 = arith.constant 0 : index
    %c0_33 = arith.constant 0 : index
    %c1_34 = arith.constant 1 : index
    %c1_35 = arith.constant 1 : index
    %c0_36 = arith.constant 0 : index
    %15 = vector.load %arg2[%c0_32, %c0_33, %c1_34, %c1_35, %c0_36] : memref<1x1x2x18x128xbf16, #tpu.memory_space<vmem>>, vector<1x1x1x16x128xbf16>
    %16 = vector.shape_cast %15 : vector<1x1x1x16x128xbf16> to vector<16x128xbf16>
    %c0_37 = arith.constant 0 : index
    %c0_38 = arith.constant 0 : index
    %c0_39 = arith.constant 0 : index
    %c2_40 = arith.constant 2 : index
    %c0_41 = arith.constant 0 : index
    %17 = vector.load %arg2[%c0_37, %c0_38, %c0_39, %c2_40, %c0_41] : memref<1x1x2x18x128xbf16, #tpu.memory_space<vmem>>, vector<1x1x1x16x128xbf16>
    %18 = vector.shape_cast %17 : vector<1x1x1x16x128xbf16> to vector<16x128xbf16>
    %c0_42 = arith.constant 0 : index
    %c0_43 = arith.constant 0 : index
    %c1_44 = arith.constant 1 : index
    %c2_45 = arith.constant 2 : index
    %c0_46 = arith.constant 0 : index
    %19 = vector.load %arg2[%c0_42, %c0_43, %c1_44, %c2_45, %c0_46] : memref<1x1x2x18x128xbf16, #tpu.memory_space<vmem>>, vector<1x1x1x16x128xbf16>
    %20 = vector.shape_cast %19 : vector<1x1x1x16x128xbf16> to vector<16x128xbf16>
    %21 = tpu.concatenate %12, %14, %16, %18, %20 in 1 : vector<16x128xbf16>, vector<16x128xbf16>, vector<16x128xbf16>, vector<16x128xbf16>, vector<16x128xbf16> -> vector<16x640xbf16>
    %22 = tpu.concatenate %10, %21 in 0 : vector<16x640xbf16>, vector<16x640xbf16> -> vector<32x640xbf16>
    %c0_47 = arith.constant 0 : index
    %c0_48 = arith.constant 0 : index
    %23 = vector.load %arg3[%c0_47, %c0_48] : memref<640x512xbf16, #tpu.memory_space<vmem>>, vector<640x512xbf16>
    %cst = arith.constant dense<0.000000e+00> : vector<32x512xf32>
    %24 = tpu.matmul %22, %23, %cst {dimension_numbers = #tpu.dot_dimension_numbers<[1], [0], [0], [1], [0, 0, 1, 1], [], []>} : vector<32x640xbf16>, vector<640x512xbf16>, vector<32x512xf32> -> vector<32x512xf32>
    %c0_49 = arith.constant 0 : index
    %c0_50 = arith.constant 0 : index
    %25 = vector.load %arg4[%c0_49, %c0_50] : memref<1x512xf32, #tpu.memory_space<vmem>>, vector<1x512xf32>
    %26 = vector.broadcast %25 : vector<1x512xf32> to vector<32x512xf32>
    %27 = arith.mulf %24, %26 : vector<32x512xf32>
    %c0_51 = arith.constant 0 : index
    %c0_52 = arith.constant 0 : index
    %28 = vector.load %arg5[%c0_51, %c0_52] : memref<1x512xf32, #tpu.memory_space<vmem>>, vector<1x512xf32>
    %29 = vector.broadcast %28 : vector<1x512xf32> to vector<32x512xf32>
    %30 = arith.addf %27, %29 : vector<32x512xf32>
    %cst_53 = arith.constant 0.000000e+00 : f32
    %31 = vector.broadcast %cst_53 : f32 to vector<32x512xf32>
    %32 = arith.maximumf %30, %31 : vector<32x512xf32>
    %33 = vector.extract_strided_slice %32 {offsets = [0, 0], sizes = [16, 512], strides = [1, 1]} : vector<32x512xf32> to vector<16x512xf32>
    %34 = vector.extract_strided_slice %32 {offsets = [16, 0], sizes = [16, 512], strides = [1, 1]} : vector<32x512xf32> to vector<16x512xf32>
    %35 = arith.maximumf %33, %34 : vector<16x512xf32>
    %36 = vector.extract_strided_slice %35 {offsets = [0, 0], sizes = [16, 256], strides = [1, 1]} : vector<16x512xf32> to vector<16x256xf32>
    %37 = vector.extract_strided_slice %35 {offsets = [0, 256], sizes = [16, 256], strides = [1, 1]} : vector<16x512xf32> to vector<16x256xf32>
    %38 = arith.maximumf %36, %37 : vector<16x256xf32>
    %39 = arith.truncf %38 : vector<16x256xf32> to vector<16x256xbf16>
    %c0_54 = arith.constant 0 : index
    %c0_55 = arith.constant 0 : index
    %c0_56 = arith.constant 0 : index
    %40 = vector.load %arg6[%c0_54, %c0_55, %c0_56] : memref<1x16x256xbf16, #tpu.memory_space<vmem>>, vector<1x16x256xbf16>
    %41 = vector.shape_cast %40 : vector<1x16x256xbf16> to vector<16x256xbf16>
    %42 = vector.shape_cast %39 : vector<16x256xbf16> to vector<1x16x256xbf16>
    tpu.vector_store %arg6[%c0_54, %c0_55, %c0_56], %42 {strides = array<i32>} : memref<1x16x256xbf16, #tpu.memory_space<vmem>>, vector<1x16x256xbf16>,
    return
  }
  func.func @transform_0(%arg0: i32, %arg1: i32) -> (i32, i32, i32, i32, i32) {
    %c0_i32 = arith.constant 0 : i32
    %c0_i32_0 = arith.constant 0 : i32
    %c0_i32_1 = arith.constant 0 : i32
    %c0_i32_2 = arith.constant 0 : i32
    return %arg0, %arg1, %c0_i32, %c0_i32_0, %c0_i32_1 : i32, i32, i32, i32, i32
  }
  func.func @transform_1(%arg0: i32, %arg1: i32) -> (i32, i32) {
    %c0_i32 = arith.constant 0 : i32
    %c0_i32_0 = arith.constant 0 : i32
    %c0_i32_1 = arith.constant 0 : i32
    return %c0_i32, %c0_i32_0 : i32, i32
  }
  func.func @transform_2(%arg0: i32, %arg1: i32) -> (i32, i32) {
    %c0_i32 = arith.constant 0 : i32
    %c0_i32_0 = arith.constant 0 : i32
    %c0_i32_1 = arith.constant 0 : i32
    return %c0_i32, %c0_i32_0 : i32, i32
  }
  func.func @transform_3(%arg0: i32, %arg1: i32) -> (i32, i32) {
    %c0_i32 = arith.constant 0 : i32
    %c0_i32_0 = arith.constant 0 : i32
    %c0_i32_1 = arith.constant 0 : i32
    return %c0_i32, %c0_i32_0 : i32, i32
  }
  func.func @transform_4(%arg0: i32, %arg1: i32) -> (i32, i32, i32) {
    %c0_i32 = arith.constant 0 : i32
    %c0_i32_0 = arith.constant 0 : i32
    return %arg0, %c0_i32, %arg1 : i32, i32, i32
  }
}

module attributes {stable_mosaic.version = 11 : i64} {
  func.func @kernel(%arg0: i32, %arg1: i32, %arg2: memref<1x1x2x10x384xbf16, #tpu.memory_space<vmem>>, %arg3: memref<1920x512xbf16, #tpu.memory_space<vmem>>, %arg4: memref<1x512xf32, #tpu.memory_space<vmem>>, %arg5: memref<1x512xf32, #tpu.memory_space<vmem>>, %arg6: memref<1x8x256xbf16, #tpu.memory_space<vmem>>) attributes {dimension_semantics = [#tpu.dimension_semantics<parallel>, #tpu.dimension_semantics<parallel>], iteration_bounds = array<i64: 2, 1>, scalar_prefetch = 0 : i64, scratch_operands = 0 : i64, tpu.core_type = #tpu.core_type<tc>, window_params = [{transform_indices = @transform_0, window_bounds = array<i64: 1, 1, 2, 10, 384>}, {pipeline_mode = #tpu.pipeline_mode<synchronous>, transform_indices = @transform_1, window_bounds = array<i64: 1920, 512>}, {pipeline_mode = #tpu.pipeline_mode<synchronous>, transform_indices = @transform_2, window_bounds = array<i64: 1, 512>}, {pipeline_mode = #tpu.pipeline_mode<synchronous>, transform_indices = @transform_3, window_bounds = array<i64: 1, 512>}, {transform_indices = @transform_4, window_bounds = array<i64: 1, 8, 256>}]} {
    %c0 = arith.constant 0 : index
    %c0_0 = arith.constant 0 : index
    %c0_1 = arith.constant 0 : index
    %c0_2 = arith.constant 0 : index
    %c0_3 = arith.constant 0 : index
    %0 = vector.load %arg2[%c0, %c0_0, %c0_1, %c0_2, %c0_3] : memref<1x1x2x10x384xbf16, #tpu.memory_space<vmem>>, vector<1x1x1x8x384xbf16>
    %1 = vector.shape_cast %0 : vector<1x1x1x8x384xbf16> to vector<8x384xbf16>
    %c0_4 = arith.constant 0 : index
    %c0_5 = arith.constant 0 : index
    %c1 = arith.constant 1 : index
    %c0_6 = arith.constant 0 : index
    %c0_7 = arith.constant 0 : index
    %2 = vector.load %arg2[%c0_4, %c0_5, %c1, %c0_6, %c0_7] : memref<1x1x2x10x384xbf16, #tpu.memory_space<vmem>>, vector<1x1x1x8x384xbf16>
    %3 = vector.shape_cast %2 : vector<1x1x1x8x384xbf16> to vector<8x384xbf16>
    %c0_8 = arith.constant 0 : index
    %c0_9 = arith.constant 0 : index
    %c0_10 = arith.constant 0 : index
    %c1_11 = arith.constant 1 : index
    %c0_12 = arith.constant 0 : index
    %4 = vector.load %arg2[%c0_8, %c0_9, %c0_10, %c1_11, %c0_12] : memref<1x1x2x10x384xbf16, #tpu.memory_space<vmem>>, vector<1x1x1x8x384xbf16>
    %5 = vector.shape_cast %4 : vector<1x1x1x8x384xbf16> to vector<8x384xbf16>
    %c0_13 = arith.constant 0 : index
    %c0_14 = arith.constant 0 : index
    %c1_15 = arith.constant 1 : index
    %c1_16 = arith.constant 1 : index
    %c0_17 = arith.constant 0 : index
    %6 = vector.load %arg2[%c0_13, %c0_14, %c1_15, %c1_16, %c0_17] : memref<1x1x2x10x384xbf16, #tpu.memory_space<vmem>>, vector<1x1x1x8x384xbf16>
    %7 = vector.shape_cast %6 : vector<1x1x1x8x384xbf16> to vector<8x384xbf16>
    %c0_18 = arith.constant 0 : index
    %c0_19 = arith.constant 0 : index
    %c0_20 = arith.constant 0 : index
    %c2 = arith.constant 2 : index
    %c0_21 = arith.constant 0 : index
    %8 = vector.load %arg2[%c0_18, %c0_19, %c0_20, %c2, %c0_21] : memref<1x1x2x10x384xbf16, #tpu.memory_space<vmem>>, vector<1x1x1x8x384xbf16>
    %9 = vector.shape_cast %8 : vector<1x1x1x8x384xbf16> to vector<8x384xbf16>
    %10 = tpu.concatenate %1, %3, %5, %7, %9 in 1 : vector<8x384xbf16>, vector<8x384xbf16>, vector<8x384xbf16>, vector<8x384xbf16>, vector<8x384xbf16> -> vector<8x1920xbf16>
    %c0_22 = arith.constant 0 : index
    %c0_23 = arith.constant 0 : index
    %c1_24 = arith.constant 1 : index
    %c0_25 = arith.constant 0 : index
    %c0_26 = arith.constant 0 : index
    %11 = vector.load %arg2[%c0_22, %c0_23, %c1_24, %c0_25, %c0_26] : memref<1x1x2x10x384xbf16, #tpu.memory_space<vmem>>, vector<1x1x1x8x384xbf16>
    %12 = vector.shape_cast %11 : vector<1x1x1x8x384xbf16> to vector<8x384xbf16>
    %c0_27 = arith.constant 0 : index
    %c0_28 = arith.constant 0 : index
    %c0_29 = arith.constant 0 : index
    %c1_30 = arith.constant 1 : index
    %c0_31 = arith.constant 0 : index
    %13 = vector.load %arg2[%c0_27, %c0_28, %c0_29, %c1_30, %c0_31] : memref<1x1x2x10x384xbf16, #tpu.memory_space<vmem>>, vector<1x1x1x8x384xbf16>
    %14 = vector.shape_cast %13 : vector<1x1x1x8x384xbf16> to vector<8x384xbf16>
    %c0_32 = arith.constant 0 : index
    %c0_33 = arith.constant 0 : index
    %c1_34 = arith.constant 1 : index
    %c1_35 = arith.constant 1 : index
    %c0_36 = arith.constant 0 : index
    %15 = vector.load %arg2[%c0_32, %c0_33, %c1_34, %c1_35, %c0_36] : memref<1x1x2x10x384xbf16, #tpu.memory_space<vmem>>, vector<1x1x1x8x384xbf16>
    %16 = vector.shape_cast %15 : vector<1x1x1x8x384xbf16> to vector<8x384xbf16>
    %c0_37 = arith.constant 0 : index
    %c0_38 = arith.constant 0 : index
    %c0_39 = arith.constant 0 : index
    %c2_40 = arith.constant 2 : index
    %c0_41 = arith.constant 0 : index
    %17 = vector.load %arg2[%c0_37, %c0_38, %c0_39, %c2_40, %c0_41] : memref<1x1x2x10x384xbf16, #tpu.memory_space<vmem>>, vector<1x1x1x8x384xbf16>
    %18 = vector.shape_cast %17 : vector<1x1x1x8x384xbf16> to vector<8x384xbf16>
    %c0_42 = arith.constant 0 : index
    %c0_43 = arith.constant 0 : index
    %c1_44 = arith.constant 1 : index
    %c2_45 = arith.constant 2 : index
    %c0_46 = arith.constant 0 : index
    %19 = vector.load %arg2[%c0_42, %c0_43, %c1_44, %c2_45, %c0_46] : memref<1x1x2x10x384xbf16, #tpu.memory_space<vmem>>, vector<1x1x1x8x384xbf16>
    %20 = vector.shape_cast %19 : vector<1x1x1x8x384xbf16> to vector<8x384xbf16>
    %21 = tpu.concatenate %12, %14, %16, %18, %20 in 1 : vector<8x384xbf16>, vector<8x384xbf16>, vector<8x384xbf16>, vector<8x384xbf16>, vector<8x384xbf16> -> vector<8x1920xbf16>
    %22 = tpu.concatenate %10, %21 in 0 : vector<8x1920xbf16>, vector<8x1920xbf16> -> vector<16x1920xbf16>
    %c0_47 = arith.constant 0 : index
    %c0_48 = arith.constant 0 : index
    %23 = vector.load %arg3[%c0_47, %c0_48] : memref<1920x512xbf16, #tpu.memory_space<vmem>>, vector<1920x512xbf16>
    %cst = arith.constant dense<0.000000e+00> : vector<16x512xf32>
    %24 = tpu.matmul %22, %23, %cst {dimension_numbers = #tpu.dot_dimension_numbers<[1], [0], [0], [1], [0, 0, 1, 1], [], []>} : vector<16x1920xbf16>, vector<1920x512xbf16>, vector<16x512xf32> -> vector<16x512xf32>
    %c0_49 = arith.constant 0 : index
    %c0_50 = arith.constant 0 : index
    %25 = vector.load %arg4[%c0_49, %c0_50] : memref<1x512xf32, #tpu.memory_space<vmem>>, vector<1x512xf32>
    %26 = vector.broadcast %25 : vector<1x512xf32> to vector<16x512xf32>
    %27 = arith.mulf %24, %26 : vector<16x512xf32>
    %c0_51 = arith.constant 0 : index
    %c0_52 = arith.constant 0 : index
    %28 = vector.load %arg5[%c0_51, %c0_52] : memref<1x512xf32, #tpu.memory_space<vmem>>, vector<1x512xf32>
    %29 = vector.broadcast %28 : vector<1x512xf32> to vector<16x512xf32>
    %30 = arith.addf %27, %29 : vector<16x512xf32>
    %cst_53 = arith.constant 0.000000e+00 : f32
    %31 = vector.broadcast %cst_53 : f32 to vector<16x512xf32>
    %32 = arith.maximumf %30, %31 : vector<16x512xf32>
    %33 = vector.extract_strided_slice %32 {offsets = [0, 0], sizes = [8, 512], strides = [1, 1]} : vector<16x512xf32> to vector<8x512xf32>
    %34 = vector.extract_strided_slice %32 {offsets = [8, 0], sizes = [8, 512], strides = [1, 1]} : vector<16x512xf32> to vector<8x512xf32>
    %35 = arith.maximumf %33, %34 : vector<8x512xf32>
    %36 = vector.extract_strided_slice %35 {offsets = [0, 0], sizes = [8, 256], strides = [1, 1]} : vector<8x512xf32> to vector<8x256xf32>
    %37 = vector.extract_strided_slice %35 {offsets = [0, 256], sizes = [8, 256], strides = [1, 1]} : vector<8x512xf32> to vector<8x256xf32>
    %38 = arith.maximumf %36, %37 : vector<8x256xf32>
    %39 = arith.truncf %38 : vector<8x256xf32> to vector<8x256xbf16>
    %c0_54 = arith.constant 0 : index
    %c0_55 = arith.constant 0 : index
    %c0_56 = arith.constant 0 : index
    %40 = vector.load %arg6[%c0_54, %c0_55, %c0_56] : memref<1x8x256xbf16, #tpu.memory_space<vmem>>, vector<1x8x256xbf16>
    %41 = vector.shape_cast %40 : vector<1x8x256xbf16> to vector<8x256xbf16>
    %42 = vector.shape_cast %39 : vector<8x256xbf16> to vector<1x8x256xbf16>
    tpu.vector_store %arg6[%c0_54, %c0_55, %c0_56], %42 {strides = array<i32>} : memref<1x8x256xbf16, #tpu.memory_space<vmem>>, vector<1x8x256xbf16>,
    return
  }
  func.func @transform_0(%arg0: i32, %arg1: i32) -> (i32, i32, i32, i32, i32) {
    %c0_i32 = arith.constant 0 : i32
    %c0_i32_0 = arith.constant 0 : i32
    %c0_i32_1 = arith.constant 0 : i32
    %c0_i32_2 = arith.constant 0 : i32
    return %arg0, %arg1, %c0_i32, %c0_i32_0, %c0_i32_1 : i32, i32, i32, i32, i32
  }
  func.func @transform_1(%arg0: i32, %arg1: i32) -> (i32, i32) {
    %c0_i32 = arith.constant 0 : i32
    %c0_i32_0 = arith.constant 0 : i32
    %c0_i32_1 = arith.constant 0 : i32
    return %c0_i32, %c0_i32_0 : i32, i32
  }
  func.func @transform_2(%arg0: i32, %arg1: i32) -> (i32, i32) {
    %c0_i32 = arith.constant 0 : i32
    %c0_i32_0 = arith.constant 0 : i32
    %c0_i32_1 = arith.constant 0 : i32
    return %c0_i32, %c0_i32_0 : i32, i32
  }
  func.func @transform_3(%arg0: i32, %arg1: i32) -> (i32, i32) {
    %c0_i32 = arith.constant 0 : i32
    %c0_i32_0 = arith.constant 0 : i32
    %c0_i32_1 = arith.constant 0 : i32
    return %c0_i32, %c0_i32_0 : i32, i32
  }
  func.func @transform_4(%arg0: i32, %arg1: i32) -> (i32, i32, i32) {
    %c0_i32 = arith.constant 0 : i32
    %c0_i32_0 = arith.constant 0 : i32
    return %arg0, %c0_i32, %arg1 : i32, i32, i32
  }
}

module attributes {stable_mosaic.version = 11 : i64} {
  func.func @_fc1_head_kernel(%arg0: i32, %arg1: i32, %arg2: memref<2x2048xbf16, #tpu.memory_space<vmem>>, %arg3: memref<2048x128xbf16, #tpu.memory_space<vmem>>, %arg4: memref<1x128xf32, #tpu.memory_space<vmem>>, %arg5: memref<128x20xf32, #tpu.memory_space<vmem>>, %arg6: memref<1x20xf32, #tpu.memory_space<vmem>>, %arg7: memref<20x640xf32, #tpu.memory_space<vmem>>, %arg8: memref<20x640xf32, #tpu.memory_space<vmem>>, %arg9: memref<128x128xf32, #tpu.memory_space<vmem>>, %arg10: memref<128x128xf32, #tpu.memory_space<vmem>>, %arg11: memref<128x10xf32, #tpu.memory_space<vmem>>, %arg12: memref<1x10xf32, #tpu.memory_space<vmem>>, %arg13: memref<2x10xf32, #tpu.memory_space<vmem>>, %arg14: memref<2x128xf32, #tpu.memory_space<vmem>>) attributes {dimension_semantics = [#tpu.dimension_semantics<parallel>, #tpu.dimension_semantics<arbitrary>], iteration_bounds = array<i64: 1, 1>, scalar_prefetch = 0 : i64, scratch_operands = 1 : i64, tpu.core_type = #tpu.core_type<tc>, window_params = [{transform_indices = @transform_0, window_bounds = array<i64: 2, 2048>}, {transform_indices = @transform_1, window_bounds = array<i64: 2048, 128>}, {pipeline_mode = #tpu.pipeline_mode<synchronous>, transform_indices = @transform_2, window_bounds = array<i64: 1, 128>}, {pipeline_mode = #tpu.pipeline_mode<synchronous>, transform_indices = @transform_3, window_bounds = array<i64: 128, 20>}, {pipeline_mode = #tpu.pipeline_mode<synchronous>, transform_indices = @transform_4, window_bounds = array<i64: 1, 20>}, {pipeline_mode = #tpu.pipeline_mode<synchronous>, transform_indices = @transform_5, window_bounds = array<i64: 20, 640>}, {pipeline_mode = #tpu.pipeline_mode<synchronous>, transform_indices = @transform_6, window_bounds = array<i64: 20, 640>}, {pipeline_mode = #tpu.pipeline_mode<synchronous>, transform_indices = @transform_7, window_bounds = array<i64: 128, 128>}, {pipeline_mode = #tpu.pipeline_mode<synchronous>, transform_indices = @transform_8, window_bounds = array<i64: 128, 128>}, {pipeline_mode = #tpu.pipeline_mode<synchronous>, transform_indices = @transform_9, window_bounds = array<i64: 128, 10>}, {pipeline_mode = #tpu.pipeline_mode<synchronous>, transform_indices = @transform_10, window_bounds = array<i64: 1, 10>}, {transform_indices = @transform_11, window_bounds = array<i64: 2, 10>}]} {
    %c0_i32 = arith.constant 0 : i32
    %0 = arith.cmpi eq, %arg1, %c0_i32 : i32
    %1 = arith.extui %0 : i1 to i32
    %c0_i32_0 = arith.constant 0 : i32
    %2 = arith.cmpi ne, %1, %c0_i32_0 : i32
    scf.if %2 {
      %cst_10 = arith.constant 0.000000e+00 : f32
      %12 = vector.broadcast %cst_10 : f32 to vector<2x128xf32>
      %c0_11 = arith.constant 0 : index
      %c0_12 = arith.constant 0 : index
      %13 = vector.load %arg14[%c0_11, %c0_12] : memref<2x128xf32, #tpu.memory_space<vmem>>, vector<2x128xf32>
      tpu.vector_store %arg14[%c0_11, %c0_12], %12 {strides = array<i32>} : memref<2x128xf32, #tpu.memory_space<vmem>>, vector<2x128xf32>,
    } else {
    }
    %c0 = arith.constant 0 : index
    %c0_1 = arith.constant 0 : index
    %3 = vector.load %arg14[%c0, %c0_1] : memref<2x128xf32, #tpu.memory_space<vmem>>, vector<2x128xf32>
    %c0_2 = arith.constant 0 : index
    %c0_3 = arith.constant 0 : index
    %4 = vector.load %arg2[%c0_2, %c0_3] : memref<2x2048xbf16, #tpu.memory_space<vmem>>, vector<2x2048xbf16>
    %c0_4 = arith.constant 0 : index
    %c0_5 = arith.constant 0 : index
    %5 = vector.load %arg3[%c0_4, %c0_5] : memref<2048x128xbf16, #tpu.memory_space<vmem>>, vector<2048x128xbf16>
    %cst = arith.constant dense<0.000000e+00> : vector<2x128xf32>
    %6 = tpu.matmul %4, %5, %cst {dimension_numbers = #tpu.dot_dimension_numbers<[1], [0], [0], [1], [0, 0, 1, 1], [], []>} : vector<2x2048xbf16>, vector<2048x128xbf16>, vector<2x128xf32> -> vector<2x128xf32>
    %7 = arith.addf %3, %6 : vector<2x128xf32>
    %c0_6 = arith.constant 0 : index
    %c0_7 = arith.constant 0 : index
    %8 = vector.load %arg14[%c0_6, %c0_7] : memref<2x128xf32, #tpu.memory_space<vmem>>, vector<2x128xf32>
    tpu.vector_store %arg14[%c0_6, %c0_7], %7 {strides = array<i32>} : memref<2x128xf32, #tpu.memory_space<vmem>>, vector<2x128xf32>,
    %c0_i32_8 = arith.constant 0 : i32
    %9 = arith.cmpi eq, %arg1, %c0_i32_8 : i32
    %10 = arith.extui %9 : i1 to i32
    %c0_i32_9 = arith.constant 0 : i32
    %11 = arith.cmpi ne, %10, %c0_i32_9 : i32
    scf.if %11 {
      %c0_10 = arith.constant 0 : index
      %c0_11 = arith.constant 0 : index
      %12 = vector.load %arg14[%c0_10, %c0_11] : memref<2x128xf32, #tpu.memory_space<vmem>>, vector<2x128xf32>
      %c0_12 = arith.constant 0 : index
      %c0_13 = arith.constant 0 : index
      %13 = vector.load %arg4[%c0_12, %c0_13] : memref<1x128xf32, #tpu.memory_space<vmem>>, vector<1x128xf32>
      %14 = vector.broadcast %13 : vector<1x128xf32> to vector<2x128xf32>
      %15 = arith.addf %12, %14 : vector<2x128xf32>
      %cst_14 = arith.constant 0.000000e+00 : f32
      %16 = vector.broadcast %cst_14 : f32 to vector<2x128xf32>
      %17 = arith.maximumf %15, %16 : vector<2x128xf32>
      %c0_15 = arith.constant 0 : index
      %c0_16 = arith.constant 0 : index
      %18 = vector.load %arg5[%c0_15, %c0_16] : memref<128x20xf32, #tpu.memory_space<vmem>>, vector<128x20xf32>
      %cst_17 = arith.constant dense<0.000000e+00> : vector<2x20xf32>
      %19 = tpu.matmul %17, %18, %cst_17 {dimension_numbers = #tpu.dot_dimension_numbers<[1], [0], [0], [1], [0, 0, 1, 1], [], []>} : vector<2x128xf32>, vector<128x20xf32>, vector<2x20xf32> -> vector<2x20xf32>
      %c0_18 = arith.constant 0 : index
      %c0_19 = arith.constant 0 : index
      %20 = vector.load %arg6[%c0_18, %c0_19] : memref<1x20xf32, #tpu.memory_space<vmem>>, vector<1x20xf32>
      %21 = vector.broadcast %20 : vector<1x20xf32> to vector<2x20xf32>
      %22 = arith.addf %19, %21 : vector<2x20xf32>
      %cst_20 = arith.constant 0.000000e+00 : f32
      %23 = vector.broadcast %cst_20 : f32 to vector<2x20xf32>
      %24 = arith.maximumf %22, %23 : vector<2x20xf32>
      %cst_21 = arith.constant 5.000000e-01 : f32
      %25 = vector.broadcast %cst_21 : f32 to vector<2x20xf32>
      %26 = arith.mulf %25, %24 : vector<2x20xf32>
      %27 = math.cos %26 : vector<2x20xf32>
      %c0_22 = arith.constant 0 : index
      %c0_23 = arith.constant 0 : index
      %28 = vector.load %arg7[%c0_22, %c0_23] : memref<20x640xf32, #tpu.memory_space<vmem>>, vector<20x640xf32>
      %cst_24 = arith.constant dense<0.000000e+00> : vector<2x640xf32>
      %29 = tpu.matmul %27, %28, %cst_24 {dimension_numbers = #tpu.dot_dimension_numbers<[1], [0], [0], [1], [0, 0, 1, 1], [], []>} : vector<2x20xf32>, vector<20x640xf32>, vector<2x640xf32> -> vector<2x640xf32>
      %30 = math.sin %26 : vector<2x20xf32>
      %c0_25 = arith.constant 0 : index
      %c0_26 = arith.constant 0 : index
      %31 = vector.load %arg8[%c0_25, %c0_26] : memref<20x640xf32, #tpu.memory_space<vmem>>, vector<20x640xf32>
      %cst_27 = arith.constant dense<0.000000e+00> : vector<2x640xf32>
      %32 = tpu.matmul %30, %31, %cst_27 {dimension_numbers = #tpu.dot_dimension_numbers<[1], [0], [0], [1], [0, 0, 1, 1], [], []>} : vector<2x20xf32>, vector<20x640xf32>, vector<2x640xf32> -> vector<2x640xf32>
      %33 = arith.addf %29, %32 : vector<2x640xf32>
      %34 = vector.extract_strided_slice %33 {offsets = [0, 0], sizes = [2, 128], strides = [1, 1]} : vector<2x640xf32> to vector<2x128xf32>
      %35 = vector.extract_strided_slice %33 {offsets = [0, 128], sizes = [2, 128], strides = [1, 1]} : vector<2x640xf32> to vector<2x128xf32>
      %36 = arith.mulf %34, %35 : vector<2x128xf32>
      %37 = vector.extract_strided_slice %33 {offsets = [0, 256], sizes = [2, 128], strides = [1, 1]} : vector<2x640xf32> to vector<2x128xf32>
      %38 = arith.mulf %36, %37 : vector<2x128xf32>
      %39 = vector.extract_strided_slice %33 {offsets = [0, 384], sizes = [2, 128], strides = [1, 1]} : vector<2x640xf32> to vector<2x128xf32>
      %40 = arith.mulf %38, %39 : vector<2x128xf32>
      %41 = vector.extract_strided_slice %33 {offsets = [0, 512], sizes = [2, 128], strides = [1, 1]} : vector<2x640xf32> to vector<2x128xf32>
      %42 = arith.mulf %40, %41 : vector<2x128xf32>
      %c0_28 = arith.constant 0 : index
      %c0_29 = arith.constant 0 : index
      %43 = vector.load %arg9[%c0_28, %c0_29] : memref<128x128xf32, #tpu.memory_space<vmem>>, vector<128x128xf32>
      %cst_30 = arith.constant dense<0.000000e+00> : vector<2x128xf32>
      %44 = tpu.matmul %42, %43, %cst_30 {dimension_numbers = #tpu.dot_dimension_numbers<[1], [0], [0], [1], [0, 0, 1, 1], [], []>} : vector<2x128xf32>, vector<128x128xf32>, vector<2x128xf32> -> vector<2x128xf32>
      %c0_31 = arith.constant 0 : index
      %c0_32 = arith.constant 0 : index
      %45 = vector.load %arg10[%c0_31, %c0_32] : memref<128x128xf32, #tpu.memory_space<vmem>>, vector<128x128xf32>
      %cst_33 = arith.constant dense<0.000000e+00> : vector<2x128xf32>
      %46 = tpu.matmul %42, %45, %cst_33 {dimension_numbers = #tpu.dot_dimension_numbers<[1], [0], [0], [1], [0, 0, 1, 1], [], []>} : vector<2x128xf32>, vector<128x128xf32>, vector<2x128xf32> -> vector<2x128xf32>
      %47 = arith.mulf %44, %44 : vector<2x128xf32>
      %48 = arith.mulf %46, %46 : vector<2x128xf32>
      %49 = arith.addf %47, %48 : vector<2x128xf32>
      %c0_34 = arith.constant 0 : index
      %c0_35 = arith.constant 0 : index
      %50 = vector.load %arg11[%c0_34, %c0_35] : memref<128x10xf32, #tpu.memory_space<vmem>>, vector<128x10xf32>
      %cst_36 = arith.constant dense<0.000000e+00> : vector<2x10xf32>
      %51 = tpu.matmul %49, %50, %cst_36 {dimension_numbers = #tpu.dot_dimension_numbers<[1], [0], [0], [1], [0, 0, 1, 1], [], []>} : vector<2x128xf32>, vector<128x10xf32>, vector<2x10xf32> -> vector<2x10xf32>
      %c0_37 = arith.constant 0 : index
      %c0_38 = arith.constant 0 : index
      %52 = vector.load %arg12[%c0_37, %c0_38] : memref<1x10xf32, #tpu.memory_space<vmem>>, vector<1x10xf32>
      %53 = vector.broadcast %52 : vector<1x10xf32> to vector<2x10xf32>
      %54 = arith.addf %51, %53 : vector<2x10xf32>
      %c0_39 = arith.constant 0 : index
      %c0_40 = arith.constant 0 : index
      %55 = vector.load %arg13[%c0_39, %c0_40] : memref<2x10xf32, #tpu.memory_space<vmem>>, vector<2x10xf32>
      tpu.vector_store %arg13[%c0_39, %c0_40], %54 {strides = array<i32>} : memref<2x10xf32, #tpu.memory_space<vmem>>, vector<2x10xf32>,
    } else {
    }
    return
  }
  func.func @transform_0(%arg0: i32, %arg1: i32) -> (i32, i32) {
    %c0_i32 = arith.constant 0 : i32
    return %arg0, %arg1 : i32, i32
  }
  func.func @transform_1(%arg0: i32, %arg1: i32) -> (i32, i32) {
    %c0_i32 = arith.constant 0 : i32
    %c0_i32_0 = arith.constant 0 : i32
    return %arg1, %c0_i32 : i32, i32
  }
  func.func @transform_2(%arg0: i32, %arg1: i32) -> (i32, i32) {
    %c0_i32 = arith.constant 0 : i32
    %c0_i32_0 = arith.constant 0 : i32
    %c0_i32_1 = arith.constant 0 : i32
    return %c0_i32, %c0_i32_0 : i32, i32
  }
  func.func @transform_3(%arg0: i32, %arg1: i32) -> (i32, i32) {
    %c0_i32 = arith.constant 0 : i32
    %c0_i32_0 = arith.constant 0 : i32
    %c0_i32_1 = arith.constant 0 : i32
    return %c0_i32, %c0_i32_0 : i32, i32
  }
  func.func @transform_4(%arg0: i32, %arg1: i32) -> (i32, i32) {
    %c0_i32 = arith.constant 0 : i32
    %c0_i32_0 = arith.constant 0 : i32
    %c0_i32_1 = arith.constant 0 : i32
    return %c0_i32, %c0_i32_0 : i32, i32
  }
  func.func @transform_5(%arg0: i32, %arg1: i32) -> (i32, i32) {
    %c0_i32 = arith.constant 0 : i32
    %c0_i32_0 = arith.constant 0 : i32
    %c0_i32_1 = arith.constant 0 : i32
    return %c0_i32, %c0_i32_0 : i32, i32
  }
  func.func @transform_6(%arg0: i32, %arg1: i32) -> (i32, i32) {
    %c0_i32 = arith.constant 0 : i32
    %c0_i32_0 = arith.constant 0 : i32
    %c0_i32_1 = arith.constant 0 : i32
    return %c0_i32, %c0_i32_0 : i32, i32
  }
  func.func @transform_7(%arg0: i32, %arg1: i32) -> (i32, i32) {
    %c0_i32 = arith.constant 0 : i32
    %c0_i32_0 = arith.constant 0 : i32
    %c0_i32_1 = arith.constant 0 : i32
    return %c0_i32, %c0_i32_0 : i32, i32
  }
  func.func @transform_8(%arg0: i32, %arg1: i32) -> (i32, i32) {
    %c0_i32 = arith.constant 0 : i32
    %c0_i32_0 = arith.constant 0 : i32
    %c0_i32_1 = arith.constant 0 : i32
    return %c0_i32, %c0_i32_0 : i32, i32
  }
  func.func @transform_9(%arg0: i32, %arg1: i32) -> (i32, i32) {
    %c0_i32 = arith.constant 0 : i32
    %c0_i32_0 = arith.constant 0 : i32
    %c0_i32_1 = arith.constant 0 : i32
    return %c0_i32, %c0_i32_0 : i32, i32
  }
  func.func @transform_10(%arg0: i32, %arg1: i32) -> (i32, i32) {
    %c0_i32 = arith.constant 0 : i32
    %c0_i32_0 = arith.constant 0 : i32
    %c0_i32_1 = arith.constant 0 : i32
    return %c0_i32, %c0_i32_0 : i32, i32
  }
  func.func @transform_11(%arg0: i32, %arg1: i32) -> (i32, i32) {
    %c0_i32 = arith.constant 0 : i32
    %c0_i32_0 = arith.constant 0 : i32
    return %arg0, %c0_i32 : i32, i32
  }
}

</mosaic_0001>

<bundles_post_ra>
// kernel: tpu_custom_call.1
= control target key start
LH: loop header
LB: loop body
LE: loop exit
PB: predicated region body
PF: predicated region fallthrough
CT: control target
= control target key end

     0   :  { %6 = vsyncpa [#allocation3], 0  ;;  %s304_s0 = inlined_call_operand.hbm [shape: f32[8,128], index: 0, kind: input, shape index: {}]   ;;  %s305_s1 = inlined_call_operand.hbm [shape: f32[8,128], index: 1, kind: output, shape index: {}]  }
   0x1   :  { %7 = vsyncpa [#allocation4], 0  ;;  %s257_s6 = smov 0  }
   0x2 LB: > { %s144_s7 = sadd.s32 4294967295, %s243_s6   ;;  %p145_p0 = scmp.ge.s32.totalorder %s243_s6, 1  ;;  %s243_s6 = sphi %s257_s6, %s13_s6  }
   0x3   : > { %p60_p1 = scmp.lt.s32.totalorder %s243_s6, 3  ;;  %p269_p3 = scmp.eq.s32.totalorder %s144_s7, 0 }
   0x4   : > { %s245_s10 = smov [#allocation2]  }
   0x5   : > { %p265_p2 = pnand %p145_p0, %p60_p1  ;;  %s73_s11 = sshll.u32 %s245_s10, 4  ;;  %s74_s11 = int_to_ptr.vmem [resolvable:$true] %s73_s11 }
   0x6   : > { %s190_s12 = scalar_lea.vmem %s74_s11, 128  ;;  %p198_p10 = scmp.lt.s32.totalorder %s74_s11, %s74_s11 }
   0x7   : > { %p161_p4 = pneg %p265_p2  ;;  %p191_p7 = scmp.ne.s32.totalorder %s74_s11, %s190_s12 }
   0x8   : > { %p199_p11 = scmp.lt.s32.totalorder %s190_s12, %s190_s12 }
   0x9   : > { %p162_p5 = pnand %p269_p3, %p161_p4 }
   0xa   : > { %p200_p12 = por %p199_p11, %p198_p10 }
   0xb   : > { %p181_p6 = pneg %p162_p5 }
   0xd   : > { %p193_p8 = pnand %p191_p7, %p181_p6 }
   0xf   : > { %p194_p9 = pneg %p193_p8 }
  0x11   : > { %p201_p13 = pnand %p200_p12, %p194_p9 }
  0x13   : > { %204 = shalt.err (!%p201_p13)
}
  0x14   : > { %164 = dma.hbm_to_vmem [thread:$0]  (!%p162_p5), %s304_s0, 128, %s74_s11, [#allocation3]  }
  0x15   : > { %86 = sbr.rel (%p265_p2) target bundleno = 42 (0x2a), region = 24 }
  0x1a   : > { %234 = dma.done.wait (%p269_p3), [#allocation3], 128  }
  0x1b   : > { %236 = vsyncadd (%p269_p3), [#allocation3], 4294967168  ;;  %s246_s15 = smov [#allocation5]   ;;  %p286_p0 = scmp.eq.s32.totalorder %s144_s7, 1  ;;  %v96_v0 = vld [vmem:[#allocation2] sm:$0xff] }
  0x1c   : > { %s105_s16 = sshll.u32 %s246_s15, 4  ;;  %97 = vst [vmem:[#allocation5] sm:$0xff] %v96_v0  ;;  %s106_s16 = int_to_ptr.vmem [resolvable:$true] %s105_s16 }
  0x1d   : > { %s205_s18 = scalar_lea.vmem %s106_s16, 128  ;;  %p212_p5 = scmp.lt.s32.totalorder %s106_s16, %s106_s16 }
  0x1e   : > { %p206_p1 = scmp.ne.s32.totalorder %s106_s16, %s205_s18  ;;  %p213_p6 = scmp.lt.s32.totalorder %s205_s18, %s205_s18 }
  0x20   : > { %p207_p2 = pnand %p206_p1, %p286_p0  ;;  %p214_p7 = por %p213_p6, %p212_p5 }
  0x22   : > { %p208_p4 = pneg %p207_p2 }
  0x24   : > { %p215_p8 = pnand %p214_p7, %p208_p4 }
  0x26   : > { %218 = shalt.err (!%p215_p8)
}
  0x27   : > { %158 = dma.vmem_to_hbm [thread:$0]  (%p286_p0), %s106_s16, 128, %s305_s1, [#allocation4]  }
  0x28   : > { %238 = dma.done.wait (%p286_p0), [#allocation4], 128  }
  0x29   : > { %240 = vsyncadd (%p286_p0), [#allocation4], 4294967168 }
  0x2a PF: > { %s13_s6 = sadd.s32 1, %s243_s6  }
  0x2b   : > { %p10_p3 = scmp.ge.s32.totalorder %s13_s6, 4  }
  0x2d   :  { %12 = sbr.rel (!%p10_p3) target bundleno = 2 (0x2), region = 53 }
  0x32   :  { %118 = vsyncpa [#allocation3], 1 }
  0x33   :  { %120 = vsyncpa [#allocation3 + $0x1], 1 }
  0x34   :  { %121 = vsyncpa [#allocation4], 1 }
  0x35   :  { %123 = vsyncpa [#allocation4 + $0x1], 1 }

// kernel: forward.3
= control target key start
LH: loop header
LB: loop body
LE: loop exit
PB: predicated region body
PF: predicated region fallthrough
CT: control target
= control target key end

     0   :  { %9 = vsyncpa [#allocation3], 0  ;;  %s2706_s0 = inlined_call_operand.vmem [shape: bf16[2,1,2,18,128], index: 0, kind: input, shape index: {}]   ;;  %s2707_s1 = inlined_call_operand.hbm [shape: bf16[640,512], index: 1, kind: input, shape index: {}]   ;;  %s2708_s2 = inlined_call_operand.hbm [shape: f32[1,512], index: 2, kind: input, shape index: {}]   ;;  %s2709_s3 = inlined_call_operand.hbm [shape: f32[1,512], index: 3, kind: input, shape index: {}]   ;;  %s2710_s4 = inlined_call_operand.vmem [shape: bf16[2,16,256], index: 4, kind: output, shape index: {}]  }
   0x1   :  { %10 = vsyncpa [#allocation5], 0  ;;  %s2499_s15 = smov 0   ;;  %s2501_s16 = smov 0  }
   0x2   :  { %s2503_s17 = smov 0  }
   0x3 LB: > { %s2468_s18 = smov [#allocation4]   ;;  %s1862_s20 = sadd.s32 4294967295, %s2466_s17   ;;  %s2466_s17 = sphi %s2503_s17, %s16_s17   ;;  %s2462_s16 = sphi %s2501_s16, %s2716_s16   ;;  %s2458_s15 = sphi %s2499_s15, %s2715_s15  }
   0x4   : > { %s178_s19 = sshll.u32 %s2468_s18, 4  ;;  %p1864_p0 = scmp.ge.s32.totalorder %s2466_s17, 1  ;;  %s179_s19 = int_to_ptr.vmem [resolvable:$true] %s178_s19 }
   0x5   : > { %p152_p1 = scmp.lt.s32.totalorder %s2466_s17, 3  ;;  %p2517_p2 = scmp.eq.s32.totalorder %s1862_s20, 0 }
   0x6   : > { %s28_s23 = sadd.s32 1, %s2462_s16  ;;  %s2469_s26 = smov [#allocation2]  }
   0x7   : > { %p2521_p3 = pnand %p1864_p0, %p152_p1  ;;  %p2534_p6 = scmp.ge.s32.totalorder %s28_s23, 2 }
   0x8   : > { %s164_s27 = sshll.u32 %s2469_s26, 4  ;;  %s2369_s28 = scalar_lea.vmem %s179_s19, 64  ;;  %s165_s27 = int_to_ptr.vmem [resolvable:$true] %s164_s27 }
   0x9   : > { %p2066_p4 = pneg %p2521_p3  ;;  %p2370_p8 = scmp.ne.s32.totalorder %s179_s19, %s2369_s28 }
   0xa   : > { %p2377_p11 = scmp.lt.s32.totalorder %s179_s19, %s179_s19  ;;  %p2378_p12 = scmp.lt.s32.totalorder %s2369_s28, %s2369_s28 }
   0xb   : > { %p2530_p5 = pnand %p2517_p2, %p2066_p4 }
   0xc   : > { %p2379_p13 = por %p2378_p12, %p2377_p11 }
   0xd   : > { %p2360_p7 = pneg %p2530_p5 }
   0xf   : > { %p2372_p9 = pnand %p2370_p8, %p2360_p7 }
  0x11   : > { %p2373_p10 = pneg %p2372_p9 }
  0x13   : > { %p2380_p0 = pnand %p2379_p13, %p2373_p10 }
  0x15   : > { %2383 = shalt.err (!%p2380_p0)
}
  0x16   : > { %2072 = dma.hbm_to_vmem [thread:$0]  (!%p2530_p5), %s2708_s2, 64, %s179_s19, [#allocation5]  }
  0x17   : > { %s2718_s23 = smov (%p2534_p6, %s28_s23), 0  ;;  %s2395_s5 = scalar_lea.vmem %s165_s27, 20480 }
  0x18   : > { %p2396_p1 = scmp.ne.s32.totalorder %s165_s27, %s2395_s5  ;;  %p2403_p9 = scmp.lt.s32.totalorder %s165_s27, %s165_s27 }
  0x19   : > { %p2404_p10 = scmp.lt.s32.totalorder %s2395_s5, %s2395_s5 }
  0x1a   : > { %p2398_p4 = pnand %p2396_p1, %p2360_p7 }
  0x1b   : > { %p2405_p11 = por %p2404_p10, %p2403_p9 }
  0x1c   : > { %p2399_p8 = pneg %p2398_p4 }
  0x1e   : > { %p2406_p12 = pnand %p2405_p11, %p2399_p8 }
  0x20   : > { %2409 = shalt.err (!%p2406_p12)
}
  0x21   : > { %s2470_s6 = smov 256   ;;  %s2471_s7 = smov 16  }
  0x22   : > { %2069 = dma.hbm_to_vmem [thread:$0]  (!%p2530_p5), %s2707_s1, 20480, %s165_s27, [#allocation3], %s2470_s6, %s2470_s6, %s2471_s7  }
  0x23   : > { %s2472_s10 = smov [#allocation6]  }
  0x24   : > { %s189_s11 = sshll.u32 %s2472_s10, 4  ;;  %s190_s11 = int_to_ptr.vmem [resolvable:$true] %s189_s11 }
  0x25   : > { %s2421_s12 = scalar_lea.vmem %s190_s11, 64  ;;  %p2429_p1 = scmp.lt.s32.totalorder %s190_s11, %s190_s11 }
  0x26   : > { %p2422_p6 = scmp.ne.s32.totalorder %s190_s11, %s2421_s12  ;;  %p2430_p4 = scmp.lt.s32.totalorder %s2421_s12, %s2421_s12 }
  0x28   : > { %p2424_p13 = pnand %p2422_p6, %p2360_p7  ;;  %p2431_p8 = por %p2430_p4, %p2429_p1 }
  0x2a   : > { %p2425_p0 = pneg %p2424_p13 }
  0x2c   : > { %p2432_p9 = pnand %p2431_p8, %p2425_p0 }
  0x2e   : > { %2435 = shalt.err (!%p2432_p9)
}
  0x2f   : > { %2075 = dma.hbm_to_vmem [thread:$0]  (!%p2530_p5), %s2709_s3, 64, %s190_s11, [#allocation5]  }
  0x30   : > { %214 = sbr.rel (%p2521_p3) target bundleno = 441 (0x1b9), region = 36 }
  0x35   : > { %2449 = dma.done.wait (%p2517_p2), [#allocation3], 20480  }
  0x36   : > { %2451 = vsyncadd (%p2517_p2), [#allocation3], 4294946816 }
  0x37   : > { %2453 = dma.done.wait (%p2517_p2), [#allocation5], 128  }
  0x38   : > { %2455 = vsyncadd (%p2517_p2), [#allocation5], 4294967168  ;;  %v2112_v0 = vld [vmem:[#allocation2 + $0xe4] ss:$16 sps:$4 sm:$0xff]   ;;  %v2116_v2 = vld [vmem:[#allocation2 + $0xe0] ss:$16 sps:$4 sm:$0xff]  }
  0x39   : > { %v2114_v1 = vld [vmem:[#allocation2 + $0x2e4] ss:$16 sps:$4 sm:$0xff]   ;;  %1305 = vmatprep.subr.bf16.mxu0 %v2112_v0  ;;  %v2117_v3 = vld [vmem:[#allocation2 + $0x2e0] ss:$16 sps:$4 sm:$0xff]   ;;  %p256_p2 = scmp.lt.s32.totalorder %s2458_s15, 1  ;;  %vm332_vm1 = vcmask 1046528  }
  0x3a   : > { %1358 = vmatprep.subr.bf16.mxu1 %v2114_v1  ;;  %v2118_v4 = vld [vmem:[#allocation2 + $0xc4] ss:$16 sps:$4 sm:$0xff]   ;;  %1306 = vmatpush1.bf16.msra.mxu0 %v2116_v2  ;;  %v2122_v6 = vld [vmem:[#allocation2 + $0xc0] ss:$16 sps:$4 sm:$0xff]   ;;  %vm299_vm0 = vsmask.f32 7424 }
  0x3b   : > { %1359 = vmatpush1.bf16.msra.mxu1 %v2117_v3  ;;  %v2120_v5 = vld [vmem:[#allocation2 + $0x2c4] ss:$16 sps:$4 sm:$0xff]   ;;  %1307 = vmatprep.subr.bf16.mxu0 %v2118_v4  ;;  %v2123_v7 = vld [vmem:[#allocation2 + $0x2c0] ss:$16 sps:$4 sm:$0xff]   ;;  %s2720_s15 = smov (!%p256_p2, %s2458_s15), 1 }
  0x3c   : > { %1360 = vmatprep.subr.bf16.mxu1 %v2120_v5  ;;  %v2124_v8 = vld [vmem:[#allocation2 + $0xa4] ss:$16 sps:$4 sm:$0xff]   ;;  %v2128_v10 = vld [vmem:[#allocation2 + $0xa0] ss:$16 sps:$4 sm:$0xff]   ;;  %s2053_s18 = smul.u32 24, %s2720_s15  ;;  %s2050_s22 = sshll.u32 %s2720_s15, 4 }
  0x3d   : > { %v2126_v9 = vld [vmem:[#allocation2 + $0x2a4] ss:$16 sps:$4 sm:$0xff]   ;;  %v2129_v11 = vld [vmem:[#allocation2 + $0x2a0] ss:$16 sps:$4 sm:$0xff]   ;;  %s273_s26 = scalar_lea.vmem %s2710_s4, %s2050_s22 }
  0x3e   : > { %1308 = vmatpush1.bf16.msra.mxu0 %v2122_v6  ;;  %v2130_v12 = vld [vmem:[#allocation2 + $0x84] ss:$16 sps:$4 sm:$0xff]   ;;  %v2134_v14 = vld [vmem:[#allocation2 + $0x80] ss:$16 sps:$4 sm:$0xff]   ;;  %s2586_s21 = scalar_lea.vmem %s2706_s0, %s2053_s18 }
  0x3f   : > { %1361 = vmatpush1.bf16.msra.mxu1 %v2123_v7  ;;  %1309 = vmatprep.subr.bf16.mxu0 %v2124_v8  ;;  %v2132_v13 = vld [vmem:[#allocation2 + $0x284] ss:$16 sps:$4 sm:$0xff]   ;;  %v2135_v15 = vld [vmem:[#allocation2 + $0x280] ss:$16 sps:$4 sm:$0xff]   ;;  %v1876_v48 = vld [vmem:[%s2586_s21 + $0xc] sm:$0xf] }
  0x40   : > { %1362 = vmatprep.subr.bf16.mxu1 %v2126_v9  ;;  %v2136_v16 = vld [vmem:[#allocation2 + $0x64] ss:$16 sps:$4 sm:$0xff]   ;;  %v2140_v18 = vld [vmem:[#allocation2 + $0x60] ss:$16 sps:$4 sm:$0xff]  }
  0x41   : > { %v2138_v17 = vld [vmem:[#allocation2 + $0x264] ss:$16 sps:$4 sm:$0xff]   ;;  %v2141_v19 = vld [vmem:[#allocation2 + $0x260] ss:$16 sps:$4 sm:$0xff]  }
  0x42   : > { %1310 = vmatpush1.bf16.msra.mxu0 %v2128_v10  ;;  %v2142_v20 = vld [vmem:[#allocation2 + $0x44] ss:$16 sps:$4 sm:$0xff]   ;;  %v2146_v22 = vld [vmem:[#allocation2 + $0x40] ss:$16 sps:$4 sm:$0xff]  }
  0x43   : > { %1363 = vmatpush1.bf16.msra.mxu1 %v2129_v11  ;;  %1311 = vmatprep.subr.bf16.mxu0 %v2130_v12  ;;  %v2144_v21 = vld [vmem:[#allocation2 + $0x244] ss:$16 sps:$4 sm:$0xff]   ;;  %v2147_v23 = vld [vmem:[#allocation2 + $0x240] ss:$16 sps:$4 sm:$0xff]  }
  0x44   : > { %1364 = vmatprep.subr.bf16.mxu1 %v2132_v13  ;;  %v2148_v24 = vld [vmem:[#allocation2 + $0x24] ss:$16 sps:$4 sm:$0xff]   ;;  %v2152_v26 = vld [vmem:[#allocation2 + $0x20] ss:$16 sps:$4 sm:$0xff]  }
  0x45   : > { %v2150_v25 = vld [vmem:[#allocation2 + $0x224] ss:$16 sps:$4 sm:$0xff]   ;;  %v2153_v27 = vld [vmem:[#allocation2 + $0x220] ss:$16 sps:$4 sm:$0xff]  }
  0x46   : > { %1312 = vmatpush1.bf16.msra.mxu0 %v2134_v14  ;;  %v2154_v28 = vld [vmem:[#allocation2 + $0x4] ss:$16 sps:$4 sm:$0xff]   ;;  %v2158_v30 = vld [vmem:[#allocation2] ss:$16 sps:$4 sm:$0xff]  }
  0x47   : > { %1365 = vmatpush1.bf16.msra.mxu1 %v2135_v15  ;;  %1313 = vmatprep.subr.bf16.mxu0 %v2136_v16  ;;  %v2156_v29 = vld [vmem:[#allocation2 + $0x204] ss:$16 sps:$4 sm:$0xff]   ;;  %v2159_v31 = vld [vmem:[#allocation2 + $0x200] ss:$16 sps:$4 sm:$0xff]  }
  0x48   : > { %1366 = vmatprep.subr.bf16.mxu1 %v2138_v17  ;;  %v2160_v32 = vld [vmem:[#allocation2 + $0x1e4] ss:$16 sps:$4 sm:$0xff]   ;;  %v2164_v34 = vld [vmem:[#allocation2 + $0x1e0] ss:$16 sps:$4 sm:$0xff]  }
  0x49   : > { %v2162_v33 = vld [vmem:[#allocation2 + $0x3e4] ss:$16 sps:$4 sm:$0xff]   ;;  %v2165_v35 = vld [vmem:[#allocation2 + $0x3e0] ss:$16 sps:$4 sm:$0xff]  }
  0x4a   : > { %1314 = vmatpush1.bf16.msra.mxu0 %v2140_v18  ;;  %v2166_v36 = vld [vmem:[#allocation2 + $0x1c4] ss:$16 sps:$4 sm:$0xff]   ;;  %v2170_v38 = vld [vmem:[#allocation2 + $0x1c0] ss:$16 sps:$4 sm:$0xff]  }
  0x4b   : > { %1367 = vmatpush1.bf16.msra.mxu1 %v2141_v19  ;;  %1315 = vmatprep.subr.bf16.mxu0 %v2142_v20  ;;  %v2168_v37 = vld [vmem:[#allocation2 + $0x3c4] ss:$16 sps:$4 sm:$0xff]   ;;  %v2171_v39 = vld [vmem:[#allocation2 + $0x3c0] ss:$16 sps:$4 sm:$0xff]  }
  0x4c   : > { %1368 = vmatprep.subr.bf16.mxu1 %v2144_v21  ;;  %v2172_v40 = vld [vmem:[#allocation2 + $0x1a4] ss:$16 sps:$4 sm:$0xff]   ;;  %v2176_v42 = vld [vmem:[#allocation2 + $0x1a0] ss:$16 sps:$4 sm:$0xff]  }
  0x4d   : > { %v2174_v41 = vld [vmem:[#allocation2 + $0x3a4] ss:$16 sps:$4 sm:$0xff]   ;;  %v2177_v43 = vld [vmem:[#allocation2 + $0x3a0] ss:$16 sps:$4 sm:$0xff]  }
  0x4e   : > { %1316 = vmatpush1.bf16.msra.mxu0 %v2146_v22  ;;  %v2178_v44 = vld [vmem:[#allocation2 + $0x184] ss:$16 sps:$4 sm:$0xff]   ;;  %v2182_v46 = vld [vmem:[#allocation2 + $0x180] ss:$16 sps:$4 sm:$0xff]  }
  0x4f   : > { %1369 = vmatpush1.bf16.msra.mxu1 %v2147_v23  ;;  %1317 = vmatprep.subr.bf16.mxu0 %v2148_v24  ;;  %v2180_v45 = vld [vmem:[#allocation2 + $0x384] ss:$16 sps:$4 sm:$0xff]   ;;  %v2183_v47 = vld [vmem:[#allocation2 + $0x380] ss:$16 sps:$4 sm:$0xff]   ;;  %v2217_v24 = vld [vmem:[#allocation2 + $0xec] ss:$16 sps:$4 sm:$0xff]  }
  0x50   : > { %1370 = vmatprep.subr.bf16.mxu1 %v2150_v25  ;;  %v2184_v49 = vld [vmem:[#allocation2 + $0x164] ss:$16 sps:$4 sm:$0xff]   ;;  %v2590_v51 = vld [vmem:[%s2586_s21 + $0x10] sm:$0xf]  ;;  %v276_v54 = vld [vmem:[%s2586_s21] sm:$0xf] }
  0x51   : > { %v2186_v50 = vld [vmem:[#allocation2 + $0x364] ss:$16 sps:$4 sm:$0xff]   ;;  %v2593_v52 = vcombine.low %v1876_v48, %v2590_v51  ;;  %v2188_v59 = vld [vmem:[#allocation2 + $0x160] ss:$16 sps:$4 sm:$0xff]  }
  0x52   : > { %1318 = vmatpush1.bf16.msra.mxu0 %v2152_v26  ;;  %v2596_v53 = vld [vmem:[%s2586_s21 + $0x14] ss:$0 sps:$4 sm:$0x11]   ;;  %v277_v55 = vld [vmem:[%s2586_s21 + $0x4] sm:$0xf] }
  0x53   : > { %1371 = vmatpush1.bf16.msra.mxu1 %v2153_v27  ;;  %1319 = vmatprep.subr.bf16.mxu0 %v2154_v28  ;;  %v317_v56 = vshrl.u32 %v2593_v52, 16  ;;  %v319_v57 = vshll.u32 %v2593_v52, 16  ;;  %v324_v58 = vshll.u32 %v2596_v53, 16  ;;  %v2189_v60 = vld [vmem:[#allocation2 + $0x360] ss:$16 sps:$4 sm:$0xff]   ;;  %v2604_v0 = vcombine.low %v276_v54, %v277_v55 }
  0x54   : > { %1372 = vmatprep.subr.bf16.mxu1 %v2156_v29  ;;  %1337 = vmatprep.mubr.bf16.mxu0 %v2593_v52  ;;  %v2190_v61 = vld [vmem:[#allocation2 + $0x144] ss:$16 sps:$4 sm:$0xff]   ;;  %v2194_v2 = vld [vmem:[#allocation2 + $0x140] ss:$16 sps:$4 sm:$0xff]   ;;  %v2215_v26 = vld [vmem:[#allocation2 + $0xe8] ss:$16 sps:$4 sm:$0xff]  }
  0x55   : > { %v321_v62 = vrot.slane %v319_v57, 1  ;;  %v326_v63 = vrot.slane %v324_v58, 1  ;;  %v2192_v1 = vld [vmem:[#allocation2 + $0x344] ss:$16 sps:$4 sm:$0xff]   ;;  %v2195_v4 = vld [vmem:[#allocation2 + $0x340] ss:$16 sps:$4 sm:$0xff]  }
  0x56   : > { %1320 = vmatpush1.bf16.msra.mxu0 %v2158_v30  ;;  %v2196_v5 = vld [vmem:[#allocation2 + $0x124] ss:$16 sps:$4 sm:$0xff]   ;;  %v2211_v7 = vld [vmem:[%s2586_s21 + $0x8] ss:$0 sps:$4 sm:$0x11]   ;;  %v303_v8 = vshll.u32 %v2604_v0, 16 }
  0x57   : > { %1373 = vmatpush1.bf16.msra.mxu1 %v2159_v31  ;;  %1321 = vmatprep.subr.bf16.mxu0 %v2160_v32  ;;  %v322_v3 = vor.u32 %v321_v62, %v317_v56  ;;  %v2198_v9 = vld [vmem:[#allocation2 + $0x324] ss:$16 sps:$4 sm:$0xff]   ;;  %v2200_v10 = vld [vmem:[#allocation2 + $0x120] ss:$16 sps:$4 sm:$0xff]   ;;  %v301_v13 = vshrl.u32 %v2604_v0, 16  ;;  %v308_v15 = vshll.u32 %v2211_v7, 16 }
  0x58   : > { %1374 = vmatprep.subr.bf16.mxu1 %v2162_v33  ;;  %v2201_v11 = vld [vmem:[#allocation2 + $0x320] ss:$16 sps:$4 sm:$0xff]   ;;  %v2202_v12 = vld [vmem:[#allocation2 + $0x104] ss:$16 sps:$4 sm:$0xff]   ;;  %v305_v14 = vrot.slane %v303_v8, 1  ;;  %v334_v28 = vrot.slane %v2211_v7, 1 }
  0x59   : > { %v2607_v6 = vsel %vm299_vm0, %v322_v3, %v326_v63  ;;  %v2204_v16 = vld [vmem:[#allocation2 + $0x304] ss:$16 sps:$4 sm:$0xff]   ;;  %v2206_v17 = vld [vmem:[#allocation2 + $0x100] ss:$16 sps:$4 sm:$0xff]   ;;  %v310_v21 = vrot.slane %v308_v15, 1 }
  0x5a   : > { %1322 = vmatpush2.bf16.msra.mxu0 %v2164_v34  ;;  %1390 = vmatprep.mubr.bf16.mxu1 %v2607_v6  ;;  %v2207_v18 = vld [vmem:[#allocation2 + $0x300] ss:$16 sps:$4 sm:$0xff]   ;;  %v306_v20 = vor.u32 %v305_v14, %v301_v13  ;;  %v2214_v22 = vld [vmem:[#allocation2 + $0x4e4] ss:$16 sps:$4 sm:$0xff]   ;;  %v2223_v31 = vld [vmem:[#allocation2 + $0xcc] ss:$16 sps:$4 sm:$0xff]  }
  0x5b   : > { %1375 = vmatpush2.bf16.msra.mxu1 %v2165_v35  ;;  %1323 = vmatprep.subr.bf16.mxu0 %v2166_v36  ;;  %v283_v19 = vld [vmem:[%s2586_s21] sm:$0xe]  ;;  %v2220_v30 = vld [vmem:[#allocation2 + $0x4c4] ss:$16 sps:$4 sm:$0xff]   ;;  %v2221_v33 = vld [vmem:[#allocation2 + $0xc8] ss:$16 sps:$4 sm:$0xff]  }
  0x5c   : > { %1376 = vmatprep.subr.bf16.mxu1 %v2168_v37  ;;  %v1883_v23 = vcombine.low %v283_v19, %v277_v55  ;;  %v2212_v25 = vld [vmem:[#allocation2 + $0x4e0] ss:$16 sps:$4 sm:$0xff]   ;;  %v2615_v29 = vsel %vm299_vm0, %v306_v20, %v310_v21  ;;  %v2226_v35 = vld [vmem:[#allocation2 + $0x4a4] ss:$16 sps:$4 sm:$0xff]   ;;  %v2229_v36 = vld [vmem:[#allocation2 + $0xac] ss:$16 sps:$4 sm:$0xff]  }
  0x5d   : > { %v2218_v32 = vld [vmem:[#allocation2 + $0x4c0] ss:$16 sps:$4 sm:$0xff]   ;;  %v2245_v48 = vld [vmem:[#allocation2 + $0x444] ss:$16 sps:$4 sm:$0xff]   ;;  %v2246_v54 = vld [vmem:[#allocation2 + $0x48] ss:$16 sps:$4 sm:$0xff]  }
  0x5e   : > { %1324 = vmatpush2.bf16.msra.mxu0 %v2170_v38  ;;  %v333_v27 = vrot.slane %v1883_v23, 1  ;;  %v2224_v37 = vld [vmem:[#allocation2 + $0x4a0] ss:$16 sps:$4 sm:$0xff]   ;;  %v2227_v38 = vld [vmem:[#allocation2 + $0xa8] ss:$16 sps:$4 sm:$0xff]  }
  0x5f   : > { %1377 = vmatpush2.bf16.msra.mxu1 %v2171_v39  ;;  %1325 = vmatprep.subr.bf16.mxu0 %v2172_v40  ;;  %v2232_v39 = vld [vmem:[#allocation2 + $0x484] ss:$16 sps:$4 sm:$0xff]   ;;  %v2235_v40 = vld [vmem:[#allocation2 + $0x8c] ss:$16 sps:$4 sm:$0xff]   ;;  %v2249_v57 = vld [vmem:[#allocation2 + $0x420] ss:$16 sps:$4 sm:$0xff]  }
  0x60   : > { %1378 = vmatprep.subr.bf16.mxu1 %v2174_v41  ;;  %v2620_v34 = vsel %vm332_vm1, %v333_v27, %v334_v28  ;;  %v2230_v41 = vld [vmem:[#allocation2 + $0x480] ss:$16 sps:$4 sm:$0xff]   ;;  %v2251_v55 = vld [vmem:[#allocation2 + $0x424] ss:$16 sps:$4 sm:$0xff]   ;;  %v2254_v56 = vld [vmem:[#allocation2 + $0x2c] ss:$16 sps:$4 sm:$0xff]  }
  0x61   : > { %v2252_v58 = vld [vmem:[#allocation2 + $0x28] ss:$16 sps:$4 sm:$0xff]   ;;  %v2263_v63 = vld [vmem:[#allocation2 + $0x1ec] ss:$16 sps:$4 sm:$0xff]  }
  0x62   : > { %1326 = vmatpush2.bf16.msra.mxu0 %v2176_v42  ;;  %v2233_v42 = vld [vmem:[#allocation2 + $0x88] ss:$16 sps:$4 sm:$0xff]   ;;  %v2269_v7 = vld [vmem:[#allocation2 + $0x1cc] ss:$16 sps:$4 sm:$0xff]  }
  0x63   : > { %1379 = vmatpush2.bf16.msra.mxu1 %v2177_v43  ;;  %1327 = vmatprep.subr.bf16.mxu0 %v2178_v44  ;;  %v2238_v43 = vld [vmem:[#allocation2 + $0x464] ss:$16 sps:$4 sm:$0xff]   ;;  %v2241_v44 = vld [vmem:[#allocation2 + $0x6c] ss:$16 sps:$4 sm:$0xff]   ;;  %v2258_v62 = vld [vmem:[#allocation2 + $0x8] ss:$16 sps:$4 sm:$0xff]  }
  0x64   : > { %1380 = vmatprep.subr.bf16.mxu1 %v2180_v45  ;;  %v2473_v45 = vmov 0   ;;  %v2261_v3 = vld [vmem:[#allocation2 + $0x1e8] ss:$16 sps:$4 sm:$0xff]   ;;  %v2272_v8 = vld [vmem:[#allocation2 + $0x2cc] ss:$16 sps:$4 sm:$0xff]  }
  0x65   : > { %v2276_v13 = vld [vmem:[#allocation2 + $0x1ac] ss:$16 sps:$4 sm:$0xff]   ;;  %v2283_v19 = vld [vmem:[#allocation2 + $0x288] ss:$16 sps:$4 sm:$0xff]  }
  0x66   : > { %1328 = vmatpush2.bf16.msra.mxu0 %v2182_v46  ;;  %v2236_v46 = vld [vmem:[#allocation2 + $0x460] ss:$16 sps:$4 sm:$0xff]   ;;  %v2279_v14 = vld [vmem:[#allocation2 + $0x2ac] ss:$16 sps:$4 sm:$0xff]   ;;  %v2289_v23 = vld [vmem:[#allocation2 + $0x268] ss:$16 sps:$4 sm:$0xff]  }
  0x67   : > { %1381 = vmatpush2.bf16.msra.mxu1 %v2183_v47  ;;  %1329 = vmatprep.subr.bf16.mxu0 %v2184_v49  ;;  %v2239_v47 = vld [vmem:[#allocation2 + $0x68] ss:$16 sps:$4 sm:$0xff]   ;;  %v2248_v49 = vld [vmem:[#allocation2 + $0x4c] ss:$16 sps:$4 sm:$0xff]  }
  0x68   : > { %1382 = vmatprep.subr.bf16.mxu1 %v2186_v50  ;;  %v2243_v50 = vld [vmem:[#allocation2 + $0x440] ss:$16 sps:$4 sm:$0xff]   ;;  %v2288_v20 = vld [vmem:[#allocation2 + $0x16c] ss:$16 sps:$4 sm:$0xff]   ;;  %v2295_v27 = vld [vmem:[#allocation2 + $0x248] ss:$16 sps:$4 sm:$0xff]  }
  0x69   : > { %v2291_v21 = vld [vmem:[#allocation2 + $0x26c] ss:$16 sps:$4 sm:$0xff]  }
  0x6a   : > { %1330 = vmatpush2.bf16.msra.mxu0 %v2188_v59  ;;  %v2257_v59 = vld [vmem:[#allocation2 + $0x404] ss:$16 sps:$4 sm:$0xff]   ;;  %v2300_v28 = vld [vmem:[#allocation2 + $0x12c] ss:$16 sps:$4 sm:$0xff]  }
  0x6b   : > { %1383 = vmatpush2.bf16.msra.mxu1 %v2189_v60  ;;  %1331 = vmatprep.subr.bf16.mxu0 %v2190_v61  ;;  %v2260_v60 = vld [vmem:[#allocation2 + $0xc] ss:$16 sps:$4 sm:$0xff]   ;;  %v2255_v61 = vld [vmem:[#allocation2 + $0x400] ss:$16 sps:$4 sm:$0xff]  }
  0x6c   : > { %1384 = vmatprep.subr.bf16.mxu1 %v2192_v1  ;;  %v2266_v1 = vld [vmem:[#allocation2 + $0x2ec] ss:$16 sps:$4 sm:$0xff]  }
  0x6e   : > { %1332 = vmatpush2.bf16.msra.mxu0 %v2194_v2  ;;  %v1884_v2 = vld [vmem:[%s2586_s21 + $0xc] sm:$0xe] }
  0x6f   : > { %1385 = vmatpush2.bf16.msra.mxu1 %v2195_v4  ;;  %1333 = vmatprep.subr.bf16.mxu0 %v2196_v5  ;;  %v2264_v4 = vld [vmem:[#allocation2 + $0x2e8] ss:$16 sps:$4 sm:$0xff]   ;;  %v1885_v5 = vcombine.low %v1884_v2, %v2590_v51  ;;  %v2351_v2 = vld [vmem:[#allocation2 + $0x42c] ss:$16 sps:$4 sm:$0xff]  }
  0x70   : > { %1386 = vmatprep.subr.bf16.mxu1 %v2198_v9  ;;  %v2267_v9 = vld [vmem:[#allocation2 + $0x1c8] ss:$16 sps:$4 sm:$0xff]  }
  0x71   : > { %v2274_v51 = vld [vmem:[#allocation2 + $0x1a8] ss:$16 sps:$4 sm:$0xff]  }
  0x72   : > { %1334 = vmatpush2.bf16.msra.mxu0 %v2200_v10  ;;  %v2270_v10 = vld [vmem:[#allocation2 + $0x2c8] ss:$16 sps:$4 sm:$0xff]  }
  0x73   : > { %1387 = vmatpush2.bf16.msra.mxu1 %v2201_v11  ;;  %1335 = vmatprep.subr.bf16.mxu0 %v2202_v12  ;;  %v341_v11 = vrot.slane %v1885_v5, 1  ;;  %v342_v12 = vrot.slane %v2596_v53, 1  ;;  %v2280_v53 = vld [vmem:[#allocation2 + $0x188] ss:$16 sps:$4 sm:$0xff]   ;;  %v2354_v5 = vld [vmem:[#allocation2 + $0x30c] ss:$16 sps:$4 sm:$0xff]  }
  0x74   : > { %1388 = vmatprep.subr.bf16.mxu1 %v2204_v16  ;;  %v2277_v16 = vld [vmem:[#allocation2 + $0x2a8] ss:$16 sps:$4 sm:$0xff]  }
  0x75   : > { %v2634_v15 = vsel %vm332_vm1, %v341_v11, %v342_v12 }
  0x76   : > { %1336 = vmatpush2.bf16.msra.mxu0 %v2206_v17  ;;  %v2282_v17 = vld [vmem:[#allocation2 + $0x18c] ss:$16 sps:$4 sm:$0xff]  }
  0x77   : > { %1389 = vmatpush2.bf16.msra.mxu1 %v2207_v18  ;;  %1411 = vmatprep.subr.bf16.mxu0 %v2214_v22  ;;  %v2285_v18 = vld [vmem:[#allocation2 + $0x28c] ss:$16 sps:$4 sm:$0xff]   ;;  %v2286_v22 = vld [vmem:[#allocation2 + $0x168] ss:$16 sps:$4 sm:$0xff]  }
  0x78   : > { %1464 = vmatprep.subr.bf16.mxu1 %v2217_v24  ;;  %v2294_v24 = vld [vmem:[#allocation2 + $0x14c] ss:$16 sps:$4 sm:$0xff]  }
  0x79   : > { %1338 = vmatmul.mubr.bf16.vlgmr.msra.gmra.mxu0 %v2604_v0 }
  0x7a   : > { %1391 = vmatmul.mubr.bf16.vlgmr.msra.gmra.mxu1 %v2615_v29  ;;  %1412 = vmatpush1.bf16.msra.mxu0 %v2212_v25  ;;  %v2297_v25 = vld [vmem:[#allocation2 + $0x24c] ss:$16 sps:$4 sm:$0xff]  }
  0x7b   : > { %1465 = vmatpush1.bf16.msra.mxu1 %v2215_v26  ;;  %1413 = vmatprep.subr.bf16.mxu0 %v2220_v30  ;;  %v2292_v26 = vld [vmem:[#allocation2 + $0x148] ss:$16 sps:$4 sm:$0xff]   ;;  %v2303_v30 = vld [vmem:[#allocation2 + $0x22c] ss:$16 sps:$4 sm:$0xff]  }
  0x7c   : > { %1466 = vmatprep.subr.bf16.mxu1 %v2223_v31  ;;  %1347 = vmatprep.mubr.bf16.mxu0 %v2615_v29  ;;  %v2298_v31 = vld [vmem:[#allocation2 + $0x128] ss:$16 sps:$4 sm:$0xff]  }
  0x7d   : > { %1400 = vmatprep.mubr.bf16.mxu1 %v2620_v34 }
  0x7e   : > { %1414 = vmatpush1.bf16.msra.mxu0 %v2218_v32  ;;  %v2301_v32 = vld [vmem:[#allocation2 + $0x228] ss:$16 sps:$4 sm:$0xff]  }
  0x7f   : > { %1467 = vmatpush1.bf16.msra.mxu1 %v2221_v33  ;;  %1415 = vmatprep.subr.bf16.mxu0 %v2226_v35  ;;  %v2306_v33 = vld [vmem:[#allocation2 + $0x10c] ss:$16 sps:$4 sm:$0xff]  }
  0x80   : > { %1468 = vmatprep.subr.bf16.mxu1 %v2229_v36  ;;  %v2309_v35 = vld [vmem:[#allocation2 + $0x20c] ss:$16 sps:$4 sm:$0xff]   ;;  %v2304_v36 = vld [vmem:[#allocation2 + $0x108] ss:$16 sps:$4 sm:$0xff]  }
  0x81   : > { %1348 = vmatmul.mubr.bf16.gmra.mxu0 %v2593_v52 }
  0x82   : > { %1401 = vmatmul.mubr.bf16.gmra.mxu1 %v2607_v6  ;;  %1416 = vmatpush1.bf16.msra.mxu0 %v2224_v37  ;;  %v2307_v37 = vld [vmem:[#allocation2 + $0x208] ss:$16 sps:$4 sm:$0xff]  }
  0x83   : > { %1469 = vmatpush1.bf16.msra.mxu1 %v2227_v38  ;;  %1417 = vmatprep.subr.bf16.mxu0 %v2232_v39  ;;  %v2312_v38 = vld [vmem:[#allocation2 + $0x3ec] ss:$16 sps:$4 sm:$0xff]  }
  0x84   : > { %1470 = vmatprep.subr.bf16.mxu1 %v2235_v40  ;;  %1443 = vmatprep.mubr.bf16.mxu0 %v2473_v45  ;;  %v2315_v39 = vld [vmem:[#allocation2 + $0x4ec] ss:$16 sps:$4 sm:$0xff]   ;;  %v2310_v40 = vld [vmem:[#allocation2 + $0x3e8] ss:$16 sps:$4 sm:$0xff]  }
  0x85   : > { %1496 = vmatprep.mubr.bf16.mxu1 %v2593_v52 }
  0x86   : > { %1418 = vmatpush1.bf16.msra.mxu0 %v2230_v41  ;;  %v2313_v41 = vld [vmem:[#allocation2 + $0x4e8] ss:$16 sps:$4 sm:$0xff]  }
  0x87   : > { %1471 = vmatpush1.bf16.msra.mxu1 %v2233_v42  ;;  %1419 = vmatprep.subr.bf16.mxu0 %v2238_v43  ;;  %v2318_v42 = vld [vmem:[#allocation2 + $0x3cc] ss:$16 sps:$4 sm:$0xff]  }
  0x88   : > { %1472 = vmatprep.subr.bf16.mxu1 %v2241_v44  ;;  %v2321_v43 = vld [vmem:[#allocation2 + $0x4cc] ss:$16 sps:$4 sm:$0xff]   ;;  %v2316_v44 = vld [vmem:[#allocation2 + $0x3c8] ss:$16 sps:$4 sm:$0xff]  }
  0x8a   : > { %1420 = vmatpush1.bf16.msra.mxu0 %v2236_v46  ;;  %v2319_v46 = vld [vmem:[#allocation2 + $0x4c8] ss:$16 sps:$4 sm:$0xff]  }
  0x8b   : > { %1473 = vmatpush1.bf16.msra.mxu1 %v2239_v47  ;;  %1421 = vmatprep.subr.bf16.mxu0 %v2245_v48  ;;  %v2324_v47 = vld [vmem:[#allocation2 + $0x3ac] ss:$16 sps:$4 sm:$0xff]  }
  0x8c   : > { %1474 = vmatprep.subr.bf16.mxu1 %v2248_v49  ;;  %v2327_v48 = vld [vmem:[#allocation2 + $0x4ac] ss:$16 sps:$4 sm:$0xff]   ;;  %v2322_v49 = vld [vmem:[#allocation2 + $0x3a8] ss:$16 sps:$4 sm:$0xff]  }
  0x8e   : > { %1422 = vmatpush1.bf16.msra.mxu0 %v2243_v50  ;;  %v2325_v50 = vld [vmem:[#allocation2 + $0x4a8] ss:$16 sps:$4 sm:$0xff]  }
  0x8f   : > { %1475 = vmatpush1.bf16.msra.mxu1 %v2246_v54  ;;  %1423 = vmatprep.subr.bf16.mxu0 %v2251_v55  ;;  %v2330_v54 = vld [vmem:[#allocation2 + $0x38c] ss:$16 sps:$4 sm:$0xff]  }
  0x90   : > { %1476 = vmatprep.subr.bf16.mxu1 %v2254_v56  ;;  %v2333_v55 = vld [vmem:[#allocation2 + $0x48c] ss:$16 sps:$4 sm:$0xff]   ;;  %v2331_v56 = vld [vmem:[#allocation2 + $0x488] ss:$16 sps:$4 sm:$0xff]  }
  0x92   : > { %1424 = vmatpush1.bf16.msra.mxu0 %v2249_v57  ;;  %v2336_v57 = vld [vmem:[#allocation2 + $0x36c] ss:$16 sps:$4 sm:$0xff]  }
  0x93   : > { %1477 = vmatpush1.bf16.msra.mxu1 %v2252_v58  ;;  %1425 = vmatprep.subr.bf16.mxu0 %v2257_v59  ;;  %v2339_v58 = vld [vmem:[#allocation2 + $0x46c] ss:$16 sps:$4 sm:$0xff]   ;;  %v2334_v59 = vld [vmem:[#allocation2 + $0x368] ss:$16 sps:$4 sm:$0xff]  }
  0x94   : > { %1478 = vmatprep.subr.bf16.mxu1 %v2260_v60  ;;  %v2337_v60 = vld [vmem:[#allocation2 + $0x468] ss:$16 sps:$4 sm:$0xff]  }
  0x96   : > { %1426 = vmatpush1.bf16.msra.mxu0 %v2255_v61  ;;  %v2342_v61 = vld [vmem:[#allocation2 + $0x34c] ss:$16 sps:$4 sm:$0xff]  }
  0x97   : > { %1479 = vmatpush1.bf16.msra.mxu1 %v2258_v62  ;;  %1517 = vmatprep.subr.bf16.mxu0 %v2266_v1  ;;  %v2345_v62 = vld [vmem:[#allocation2 + $0x44c] ss:$16 sps:$4 sm:$0xff]  }
  0x98   : > { %1480 = vmatprep.subr.bf16.mxu1 %v2263_v63  ;;  %v2343_v63 = vld [vmem:[#allocation2 + $0x448] ss:$16 sps:$4 sm:$0xff]   ;;  %v2348_v1 = vld [vmem:[#allocation2 + $0x32c] ss:$16 sps:$4 sm:$0xff]  }
  0x99   : > { %1444 = vmatmul.mubr.bf16.vlgmr.msra.gmra.mxu0 %v2620_v34 }
  0x9a   : > { %1518 = vmatpush1.bf16.msra.mxu0 %v2264_v4  ;;  %1453 = vmatprep.mubr.bf16.mxu0 %v2473_v45  ;;  %v2349_v4 = vld [vmem:[#allocation2 + $0x428] ss:$16 sps:$4 sm:$0xff]  }
  0x9b   : > { %1481 = vmatpush2.bf16.msra.mxu1 %v2261_v3  ;;  %1519 = vmatprep.subr.bf16.mxu0 %v2272_v8  ;;  %v2346_v3 = vld [vmem:[#allocation2 + $0x328] ss:$16 sps:$4 sm:$0xff]  }
  0x9c   : > { %1482 = vmatprep.subr.bf16.mxu1 %v2269_v7  ;;  %v2357_v7 = vld [vmem:[#allocation2 + $0x40c] ss:$16 sps:$4 sm:$0xff]   ;;  %v2352_v8 = vld [vmem:[#allocation2 + $0x308] ss:$16 sps:$4 sm:$0xff]  }
  0x9e   : > { %1520 = vmatpush1.bf16.msra.mxu0 %v2270_v10 }
  0x9f   : > { %1483 = vmatpush2.bf16.msra.mxu1 %v2267_v9  ;;  %1521 = vmatprep.subr.bf16.mxu0 %v2279_v14  ;;  %v2355_v9 = vld [vmem:[#allocation2 + $0x408] ss:$16 sps:$4 sm:$0xff]  }
  0xa0   : > { %1484 = vmatprep.subr.bf16.mxu1 %v2276_v13 }
  0xa1   : > { %1454 = vmatmul.mubr.bf16.gmra.mxu0 %v2634_v15 }
  0xa2   : > { %1522 = vmatpush1.bf16.msra.mxu0 %v2277_v16  ;;  %1549 = vmatprep.mubr.bf16.mxu0 %v2607_v6 }
  0xa3   : > { %1485 = vmatpush2.bf16.msra.mxu1 %v2274_v51  ;;  %1523 = vmatprep.subr.bf16.mxu0 %v2285_v18 }
  0xa4   : > { %1486 = vmatprep.subr.bf16.mxu1 %v2282_v17 }
  0xa6   : > { %1524 = vmatpush1.bf16.msra.mxu0 %v2283_v19 }
  0xa7   : > { %1487 = vmatpush2.bf16.msra.mxu1 %v2280_v53  ;;  %1525 = vmatprep.subr.bf16.mxu0 %v2291_v21 }
  0xa8   : > { %1488 = vmatprep.subr.bf16.mxu1 %v2288_v20 }
  0xaa   : > { %1526 = vmatpush1.bf16.msra.mxu0 %v2289_v23 }
  0xab   : > { %1489 = vmatpush2.bf16.msra.mxu1 %v2286_v22  ;;  %1527 = vmatprep.subr.bf16.mxu0 %v2297_v25 }
  0xac   : > { %1490 = vmatprep.subr.bf16.mxu1 %v2294_v24 }
  0xae   : > { %1528 = vmatpush1.bf16.msra.mxu0 %v2295_v27 }
  0xaf   : > { %1491 = vmatpush2.bf16.msra.mxu1 %v2292_v26  ;;  %1529 = vmatprep.subr.bf16.mxu0 %v2303_v30 }
  0xb0   : > { %1492 = vmatprep.subr.bf16.mxu1 %v2300_v28  ;;  %v1625_v28 = vlaneseq }
  0xb2   : > { %1530 = vmatpush1.bf16.msra.mxu0 %v2301_v32  ;;  %v1626_v32 = vshrl.u32 %v1625_v28, 7 }
  0xb3   : > { %1493 = vmatpush2.bf16.msra.mxu1 %v2298_v31  ;;  %1531 = vmatprep.subr.bf16.mxu0 %v2309_v35 }
  0xb4   : > { %1494 = vmatprep.subr.bf16.mxu1 %v2306_v33 }
  0xb6   : > { %1532 = vmatpush1.bf16.msra.mxu0 %v2307_v37  ;;  %v1623_v37 = vld [vmem:[#allocation4] sm:$0xf] }
  0xb7   : > { %1495 = vmatpush2.bf16.msra.mxu1 %v2304_v36  ;;  %1533 = vmatprep.subr.bf16.mxu0 %v2312_v38  ;;  %v1627_v36 = vsub.s32 0, %v1626_v32 }
  0xb8   : > { %1570 = vmatprep.subr.bf16.mxu1 %v2315_v39 }
  0xba   : > { %1497 = vmatmul.mubr.bf16.vlgmr.msra.gmra.mxu1 %v2604_v0  ;;  %1534 = vmatpush2.bf16.msra.mxu0 %v2310_v40  ;;  %v2328_v0 = vld [vmem:[#allocation2 + $0x388] ss:$16 sps:$4 sm:$0xff]  }
  0xbb   : > { %1571 = vmatpush1.bf16.msra.mxu1 %v2313_v41  ;;  %1535 = vmatprep.subr.bf16.mxu0 %v2318_v42  ;;  %v1631_v41 = vsub.s32 1, %v1626_v32 }
  0xbc   : > { %1572 = vmatprep.subr.bf16.mxu1 %v2321_v43  ;;  %1506 = vmatprep.mubr.bf16.mxu1 %v2615_v29 }
  0xbe   : > { %1536 = vmatpush2.bf16.msra.mxu0 %v2316_v44  ;;  %v2654_v44 = vrot.slane %v1623_v37, %v1627_v36 }
  0xbf   : > { %1573 = vmatpush1.bf16.msra.mxu1 %v2319_v46  ;;  %1537 = vmatprep.subr.bf16.mxu0 %v2324_v47  ;;  %v1661_v46 = vld [vmem:[#allocation6] sm:$0xf] }
  0xc0   : > { %1574 = vmatprep.subr.bf16.mxu1 %v2327_v48 }
  0xc2   : > { %1507 = vmatmul.mubr.bf16.gmra.mxu1 %v2593_v52  ;;  %1538 = vmatpush2.bf16.msra.mxu0 %v2322_v49  ;;  %v2340_v52 = vld [vmem:[#allocation2 + $0x348] ss:$16 sps:$4 sm:$0xff]  }
  0xc3   : > { %1575 = vmatpush1.bf16.msra.mxu1 %v2325_v50  ;;  %1539 = vmatprep.subr.bf16.mxu0 %v2330_v54  ;;  %v1632_v50 = vrot.slane %v1623_v37, %v1631_v41 }
  0xc4   : > { %1576 = vmatprep.subr.bf16.mxu1 %v2333_v55  ;;  %1602 = vmatprep.mubr.bf16.mxu1 %v2473_v45 }
  0xc6   : > { %1540 = vmatpush2.bf16.msra.mxu0 %v2328_v0 }
  0xc7   : > { %1577 = vmatpush1.bf16.msra.mxu1 %v2331_v56  ;;  %1541 = vmatprep.subr.bf16.mxu0 %v2336_v57  ;;  %v1635_v56 = vsub.s32 2, %v1626_v32 }
  0xc8   : > { %1578 = vmatprep.subr.bf16.mxu1 %v2339_v58 }
  0xca   : > { %1542 = vmatpush2.bf16.msra.mxu0 %v2334_v59  ;;  %v2659_v59 = vrot.slane %v1661_v46, %v1627_v36 }
  0xcb   : > { %1579 = vmatpush1.bf16.msra.mxu1 %v2337_v60  ;;  %1543 = vmatprep.subr.bf16.mxu0 %v2342_v61  ;;  %v1639_v60 = vsub.s32 3, %v1626_v32 }
  0xcc   : > { %1580 = vmatprep.subr.bf16.mxu1 %v2345_v62  ;;  %v2661_v62 = vrot.slane %v1661_v46, %v1631_v41 }
  0xce   : > { %1544 = vmatpush2.bf16.msra.mxu0 %v2340_v52 }
  0xcf   : > { %1581 = vmatpush1.bf16.msra.mxu1 %v2343_v63  ;;  %1545 = vmatprep.subr.bf16.mxu0 %v2348_v1 }
  0xd0   : > { %1582 = vmatprep.subr.bf16.mxu1 %v2351_v2 }
  0xd2   : > { %1546 = vmatpush2.bf16.msra.mxu0 %v2346_v3 }
  0xd3   : > { %1583 = vmatpush1.bf16.msra.mxu1 %v2349_v4  ;;  %1547 = vmatprep.subr.bf16.mxu0 %v2354_v5 }
  0xd4   : > { %1584 = vmatprep.subr.bf16.mxu1 %v2357_v7 }
  0xd6   : > { %1548 = vmatpush2.bf16.msra.mxu0 %v2352_v8 }
  0xd7   : > { %1585 = vmatpush1.bf16.msra.mxu1 %v2355_v9  ;;  %v2663_v9 = vrot.slane %v1623_v37, %v1635_v56 }
  0xd9   : > { %1550 = vmatmul.mubr.bf16.vlgmr.msra.gmra.mxu0 %v2615_v29 }
  0xda   : > { %1603 = vmatmul.mubr.bf16.vlgmr.msra.gmra.mxu1 %v2620_v34  ;;  %1559 = vmatprep.mubr.bf16.mxu0 %v2620_v34 }
  0xdb   : > { %1612 = vmatprep.mubr.bf16.mxu1 %v2473_v45 }
  0xe1   : > { %1560 = vmatmul.mubr.bf16.gmra.mxu0 %v2607_v6 }
  0xe2   : > { %1613 = vmatmul.mubr.bf16.gmra.mxu1 %v2634_v15 }
 0x139   : > { %v1339_v10 = vpop.f32.mrf.mxu0 }
 0x13a   : > { %v1392_v11 = vpop.f32.mrf.mxu1 }
 0x13b   : > { %v1341_v12 = vpop.f32.mrf.mxu0  ;;  %v1393_v40 = vadd.f32 %v1392_v11, %v1339_v10 }
 0x13c   : > { %v1394_v13 = vpop.f32.mrf.mxu1 }
 0x13d   : > { %v1343_v14 = vpop.f32.mrf.mxu0  ;;  %v1395_v42 = vadd.f32 %v1394_v13, %v1341_v12 }
 0x13e   : > { %v1396_v51 = vpop.f32.mrf.mxu1 }
 0x13f   : > { %v1345_v16 = vpop.f32.mrf.mxu0  ;;  %v1397_v57 = vadd.f32 %v1396_v51, %v1343_v14  ;;  %v2668_v14 = vrot.slane %v1623_v37, %v1639_v60 }
 0x140   : > { %v1398_v17 = vpop.f32.mrf.mxu1 }
 0x141   : > { %v1349_v18 = vpop.f32.mrf.mxu0  ;;  %v1399_v3 = vadd.f32 %v1398_v17, %v1345_v16 }
 0x142   : > { %v1402_v29 = vpop.f32.mrf.mxu1 }
 0x143   : > { %v1351_v53 = vpop.f32.mrf.mxu0  ;;  %v1403_v54 = vadd.f32 %v1402_v29, %v1349_v18 }
 0x144   : > { %v1404_v19 = vpop.f32.mrf.mxu1 }
 0x145   : > { %v1353_v20 = vpop.f32.mrf.mxu0  ;;  %v1405_v61 = vadd.f32 %v1404_v19, %v1351_v53 }
 0x146   : > { %v1406_v34 = vpop.f32.mrf.mxu1 }
 0x147   : > { %v1355_v21 = vpop.f32.mrf.mxu0  ;;  %v1407_v18 = vadd.f32 %v1406_v34, %v1353_v20 }
 0x148   : > { %v1408_v45 = vpop.f32.mrf.mxu1 }
 0x149   : > { %v1409_v29 = vadd.f32 %v1408_v45, %v1355_v21  ;;  %v1678_v21 = vrot.slane %v1661_v46, %v1639_v60 }
 0x159   : > { %v1445_v22 = vpop.f32.mrf.mxu0 }
 0x15a   : > { %v1446_v43 = vadd.f32 %v1445_v22, %v1393_v40 }
 0x15b   : > { %v1447_v23 = vpop.f32.mrf.mxu0 }
 0x15c   : > { %v1448_v49 = vadd.f32 %v1447_v23, %v1395_v42  ;;  %v1645_v58 = vmul.f32 %v2654_v44, %v1446_v43 }
 0x15d   : > { %v1449_v24 = vpop.f32.mrf.mxu0 }
 0x15e   : > { %v1646_v4 = vmul.f32 %v1632_v50, %v1448_v49  ;;  %v1450_v5 = vadd.f32 %v1449_v24, %v1397_v57  ;;  %v2666_v12 = vadd.f32 %v2659_v59, %v1645_v58 }
 0x15f   : > { %v1451_v26 = vpop.f32.mrf.mxu0 }
 0x160   : > { %v1452_v13 = vadd.f32 %v1451_v26, %v1399_v3  ;;  %v1684_v22 = vadd.f32 %v2661_v62, %v1646_v4  ;;  %v1674_v26 = vrot.slane %v1661_v46, %v1635_v56  ;;  %v1699_v20 = vmax.f32 %v2666_v12, 0.0 }
 0x161   : > { %v1455_v30 = vpop.f32.mrf.mxu0 }
 0x162   : > { %v1456_v52 = vadd.f32 %v1455_v30, %v1403_v54  ;;  %v1650_v34 = vmul.f32 %v1632_v50, %v1452_v13  ;;  %v1700_v42 = vmax.f32 %v1684_v22, 0.0 }
 0x163   : > { %v1457_v33 = vpop.f32.mrf.mxu0 }
 0x164   : > { %v1458_v8 = vadd.f32 %v1457_v33, %v1405_v61  ;;  %v1653_v53 = vmul.f32 %v2654_v44, %v1456_v52  ;;  %v1688_v57 = vadd.f32 %v2661_v62, %v1650_v34 }
 0x165   : > { %v1459_v38 = vpop.f32.mrf.mxu0 }
 0x166   : > { %v1654_v24 = vmul.f32 %v1632_v50, %v1458_v8  ;;  %v1460_v28 = vadd.f32 %v1459_v38, %v1407_v18 }
 0x167   : > { %v1461_v47 = vpop.f32.mrf.mxu0 }
 0x168   : > { %v1462_v30 = vadd.f32 %v1461_v47, %v1409_v29  ;;  %v1692_v49 = vadd.f32 %v2661_v62, %v1654_v24  ;;  %v1657_v46 = vmul.f32 %v2654_v44, %v1460_v28 }
 0x16a   : > { %v1658_v54 = vmul.f32 %v1632_v50, %v1462_v30  ;;  %v1708_v4 = vmax.f32 %v1692_v49, 0.0  ;;  %v1704_v30 = vmax.f32 %v1688_v57, 0.0 }
 0x17a   : > { %v1498_v6 = vpop.f32.mrf.mxu1 }
 0x17c   : > { %v1500_v15 = vpop.f32.mrf.mxu1 }
 0x17e   : > { %v1502_v25 = vpop.f32.mrf.mxu1 }
 0x180   : > { %v1504_v27 = vpop.f32.mrf.mxu1 }
 0x182   : > { %v2648_v31 = vpop.f32.mrf.mxu1 }
 0x184   : > { %v2650_v35 = vpop.f32.mrf.mxu1 }
 0x186   : > { %v2652_v39 = vpop.f32.mrf.mxu1 }
 0x188   : > { %v2656_v48 = vpop.f32.mrf.mxu1 }
 0x199   : > { %v1551_v55 = vpop.f32.mrf.mxu0 }
 0x19a   : > { %v1604_v0 = vpop.f32.mrf.mxu1  ;;  %v1552_v63 = vadd.f32 %v1551_v55, %v1498_v6  ;;  %v1649_v6 = vmul.f32 %v2654_v44, %v1450_v5  ;;  %v1695_v5 = vadd.f32 %v2659_v59, %v1657_v46 }
 0x19b   : > { %v1553_v1 = vpop.f32.mrf.mxu0 }
 0x19c   : > { %v1606_v2 = vpop.f32.mrf.mxu1  ;;  %v1554_v7 = vadd.f32 %v1553_v1, %v1500_v15  ;;  %v1605_v16 = vadd.f32 %v1604_v0, %v1552_v63  ;;  %v1687_v38 = vadd.f32 %v2659_v59, %v1649_v6  ;;  %v1711_v22 = vmax.f32 %v1695_v5, 0.0 }
 0x19d   : > { %v1555_v10 = vpop.f32.mrf.mxu0 }
 0x19e   : > { %v1608_v11 = vpop.f32.mrf.mxu1  ;;  %v1556_v51 = vadd.f32 %v1555_v10, %v1502_v25  ;;  %v1607_v23 = vadd.f32 %v1606_v2, %v1554_v7  ;;  %v1691_v25 = vadd.f32 %v2659_v59, %v1653_v53  ;;  %v1647_v36 = vmul.f32 %v2663_v9, %v1605_v16 }
 0x19f   : > { %v1557_v17 = vpop.f32.mrf.mxu0  ;;  %v1696_v7 = vadd.f32 %v2661_v62, %v1658_v54  ;;  %v1716_v59 = vmax.f32 %v1700_v42, %v1708_v4 }
 0x1a0   : > { %v1610_v19 = vpop.f32.mrf.mxu1  ;;  %v1558_v15 = vadd.f32 %v1557_v17, %v1504_v27  ;;  %v1609_v45 = vadd.f32 %v1608_v11, %v1556_v51  ;;  %v1648_v43 = vmul.f32 %v2668_v14, %v1607_v23  ;;  %v1707_v61 = vmax.f32 %v1691_v25, 0.0 }
 0x1a1   : > { %v1561_v32 = vpop.f32.mrf.mxu0  ;;  %v1685_v52 = vadd.f32 %v1674_v26, %v1647_v36  ;;  %v1712_v62 = vmax.f32 %v1696_v7, 0.0 }
 0x1a2   : > { %v1614_v33 = vpop.f32.mrf.mxu1  ;;  %v1611_v37 = vadd.f32 %v1610_v19, %v1558_v15  ;;  %v1562_v40 = vadd.f32 %v1561_v32, %v2648_v31  ;;  %v1651_v31 = vmul.f32 %v2663_v9, %v1609_v45  ;;  %v1686_v2 = vadd.f32 %v1678_v21, %v1648_v43 }
 0x1a3   : > { %v1563_v41 = vpop.f32.mrf.mxu0  ;;  %v1715_v51 = vmax.f32 %v1699_v20, %v1707_v61  ;;  %v1701_v18 = vmax.f32 %v1685_v52, 0.0 }
 0x1a4   : > { %v1616_v27 = vpop.f32.mrf.mxu1  ;;  %v1564_v47 = vadd.f32 %v1563_v41, %v2650_v35  ;;  %v1615_v55 = vadd.f32 %v1614_v33, %v1562_v40  ;;  %v1652_v63 = vmul.f32 %v2668_v14, %v1611_v37  ;;  %v1689_v10 = vadd.f32 %v1674_v26, %v1651_v31 }
 0x1a5   : > { %v1565_v0 = vpop.f32.mrf.mxu0  ;;  %v1702_v16 = vmax.f32 %v1686_v2, 0.0 }
 0x1a6   : > { %v1618_v56 = vpop.f32.mrf.mxu1  ;;  %v1617_v58 = vadd.f32 %v1616_v27, %v1564_v47  ;;  %v1566_v60 = vadd.f32 %v1565_v0, %v2652_v39  ;;  %v1655_v35 = vmul.f32 %v2663_v9, %v1615_v55  ;;  %v1690_v29 = vadd.f32 %v1678_v21, %v1652_v63 }
 0x1a7   : > { %v1567_v1 = vpop.f32.mrf.mxu0  ;;  %v1705_v23 = vmax.f32 %v1689_v10, 0.0 }
 0x1a8   : > { %v1656_v44 = vmul.f32 %v2668_v14, %v1617_v58  ;;  %v1619_v50 = vadd.f32 %v1618_v56, %v1566_v60  ;;  %v1568_v3 = vadd.f32 %v1567_v1, %v2656_v48  ;;  %v1693_v8 = vadd.f32 %v1674_v26, %v1655_v35  ;;  %v1620_v39 = vpop.f32.mrf.mxu1 }
 0x1a9   : > { %v1706_v32 = vmax.f32 %v1690_v29, 0.0 }
 0x1aa   : > { %v1694_v11 = vadd.f32 %v1678_v21, %v1656_v44  ;;  %v1659_v12 = vmul.f32 %v2663_v9, %v1619_v50  ;;  %v1621_v13 = vadd.f32 %v1620_v39, %v1568_v3  ;;  %v1709_v53 = vmax.f32 %v1693_v8, 0.0 }
 0x1ab   : > { %v1703_v9 = vmax.f32 %v1687_v38, 0.0 }
 0x1ac   : > { %v1710_v17 = vmax.f32 %v1694_v11, 0.0  ;;  %v1697_v48 = vadd.f32 %v1674_v26, %v1659_v12  ;;  %v1660_v19 = vmul.f32 %v2668_v14, %v1621_v13  ;;  %v1717_v6 = vmax.f32 %v1701_v18, %v1709_v53 }
 0x1ad   : > { %v1719_v14 = vmax.f32 %v1703_v9, %v1711_v22  ;;  %v1720_v26 = vmax.f32 %v1704_v30, %v1712_v62 }
 0x1ae   : > { %v1718_v15 = vmax.f32 %v1702_v16, %v1710_v17  ;;  %v1713_v24 = vmax.f32 %v1697_v48, 0.0  ;;  %v1698_v28 = vadd.f32 %v1678_v21, %v1660_v19  ;;  %v1723_v33 = vmax.f32 %v1715_v51, %v1717_v6 }
 0x1b0   : > { %v1724_v20 = vmax.f32 %v1716_v59, %v1718_v15  ;;  %v1721_v34 = vmax.f32 %v1705_v23, %v1713_v24  ;;  %v1714_v45 = vmax.f32 %v1698_v28, 0.0 }
 0x1b2   : > { %v2051_v25 = vpack.c.bf16 %v1724_v20, %v1723_v33  ;;  %v1722_v36 = vmax.f32 %v1706_v32, %v1714_v45  ;;  %v1725_v37 = vmax.f32 %v1719_v14, %v1721_v34 }
 0x1b4   : > { %1739 = vst [vmem:[%s273_s26] sm:$0xff] %v2051_v25  ;;  %v1726_v40 = vmax.f32 %v1720_v26, %v1722_v36 }
 0x1b6   : > { %v2052_v41 = vpack.c.bf16 %v1726_v40, %v1725_v37 }
 0x1b8   : > { %1740 = vst [vmem:[%s273_s26 + $0x8] sm:$0xff] %v2052_v41 }
 0x1b9 PF: > { %s16_s17 = sadd.s32 1, %s2466_s17   ;;  %s2715_s15 = smov %s2462_s16 }
 0x1ba   : > { %p13_p3 = scmp.ge.s32.totalorder %s16_s17, 4   ;;  %s2716_s16 = smov %s2718_s23 }
 0x1bc   :  { %15 = sbr.rel (!%p13_p3) target bundleno = 3 (0x3), region = 80 }
 0x1c1   :  { %1771 = vsyncpa [#allocation3], 1 }
 0x1c2   :  { %1773 = vsyncpa [#allocation3 + $0x1], 1 }
 0x1c3   :  { %1774 = vsyncpa [#allocation5], 1 }

// kernel: forward.4
= control target key start
LH: loop header
LB: loop body
LE: loop exit
PB: predicated region body
PF: predicated region fallthrough
CT: control target
= control target key end

     0   :  { %s5499_s15 = smov 0   ;;  %s5501_s16 = smov 0   ;;  %s7173_s0 = inlined_call_operand.vmem [shape: bf16[2,1,2,10,384], index: 0, kind: input, shape index: {}]   ;;  %s7174_s1 = inlined_call_operand.vmem [shape: bf16[1920,512], index: 1, kind: input, shape index: {}]   ;;  %s7175_s2 = inlined_call_operand.vmem [shape: f32[1,512], index: 2, kind: input, shape index: {}]   ;;  %s7176_s3 = inlined_call_operand.vmem [shape: f32[1,512], index: 3, kind: input, shape index: {}]   ;;  %s7177_s4 = inlined_call_operand.vmem [shape: bf16[2,8,256], index: 4, kind: output, shape index: {}]  }
   0x1   :  { %s5503_s17 = smov 0  }
   0x2 LB: > { %s26_s18 = sadd.s32 1, %s5467_s16  ;;  %p4166_p0 = scmp.ge.s32.totalorder %s5471_s17, 1  ;;  %s5471_s17 = sphi %s5503_s17, %s14_s17   ;;  %s5467_s16 = sphi %s5501_s16, %s7183_s16   ;;  %s5463_s15 = sphi %s5499_s15, %s7182_s15  }
   0x3   : > { %p28_p1 = scmp.ge.s32.totalorder %s26_s18, 2  ;;  %p182_p2 = scmp.lt.s32.totalorder %s5471_s17, 3 }
   0x5   : > { %s7185_s18 = smov (%p28_p1, %s26_s18), 0  ;;  %p183_p3 = pnand %p4166_p0, %p182_p2 }
   0x7   : > { %186 = sbr.rel (%p183_p3) target bundleno = 710 (0x2c6), region = 36 }
   0xc   : > { %v4708_v0 = vld [vmem:[%s7174_s1 + $0xe4] ss:$16 sps:$4 sm:$0xff]   ;;  %v4712_v2 = vld [vmem:[%s7174_s1 + $0xe0] ss:$16 sps:$4 sm:$0xff]   ;;  %p216_p4 = scmp.lt.s32.totalorder %s5463_s15, 1  ;;  %vm360_vm0 = vcmask 1043456  }
   0xd   : > { %v4710_v1 = vld [vmem:[%s7174_s1 + $0x2e4] ss:$16 sps:$4 sm:$0xff]   ;;  %3301 = vmatprep.subr.bf16.mxu0 %v4708_v0  ;;  %v4713_v3 = vld [vmem:[%s7174_s1 + $0x2e0] ss:$16 sps:$4 sm:$0xff]  }
   0xe   : > { %3344 = vmatprep.subr.bf16.mxu1 %v4710_v1  ;;  %v4714_v4 = vld [vmem:[%s7174_s1 + $0xc4] ss:$16 sps:$4 sm:$0xff]   ;;  %3302 = vmatpush1.bf16.msra.mxu0 %v4712_v2  ;;  %v4718_v6 = vld [vmem:[%s7174_s1 + $0xc0] ss:$16 sps:$4 sm:$0xff]   ;;  %s7187_s15 = smov (!%p216_p4, %s5463_s15), 1 }
   0xf   : > { %3345 = vmatpush1.bf16.msra.mxu1 %v4713_v3  ;;  %v4716_v5 = vld [vmem:[%s7174_s1 + $0x2c4] ss:$16 sps:$4 sm:$0xff]   ;;  %3303 = vmatprep.subr.bf16.mxu0 %v4714_v4  ;;  %v4719_v7 = vld [vmem:[%s7174_s1 + $0x2c0] ss:$16 sps:$4 sm:$0xff]   ;;  %s4682_s5 = smul.u32 48, %s7187_s15  ;;  %s4680_s9 = sshll.u32 %s7187_s15, 3 }
  0x10   : > { %3346 = vmatprep.subr.bf16.mxu1 %v4716_v5  ;;  %v4720_v8 = vld [vmem:[%s7174_s1 + $0xa4] ss:$16 sps:$4 sm:$0xff]   ;;  %v4724_v10 = vld [vmem:[%s7174_s1 + $0xa0] ss:$16 sps:$4 sm:$0xff]   ;;  %s233_s12 = scalar_lea.vmem %s7177_s4, %s4680_s9 }
  0x11   : > { %v4722_v9 = vld [vmem:[%s7174_s1 + $0x2a4] ss:$16 sps:$4 sm:$0xff]   ;;  %v4725_v11 = vld [vmem:[%s7174_s1 + $0x2a0] ss:$16 sps:$4 sm:$0xff]   ;;  %s5659_s22 = scalar_lea.vmem %s7173_s0, %s4682_s5 }
  0x12   : > { %3304 = vmatpush1.bf16.msra.mxu0 %v4718_v6  ;;  %v4726_v12 = vld [vmem:[%s7174_s1 + $0x84] ss:$16 sps:$4 sm:$0xff]   ;;  %v4730_v14 = vld [vmem:[%s7174_s1 + $0x80] ss:$16 sps:$4 sm:$0xff]   ;;  %v4170_v48 = vld [vmem:[%s5659_s22 + $0x18] sm:$0xff] }
  0x13   : > { %3347 = vmatpush1.bf16.msra.mxu1 %v4719_v7  ;;  %3305 = vmatprep.subr.bf16.mxu0 %v4720_v8  ;;  %v4728_v13 = vld [vmem:[%s7174_s1 + $0x284] ss:$16 sps:$4 sm:$0xff]   ;;  %v4731_v15 = vld [vmem:[%s7174_s1 + $0x280] ss:$16 sps:$4 sm:$0xff]   ;;  %v5685_v53 = vcombine.high %v4170_v48, %v4170_v48  ;;  %v5701_v59 = vld [vmem:[%s5659_s22 + $0x8] sm:$0xf]  ;;  %v4177_v8 = vcombine.low %v4170_v48, %v4170_v48 }
  0x14   : > { %3348 = vmatprep.subr.bf16.mxu1 %v4722_v9  ;;  %v4732_v16 = vld [vmem:[%s7174_s1 + $0x64] ss:$16 sps:$4 sm:$0xff]   ;;  %v4736_v18 = vld [vmem:[%s7174_s1 + $0x60] ss:$16 sps:$4 sm:$0xff]  }
  0x15   : > { %v4734_v17 = vld [vmem:[%s7174_s1 + $0x264] ss:$16 sps:$4 sm:$0xff]   ;;  %v4737_v19 = vld [vmem:[%s7174_s1 + $0x260] ss:$16 sps:$4 sm:$0xff]  }
  0x16   : > { %3306 = vmatpush1.bf16.msra.mxu0 %v4724_v10  ;;  %v4738_v20 = vld [vmem:[%s7174_s1 + $0x44] ss:$16 sps:$4 sm:$0xff]   ;;  %v4742_v22 = vld [vmem:[%s7174_s1 + $0x40] ss:$16 sps:$4 sm:$0xff]   ;;  %v4173_v10 = vld [vmem:[%s5659_s22 + $0x2c] sm:$0x1] }
  0x17   : > { %3349 = vmatpush1.bf16.msra.mxu1 %v4725_v11  ;;  %3307 = vmatprep.subr.bf16.mxu0 %v4726_v12  ;;  %v4740_v21 = vld [vmem:[%s7174_s1 + $0x244] ss:$16 sps:$4 sm:$0xff]   ;;  %v4743_v23 = vld [vmem:[%s7174_s1 + $0x240] ss:$16 sps:$4 sm:$0xff]  }
  0x18   : > { %3350 = vmatprep.subr.bf16.mxu1 %v4728_v13  ;;  %v4744_v24 = vld [vmem:[%s7174_s1 + $0x24] ss:$16 sps:$4 sm:$0xff]   ;;  %v4748_v26 = vld [vmem:[%s7174_s1 + $0x20] ss:$16 sps:$4 sm:$0xff]  }
  0x19   : > { %v4746_v25 = vld [vmem:[%s7174_s1 + $0x224] ss:$16 sps:$4 sm:$0xff]   ;;  %v4749_v27 = vld [vmem:[%s7174_s1 + $0x220] ss:$16 sps:$4 sm:$0xff]  }
  0x1a   : > { %3308 = vmatpush1.bf16.msra.mxu0 %v4730_v14  ;;  %v4750_v28 = vld [vmem:[%s7174_s1 + $0x4] ss:$16 sps:$4 sm:$0xff]   ;;  %v4754_v30 = vld [vmem:[%s7174_s1] ss:$16 sps:$4 sm:$0xff]  }
  0x1b   : > { %3351 = vmatpush1.bf16.msra.mxu1 %v4731_v15  ;;  %3309 = vmatprep.subr.bf16.mxu0 %v4732_v16  ;;  %v4752_v29 = vld [vmem:[%s7174_s1 + $0x204] ss:$16 sps:$4 sm:$0xff]   ;;  %v4755_v31 = vld [vmem:[%s7174_s1 + $0x200] ss:$16 sps:$4 sm:$0xff]  }
  0x1c   : > { %3352 = vmatprep.subr.bf16.mxu1 %v4734_v17  ;;  %v4756_v32 = vld [vmem:[%s7174_s1 + $0x1e4] ss:$16 sps:$4 sm:$0xff]   ;;  %v4760_v34 = vld [vmem:[%s7174_s1 + $0x1e0] ss:$16 sps:$4 sm:$0xff]  }
  0x1d   : > { %v4758_v33 = vld [vmem:[%s7174_s1 + $0x3e4] ss:$16 sps:$4 sm:$0xff]   ;;  %v4761_v35 = vld [vmem:[%s7174_s1 + $0x3e0] ss:$16 sps:$4 sm:$0xff]  }
  0x1e   : > { %3310 = vmatpush1.bf16.msra.mxu0 %v4736_v18  ;;  %v4762_v36 = vld [vmem:[%s7174_s1 + $0x1c4] ss:$16 sps:$4 sm:$0xff]   ;;  %v4766_v38 = vld [vmem:[%s7174_s1 + $0x1c0] ss:$16 sps:$4 sm:$0xff]  }
  0x1f   : > { %3353 = vmatpush1.bf16.msra.mxu1 %v4737_v19  ;;  %3311 = vmatprep.subr.bf16.mxu0 %v4738_v20  ;;  %v4764_v37 = vld [vmem:[%s7174_s1 + $0x3c4] ss:$16 sps:$4 sm:$0xff]   ;;  %v4767_v39 = vld [vmem:[%s7174_s1 + $0x3c0] ss:$16 sps:$4 sm:$0xff]  }
  0x20   : > { %3354 = vmatprep.subr.bf16.mxu1 %v4740_v21  ;;  %v4768_v40 = vld [vmem:[%s7174_s1 + $0x1a4] ss:$16 sps:$4 sm:$0xff]   ;;  %v4772_v42 = vld [vmem:[%s7174_s1 + $0x1a0] ss:$16 sps:$4 sm:$0xff]  }
  0x21   : > { %v4770_v41 = vld [vmem:[%s7174_s1 + $0x3a4] ss:$16 sps:$4 sm:$0xff]   ;;  %v4773_v43 = vld [vmem:[%s7174_s1 + $0x3a0] ss:$16 sps:$4 sm:$0xff]  }
  0x22   : > { %3312 = vmatpush1.bf16.msra.mxu0 %v4742_v22  ;;  %v4774_v44 = vld [vmem:[%s7174_s1 + $0x184] ss:$16 sps:$4 sm:$0xff]   ;;  %v4778_v47 = vld [vmem:[%s7174_s1 + $0x180] ss:$16 sps:$4 sm:$0xff]  }
  0x23   : > { %3355 = vmatpush1.bf16.msra.mxu1 %v4743_v23  ;;  %3313 = vmatprep.subr.bf16.mxu0 %v4744_v24  ;;  %v4776_v45 = vld [vmem:[%s7174_s1 + $0x384] ss:$16 sps:$4 sm:$0xff]   ;;  %v5677_v50 = vld [vmem:[%s5659_s22 + $0xc] sm:$0x11]  ;;  %v4171_v16 = vld [vmem:[%s5659_s22 + $0x20] sm:$0xf] }
  0x24   : > { %3356 = vmatprep.subr.bf16.mxu1 %v4746_v25  ;;  %v5668_v46 = vld [vmem:[%s5659_s22] sm:$0xff]  ;;  %v5688_v54 = vld [vmem:[%s5659_s22 + $0x14] sm:$0x1]  ;;  %v4185_v19 = vcombine.low %v4171_v16, %v4173_v10 }
  0x25   : > { %v4175_v49 = vcombine.high %v5668_v46, %v5668_v46  ;;  %v4779_v51 = vld [vmem:[%s7174_s1 + $0x380] ss:$16 sps:$4 sm:$0xff]   ;;  %v4780_v52 = vld [vmem:[%s7174_s1 + $0x164] ss:$16 sps:$4 sm:$0xff]   ;;  %v4180_v56 = vcombine.low %v5668_v46, %v5677_v50  ;;  %v4182_v63 = vcombine.low %v5701_v59, %v5688_v54  ;;  %v4181_v12 = vcombine.high %v5668_v46, %v5677_v50 }
  0x26   : > { %3314 = vmatpush1.bf16.msra.mxu0 %v4748_v26  ;;  %v4782_v55 = vld [vmem:[%s7174_s1 + $0x364] ss:$16 sps:$4 sm:$0xff]   ;;  %v4784_v60 = vld [vmem:[%s7174_s1 + $0x160] ss:$16 sps:$4 sm:$0xff]  }
  0x27   : > { %3357 = vmatpush1.bf16.msra.mxu1 %v4749_v27  ;;  %3315 = vmatprep.subr.bf16.mxu0 %v4750_v28  ;;  %v4172_v57 = vld [vmem:[%s5659_s22 + $0x24] sm:$0x11]  ;;  %v5698_v58 = vsel %vm360_vm0, %v4175_v49, %v5685_v53  ;;  %v272_v61 = vshrl.u32 %v4180_v56, 16  ;;  %v274_v62 = vshll.u32 %v4180_v56, 16  ;;  %v4785_v0 = vld [vmem:[%s7174_s1 + $0x360] ss:$16 sps:$4 sm:$0xff]  }
  0x28   : > { %3358 = vmatprep.subr.bf16.mxu1 %v4752_v29  ;;  %3333 = vmatprep.mubr.bf16.mxu0 %v5698_v58  ;;  %v4786_v1 = vld [vmem:[%s7174_s1 + $0x144] ss:$16 sps:$4 sm:$0xff]   ;;  %v4184_v4 = vcombine.high %v4170_v48, %v4172_v57  ;;  %v4790_v5 = vld [vmem:[%s7174_s1 + $0x140] ss:$16 sps:$4 sm:$0xff]   ;;  %v288_v11 = vshll.u32 %v4182_v63, 16  ;;  %v4183_v14 = vcombine.low %v4170_v48, %v4172_v57  ;;  %v286_v20 = vshrl.u32 %v4182_v63, 16 }
  0x29   : > { %v4788_v2 = vld [vmem:[%s7174_s1 + $0x344] ss:$16 sps:$4 sm:$0xff]   ;;  %v276_v3 = vrot.slane %v274_v62, 1  ;;  %v4791_v6 = vld [vmem:[%s7174_s1 + $0x340] ss:$16 sps:$4 sm:$0xff]   ;;  %v281_v24 = vshll.u32 %v4181_v12, 16 }
  0x2a   : > { %3316 = vmatpush1.bf16.msra.mxu0 %v4754_v30  ;;  %v4792_v7 = vld [vmem:[%s7174_s1 + $0x124] ss:$16 sps:$4 sm:$0xff]   ;;  %v310_v17 = vshll.u32 %v4184_v4, 16  ;;  %v4796_v18 = vld [vmem:[%s7174_s1 + $0x120] ss:$16 sps:$4 sm:$0xff]   ;;  %v290_v23 = vrot.slane %v288_v11, 1 }
  0x2b   : > { %3359 = vmatpush1.bf16.msra.mxu1 %v4755_v31  ;;  %3317 = vmatprep.subr.bf16.mxu0 %v4756_v32  ;;  %v5727_v9 = vor.u32 %v276_v3, %v272_v61  ;;  %v4794_v13 = vld [vmem:[%s7174_s1 + $0x324] ss:$16 sps:$4 sm:$0xff]   ;;  %v4797_v21 = vld [vmem:[%s7174_s1 + $0x320] ss:$16 sps:$4 sm:$0xff]   ;;  %v308_v25 = vshrl.u32 %v4184_v4, 16  ;;  %v303_v29 = vshll.u32 %v4183_v14, 16 }
  0x2c   : > { %3360 = vmatprep.subr.bf16.mxu1 %v4758_v33  ;;  %v4798_v26 = vld [vmem:[%s7174_s1 + $0x104] ss:$16 sps:$4 sm:$0xff]   ;;  %v312_v27 = vrot.slane %v310_v17, 1  ;;  %v4802_v30 = vld [vmem:[%s7174_s1 + $0x100] ss:$16 sps:$4 sm:$0xff]   ;;  %v301_v31 = vshrl.u32 %v4183_v14, 16 }
  0x2d   : > { %v348_v15 = vrot.slane %v5727_v9, 4  ;;  %v4800_v28 = vld [vmem:[%s7174_s1 + $0x304] ss:$16 sps:$4 sm:$0xff]   ;;  %v317_v32 = vshll.u32 %v4185_v19, 16  ;;  %v4803_v33 = vld [vmem:[%s7174_s1 + $0x300] ss:$16 sps:$4 sm:$0xff]  }
  0x2e   : > { %3318 = vmatpush2.bf16.msra.mxu0 %v4760_v34  ;;  %v291_v34 = vor.u32 %v290_v23, %v286_v20  ;;  %v4817_v48 = vld [vmem:[%s7174_s1 + $0x6e0] ss:$16 sps:$4 sm:$0xff]   ;;  %v4825_v61 = vld [vmem:[%s7174_s1 + $0x6c4] ss:$16 sps:$4 sm:$0xff]  }
  0x2f   : > { %3361 = vmatpush2.bf16.msra.mxu1 %v4761_v35  ;;  %3319 = vmatprep.subr.bf16.mxu0 %v4762_v36  ;;  %v5744_v22 = vsel %vm360_vm0, %v4177_v8, %v348_v15  ;;  %v279_v35 = vshrl.u32 %v4181_v12, 16  ;;  %v283_v36 = vrot.slane %v281_v24, 1  ;;  %v4837_v10 = vld [vmem:[%s7174_s1 + $0x684] ss:$16 sps:$4 sm:$0xff]   ;;  %v4832_v11 = vld [vmem:[%s7174_s1 + $0x480] ss:$16 sps:$4 sm:$0xff]  }
  0x30   : > { %3362 = vmatprep.subr.bf16.mxu1 %v4764_v37  ;;  %3376 = vmatprep.mubr.bf16.mxu1 %v5744_v22  ;;  %v5759_v37 = vor.u32 %v312_v27, %v308_v25  ;;  %v350_v49 = vrot.slane %v291_v34, 4  ;;  %v4835_v12 = vld [vmem:[%s7174_s1 + $0x680] ss:$16 sps:$4 sm:$0xff]   ;;  %v4843_v14 = vld [vmem:[%s7174_s1 + $0x664] ss:$16 sps:$4 sm:$0xff]  }
  0x31   : > { %v4838_v15 = vld [vmem:[%s7174_s1 + $0x460] ss:$16 sps:$4 sm:$0xff]   ;;  %v4846_v17 = vld [vmem:[%s7174_s1 + $0x444] ss:$16 sps:$4 sm:$0xff]  }
  0x32   : > { %3320 = vmatpush2.bf16.msra.mxu0 %v4766_v38  ;;  %v4174_v38 = vcombine.low %v5668_v46, %v5668_v46  ;;  %v4814_v46 = vld [vmem:[%s7174_s1 + $0x4e0] ss:$16 sps:$4 sm:$0xff]   ;;  %v4855_v23 = vld [vmem:[%s7174_s1 + $0x624] ss:$16 sps:$4 sm:$0xff]  }
  0x33   : > { %3363 = vmatpush2.bf16.msra.mxu1 %v4767_v39  ;;  %3321 = vmatprep.subr.bf16.mxu0 %v4768_v40  ;;  %v4176_v39 = vcombine.low %v5701_v59, %v5701_v59  ;;  %v4179_v40 = vcombine.low %v4171_v16, %v4171_v16  ;;  %v4822_v59 = vld [vmem:[%s7174_s1 + $0x4c4] ss:$16 sps:$4 sm:$0xff]   ;;  %v4841_v16 = vld [vmem:[%s7174_s1 + $0x660] ss:$16 sps:$4 sm:$0xff]  }
  0x34   : > { %3364 = vmatprep.subr.bf16.mxu1 %v4770_v41  ;;  %v4816_v41 = vld [vmem:[%s7174_s1 + $0x4e4] ss:$16 sps:$4 sm:$0xff]   ;;  %v5785_v56 = vsel %vm360_vm0, %v4174_v38, %v4177_v8  ;;  %v4829_v8 = vld [vmem:[%s7174_s1 + $0x6a0] ss:$16 sps:$4 sm:$0xff]  }
  0x35   : > { %v5788_v57 = vsel %vm360_vm0, %v4176_v39, %v4179_v40  ;;  %v4847_v20 = vld [vmem:[%s7174_s1 + $0x640] ss:$16 sps:$4 sm:$0xff]   ;;  %v4861_v27 = vld [vmem:[%s7174_s1 + $0x604] ss:$16 sps:$4 sm:$0xff]  }
  0x36   : > { %3322 = vmatpush2.bf16.msra.mxu0 %v4772_v42  ;;  %v305_v42 = vrot.slane %v303_v29, 1  ;;  %v4850_v24 = vld [vmem:[%s7174_s1 + $0x420] ss:$16 sps:$4 sm:$0xff]   ;;  %v4876_v39 = vld [vmem:[%s7174_s1 + $0x5a4] ss:$16 sps:$4 sm:$0xff]  }
  0x37   : > { %3365 = vmatpush2.bf16.msra.mxu1 %v4773_v43  ;;  %3323 = vmatprep.subr.bf16.mxu0 %v4774_v44  ;;  %v4819_v43 = vld [vmem:[%s7174_s1 + $0x6e4] ss:$16 sps:$4 sm:$0xff]   ;;  %v315_v44 = vshrl.u32 %v4185_v19, 16  ;;  %v4844_v19 = vld [vmem:[%s7174_s1 + $0x440] ss:$16 sps:$4 sm:$0xff]  }
  0x38   : > { %3366 = vmatprep.subr.bf16.mxu1 %v4776_v45  ;;  %v319_v45 = vrot.slane %v317_v32, 1  ;;  %v4853_v25 = vld [vmem:[%s7174_s1 + $0x620] ss:$16 sps:$4 sm:$0xff]  }
  0x39   : > { %v4859_v29 = vld [vmem:[%s7174_s1 + $0x600] ss:$16 sps:$4 sm:$0xff]  }
  0x3a   : > { %3324 = vmatpush2.bf16.msra.mxu0 %v4778_v47  ;;  %v5774_v47 = vor.u32 %v305_v42, %v301_v31  ;;  %v4867_v31 = vld [vmem:[%s7174_s1 + $0x7e4] ss:$16 sps:$4 sm:$0xff]   ;;  %v4862_v32 = vld [vmem:[%s7174_s1 + $0x5e0] ss:$16 sps:$4 sm:$0xff]  }
  0x3b   : > { %3367 = vmatpush2.bf16.msra.mxu1 %v4779_v51  ;;  %3325 = vmatprep.subr.bf16.mxu0 %v4780_v52  ;;  %v5779_v51 = vor.u32 %v283_v36, %v279_v35  ;;  %v352_v52 = vrot.slane %v5759_v37, 4  ;;  %v4873_v35 = vld [vmem:[%s7174_s1 + $0x7c4] ss:$16 sps:$4 sm:$0xff]   ;;  %v4868_v36 = vld [vmem:[%s7174_s1 + $0x5c0] ss:$16 sps:$4 sm:$0xff]  }
  0x3c   : > { %3368 = vmatprep.subr.bf16.mxu1 %v4782_v55  ;;  %v5782_v55 = vor.u32 %v319_v45, %v315_v44  ;;  %v4871_v38 = vld [vmem:[%s7174_s1 + $0x7c0] ss:$16 sps:$4 sm:$0xff]   ;;  %v4885_v44 = vld [vmem:[%s7174_s1 + $0x784] ss:$16 sps:$4 sm:$0xff]  }
  0x3d   : > { %v5815_v3 = vsel %vm360_vm0, %v5779_v51, %v352_v52  ;;  %v4877_v42 = vld [vmem:[%s7174_s1 + $0x7a0] ss:$16 sps:$4 sm:$0xff]  }
  0x3e   : > { %3326 = vmatpush2.bf16.msra.mxu0 %v4784_v60  ;;  %v351_v60 = vrot.slane %v5774_v47, 4  ;;  %v353_v62 = vrot.slane %v5782_v55, 4  ;;  %v4880_v45 = vld [vmem:[%s7174_s1 + $0x580] ss:$16 sps:$4 sm:$0xff]  }
  0x3f   : > { %3369 = vmatpush2.bf16.msra.mxu1 %v4785_v0  ;;  %3327 = vmatprep.subr.bf16.mxu0 %v4786_v1  ;;  %v4820_v0 = vld [vmem:[%s7174_s1 + $0x4c0] ss:$16 sps:$4 sm:$0xff]  }
  0x40   : > { %3370 = vmatprep.subr.bf16.mxu1 %v4788_v2  ;;  %v5800_v63 = vsel %vm360_vm0, %v5727_v9, %v351_v60  ;;  %v4823_v1 = vld [vmem:[%s7174_s1 + $0x6c0] ss:$16 sps:$4 sm:$0xff]   ;;  %v5811_v2 = vsel %vm360_vm0, %v4179_v40, %v350_v49  ;;  %v5818_v4 = vsel %vm360_vm0, %v291_v34, %v353_v62  ;;  %v4834_v9 = vld [vmem:[%s7174_s1 + $0x484] ss:$16 sps:$4 sm:$0xff]  }
  0x41   : > { %v4870_v34 = vld [vmem:[%s7174_s1 + $0x5c4] ss:$16 sps:$4 sm:$0xff]   ;;  %v4886_v52 = vld [vmem:[%s7174_s1 + $0x560] ss:$16 sps:$4 sm:$0xff]  }
  0x42   : > { %3328 = vmatpush2.bf16.msra.mxu0 %v4790_v5  ;;  %v4828_v5 = vld [vmem:[%s7174_s1 + $0x4a4] ss:$16 sps:$4 sm:$0xff]   ;;  %v4892_v62 = vld [vmem:[%s7174_s1 + $0x540] ss:$16 sps:$4 sm:$0xff]  }
  0x43   : > { %3371 = vmatpush2.bf16.msra.mxu1 %v4791_v6  ;;  %3329 = vmatprep.subr.bf16.mxu0 %v4792_v7  ;;  %v4831_v6 = vld [vmem:[%s7174_s1 + $0x6a4] ss:$16 sps:$4 sm:$0xff]   ;;  %v4826_v7 = vld [vmem:[%s7174_s1 + $0x4a0] ss:$16 sps:$4 sm:$0xff]  }
  0x44   : > { %3372 = vmatprep.subr.bf16.mxu1 %v4794_v13  ;;  %v4840_v13 = vld [vmem:[%s7174_s1 + $0x464] ss:$16 sps:$4 sm:$0xff]  }
  0x45   : > { %v4879_v40 = vld [vmem:[%s7174_s1 + $0x7a4] ss:$16 sps:$4 sm:$0xff]  }
  0x46   : > { %3330 = vmatpush2.bf16.msra.mxu0 %v4796_v18  ;;  %v4849_v18 = vld [vmem:[%s7174_s1 + $0x644] ss:$16 sps:$4 sm:$0xff]  }
  0x47   : > { %3373 = vmatpush2.bf16.msra.mxu1 %v4797_v21  ;;  %3331 = vmatprep.subr.bf16.mxu0 %v4798_v26  ;;  %v4852_v21 = vld [vmem:[%s7174_s1 + $0x424] ss:$16 sps:$4 sm:$0xff]  }
  0x48   : > { %3374 = vmatprep.subr.bf16.mxu1 %v4800_v28  ;;  %v4858_v26 = vld [vmem:[%s7174_s1 + $0x404] ss:$16 sps:$4 sm:$0xff]   ;;  %v4856_v28 = vld [vmem:[%s7174_s1 + $0x400] ss:$16 sps:$4 sm:$0xff]  }
  0x49   : > { %v4891_v49 = vld [vmem:[%s7174_s1 + $0x764] ss:$16 sps:$4 sm:$0xff]  }
  0x4a   : > { %3332 = vmatpush2.bf16.msra.mxu0 %v4802_v30  ;;  %v4864_v30 = vld [vmem:[%s7174_s1 + $0x5e4] ss:$16 sps:$4 sm:$0xff]  }
  0x4b   : > { %3375 = vmatpush2.bf16.msra.mxu1 %v4803_v33  ;;  %3387 = vmatprep.subr.bf16.mxu0 %v4816_v41  ;;  %v4865_v33 = vld [vmem:[%s7174_s1 + $0x7e0] ss:$16 sps:$4 sm:$0xff]   ;;  %v4894_v60 = vld [vmem:[%s7174_s1 + $0x544] ss:$16 sps:$4 sm:$0xff]  }
  0x4c   : > { %3430 = vmatprep.subr.bf16.mxu1 %v4819_v43  ;;  %v4874_v41 = vld [vmem:[%s7174_s1 + $0x5a0] ss:$16 sps:$4 sm:$0xff]   ;;  %v4882_v43 = vld [vmem:[%s7174_s1 + $0x584] ss:$16 sps:$4 sm:$0xff]  }
  0x4d   : > { %3334 = vmatmul.mubr.bf16.vlgmr.msra.gmra.mxu0 %v5785_v56 }
  0x4e   : > { %3377 = vmatmul.mubr.bf16.vlgmr.msra.gmra.mxu1 %v5788_v57  ;;  %3388 = vmatpush1.bf16.msra.mxu0 %v4814_v46  ;;  %v4883_v46 = vld [vmem:[%s7174_s1 + $0x780] ss:$16 sps:$4 sm:$0xff]  }
  0x4f   : > { %3431 = vmatpush1.bf16.msra.mxu1 %v4817_v48  ;;  %3389 = vmatprep.subr.bf16.mxu0 %v4822_v59  ;;  %v4888_v48 = vld [vmem:[%s7174_s1 + $0x564] ss:$16 sps:$4 sm:$0xff]   ;;  %v4889_v59 = vld [vmem:[%s7174_s1 + $0x760] ss:$16 sps:$4 sm:$0xff]  }
  0x50   : > { %3432 = vmatprep.subr.bf16.mxu1 %v4825_v61  ;;  %3419 = vmatprep.mubr.bf16.mxu0 %v5811_v2  ;;  %v4897_v61 = vld [vmem:[%s7174_s1 + $0x744] ss:$16 sps:$4 sm:$0xff]  }
  0x51   : > { %3462 = vmatprep.mubr.bf16.mxu1 %v5815_v3 }
  0x52   : > { %3390 = vmatpush1.bf16.msra.mxu0 %v4820_v0  ;;  %v4895_v0 = vld [vmem:[%s7174_s1 + $0x740] ss:$16 sps:$4 sm:$0xff]  }
  0x53   : > { %3433 = vmatpush1.bf16.msra.mxu1 %v4823_v1  ;;  %3391 = vmatprep.subr.bf16.mxu0 %v4828_v5  ;;  %v4900_v1 = vld [vmem:[%s7174_s1 + $0x524] ss:$16 sps:$4 sm:$0xff]  }
  0x54   : > { %3434 = vmatprep.subr.bf16.mxu1 %v4831_v6  ;;  %v4903_v5 = vld [vmem:[%s7174_s1 + $0x724] ss:$16 sps:$4 sm:$0xff]   ;;  %v4898_v6 = vld [vmem:[%s7174_s1 + $0x520] ss:$16 sps:$4 sm:$0xff]  }
  0x56   : > { %3392 = vmatpush1.bf16.msra.mxu0 %v4826_v7  ;;  %v4901_v7 = vld [vmem:[%s7174_s1 + $0x720] ss:$16 sps:$4 sm:$0xff]  }
  0x57   : > { %3435 = vmatpush1.bf16.msra.mxu1 %v4829_v8  ;;  %3393 = vmatprep.subr.bf16.mxu0 %v4834_v9  ;;  %v4906_v8 = vld [vmem:[%s7174_s1 + $0x504] ss:$16 sps:$4 sm:$0xff]  }
  0x58   : > { %3436 = vmatprep.subr.bf16.mxu1 %v4837_v10  ;;  %v4909_v9 = vld [vmem:[%s7174_s1 + $0x704] ss:$16 sps:$4 sm:$0xff]   ;;  %v4904_v10 = vld [vmem:[%s7174_s1 + $0x500] ss:$16 sps:$4 sm:$0xff]  }
  0x5a   : > { %3394 = vmatpush1.bf16.msra.mxu0 %v4832_v11  ;;  %v4907_v11 = vld [vmem:[%s7174_s1 + $0x700] ss:$16 sps:$4 sm:$0xff]  }
  0x5b   : > { %3437 = vmatpush1.bf16.msra.mxu1 %v4835_v12  ;;  %3395 = vmatprep.subr.bf16.mxu0 %v4840_v13  ;;  %v349_v12 = vrot.slane %v5779_v51, 4  ;;  %v4914_v13 = vld [vmem:[%s7174_s1 + $0x8e4] ss:$16 sps:$4 sm:$0xff]  }
  0x5c   : > { %3438 = vmatprep.subr.bf16.mxu1 %v4843_v14  ;;  %v4917_v14 = vld [vmem:[%s7174_s1 + $0xae4] ss:$16 sps:$4 sm:$0xff]  }
  0x5d   : > { %v6005_v51 = vsel %vm360_vm0, %v5685_v53, %v349_v12  ;;  %v4975_v12 = vld [vmem:[%s7174_s1 + $0xba0] ss:$16 sps:$4 sm:$0xff]  }
  0x5e   : > { %3396 = vmatpush1.bf16.msra.mxu0 %v4838_v15  ;;  %v4912_v15 = vld [vmem:[%s7174_s1 + $0x8e0] ss:$16 sps:$4 sm:$0xff]  }
  0x5f   : > { %3439 = vmatpush1.bf16.msra.mxu1 %v4841_v16  ;;  %3397 = vmatprep.subr.bf16.mxu0 %v4846_v17  ;;  %v4915_v16 = vld [vmem:[%s7174_s1 + $0xae0] ss:$16 sps:$4 sm:$0xff]   ;;  %v4920_v17 = vld [vmem:[%s7174_s1 + $0x8c4] ss:$16 sps:$4 sm:$0xff]  }
  0x60   : > { %3440 = vmatprep.subr.bf16.mxu1 %v4849_v18  ;;  %v4923_v18 = vld [vmem:[%s7174_s1 + $0xac4] ss:$16 sps:$4 sm:$0xff]  }
  0x62   : > { %3398 = vmatpush1.bf16.msra.mxu0 %v4844_v19  ;;  %v4918_v19 = vld [vmem:[%s7174_s1 + $0x8c0] ss:$16 sps:$4 sm:$0xff]  }
  0x63   : > { %3441 = vmatpush1.bf16.msra.mxu1 %v4847_v20  ;;  %3399 = vmatprep.subr.bf16.mxu0 %v4852_v21  ;;  %v6017_v20 = vld [vmem:[%s5659_s22] sm:$0xee]  ;;  %v246_v21 = vld [vmem:[%s5659_s22 + $0x8] sm:$0xe] }
  0x64   : > { %3442 = vmatprep.subr.bf16.mxu1 %v4855_v23  ;;  %v4186_v53 = vcombine.low %v6017_v20, %v5677_v50  ;;  %v4921_v23 = vld [vmem:[%s7174_s1 + $0xac0] ss:$16 sps:$4 sm:$0xff]  }
  0x66   : > { %3400 = vmatpush1.bf16.msra.mxu0 %v4850_v24  ;;  %v4926_v24 = vld [vmem:[%s7174_s1 + $0x8a4] ss:$16 sps:$4 sm:$0xff]   ;;  %v6034_v50 = vrot.slane %v4186_v53, 1  ;;  %v4987_v53 = vld [vmem:[%s7174_s1 + $0xb60] ss:$16 sps:$4 sm:$0xff]  }
  0x67   : > { %3443 = vmatpush1.bf16.msra.mxu1 %v4853_v25  ;;  %3401 = vmatprep.subr.bf16.mxu0 %v4858_v26  ;;  %v4188_v25 = vcombine.low %v246_v21, %v5688_v54  ;;  %v4929_v26 = vld [vmem:[%s7174_s1 + $0xaa4] ss:$16 sps:$4 sm:$0xff]   ;;  %v4927_v54 = vld [vmem:[%s7174_s1 + $0xaa0] ss:$16 sps:$4 sm:$0xff]  }
  0x68   : > { %3444 = vmatprep.subr.bf16.mxu1 %v4861_v27  ;;  %v4992_v21 = vld [vmem:[%s7174_s1 + $0x944] ss:$16 sps:$4 sm:$0xff]  }
  0x69   : > { %v6036_v27 = vrot.slane %v4188_v25, 1  ;;  %v4993_v25 = vld [vmem:[%s7174_s1 + $0xb40] ss:$16 sps:$4 sm:$0xff]  }
  0x6a   : > { %3402 = vmatpush1.bf16.msra.mxu0 %v4856_v28  ;;  %v354_v28 = vrot.slane %v6034_v50, 4 }
  0x6b   : > { %3445 = vmatpush1.bf16.msra.mxu1 %v4859_v29  ;;  %3403 = vmatprep.subr.bf16.mxu0 %v4864_v30  ;;  %v4924_v29 = vld [vmem:[%s7174_s1 + $0x8a0] ss:$16 sps:$4 sm:$0xff]   ;;  %v356_v30 = vrot.slane %v6036_v27, 4 }
  0x6c   : > { %3446 = vmatprep.subr.bf16.mxu1 %v4867_v31  ;;  %v4932_v31 = vld [vmem:[%s7174_s1 + $0x884] ss:$16 sps:$4 sm:$0xff]  }
  0x6e   : > { %3404 = vmatpush2.bf16.msra.mxu0 %v4862_v32  ;;  %v4935_v32 = vld [vmem:[%s7174_s1 + $0xa84] ss:$16 sps:$4 sm:$0xff]  }
  0x6f   : > { %3447 = vmatpush2.bf16.msra.mxu1 %v4865_v33  ;;  %3405 = vmatprep.subr.bf16.mxu0 %v4870_v34  ;;  %v6054_v33 = vsel %vm360_vm0, %v5774_v47, %v354_v28  ;;  %v6059_v34 = vsel %vm360_vm0, %v5782_v55, %v356_v30  ;;  %v4938_v47 = vld [vmem:[%s7174_s1 + $0x864] ss:$16 sps:$4 sm:$0xff]   ;;  %v5446_v28 = vld [vmem:[%s5659_s22 + $0xc] sm:$0x11] }
  0x70   : > { %3448 = vmatprep.subr.bf16.mxu1 %v4873_v35  ;;  %v4930_v35 = vld [vmem:[%s7174_s1 + $0x880] ss:$16 sps:$4 sm:$0xff]   ;;  %v4941_v55 = vld [vmem:[%s7174_s1 + $0xa64] ss:$16 sps:$4 sm:$0xff]  }
  0x71   : > { %v4996_v30 = vld [vmem:[%s7174_s1 + $0x920] ss:$16 sps:$4 sm:$0xff]  }
  0x72   : > { %3406 = vmatpush2.bf16.msra.mxu0 %v4868_v36  ;;  %v4933_v36 = vld [vmem:[%s7174_s1 + $0xa80] ss:$16 sps:$4 sm:$0xff]  }
  0x73   : > { %3449 = vmatpush2.bf16.msra.mxu1 %v4871_v38  ;;  %3407 = vmatprep.subr.bf16.mxu0 %v4876_v39  ;;  %v4936_v38 = vld [vmem:[%s7174_s1 + $0x860] ss:$16 sps:$4 sm:$0xff]  }
  0x74   : > { %3450 = vmatprep.subr.bf16.mxu1 %v4879_v40  ;;  %v4939_v39 = vld [vmem:[%s7174_s1 + $0xa60] ss:$16 sps:$4 sm:$0xff]   ;;  %v4944_v40 = vld [vmem:[%s7174_s1 + $0x844] ss:$16 sps:$4 sm:$0xff]  }
  0x76   : > { %3408 = vmatpush2.bf16.msra.mxu0 %v4874_v41  ;;  %v4947_v41 = vld [vmem:[%s7174_s1 + $0xa44] ss:$16 sps:$4 sm:$0xff]  }
  0x77   : > { %3451 = vmatpush2.bf16.msra.mxu1 %v4877_v42  ;;  %3409 = vmatprep.subr.bf16.mxu0 %v4882_v43  ;;  %v4942_v42 = vld [vmem:[%s7174_s1 + $0x840] ss:$16 sps:$4 sm:$0xff]  }
  0x78   : > { %3452 = vmatprep.subr.bf16.mxu1 %v4885_v44  ;;  %v4945_v43 = vld [vmem:[%s7174_s1 + $0xa40] ss:$16 sps:$4 sm:$0xff]   ;;  %v4950_v44 = vld [vmem:[%s7174_s1 + $0x824] ss:$16 sps:$4 sm:$0xff]  }
  0x7a   : > { %3410 = vmatpush2.bf16.msra.mxu0 %v4880_v45  ;;  %v4953_v45 = vld [vmem:[%s7174_s1 + $0xa24] ss:$16 sps:$4 sm:$0xff]  }
  0x7b   : > { %3453 = vmatpush2.bf16.msra.mxu1 %v4883_v46  ;;  %3411 = vmatprep.subr.bf16.mxu0 %v4888_v48  ;;  %v4948_v46 = vld [vmem:[%s7174_s1 + $0x820] ss:$16 sps:$4 sm:$0xff]  }
  0x7c   : > { %3454 = vmatprep.subr.bf16.mxu1 %v4891_v49  ;;  %v4951_v48 = vld [vmem:[%s7174_s1 + $0xa20] ss:$16 sps:$4 sm:$0xff]   ;;  %v4956_v49 = vld [vmem:[%s7174_s1 + $0x804] ss:$16 sps:$4 sm:$0xff]  }
  0x7e   : > { %3412 = vmatpush2.bf16.msra.mxu0 %v4886_v52  ;;  %v4959_v52 = vld [vmem:[%s7174_s1 + $0xa04] ss:$16 sps:$4 sm:$0xff]  }
  0x7f   : > { %3455 = vmatpush2.bf16.msra.mxu1 %v4889_v59  ;;  %3413 = vmatprep.subr.bf16.mxu0 %v4894_v60  ;;  %v4954_v59 = vld [vmem:[%s7174_s1 + $0x800] ss:$16 sps:$4 sm:$0xff]  }
  0x80   : > { %3456 = vmatprep.subr.bf16.mxu1 %v4897_v61  ;;  %v4957_v60 = vld [vmem:[%s7174_s1 + $0xa00] ss:$16 sps:$4 sm:$0xff]   ;;  %v4962_v61 = vld [vmem:[%s7174_s1 + $0x9e4] ss:$16 sps:$4 sm:$0xff]  }
  0x82   : > { %3414 = vmatpush2.bf16.msra.mxu0 %v4892_v62  ;;  %v4965_v62 = vld [vmem:[%s7174_s1 + $0xbe4] ss:$16 sps:$4 sm:$0xff]  }
  0x83   : > { %3457 = vmatpush2.bf16.msra.mxu1 %v4895_v0  ;;  %3415 = vmatprep.subr.bf16.mxu0 %v4900_v1  ;;  %v4960_v0 = vld [vmem:[%s7174_s1 + $0x9e0] ss:$16 sps:$4 sm:$0xff]  }
  0x84   : > { %3458 = vmatprep.subr.bf16.mxu1 %v4903_v5  ;;  %v4963_v1 = vld [vmem:[%s7174_s1 + $0xbe0] ss:$16 sps:$4 sm:$0xff]   ;;  %v4968_v5 = vld [vmem:[%s7174_s1 + $0x9c4] ss:$16 sps:$4 sm:$0xff]  }
  0x86   : > { %3416 = vmatpush2.bf16.msra.mxu0 %v4898_v6  ;;  %v4971_v6 = vld [vmem:[%s7174_s1 + $0xbc4] ss:$16 sps:$4 sm:$0xff]  }
  0x87   : > { %3459 = vmatpush2.bf16.msra.mxu1 %v4901_v7  ;;  %3417 = vmatprep.subr.bf16.mxu0 %v4906_v8  ;;  %v4966_v7 = vld [vmem:[%s7174_s1 + $0x9c0] ss:$16 sps:$4 sm:$0xff]  }
  0x88   : > { %3460 = vmatprep.subr.bf16.mxu1 %v4909_v9  ;;  %v4969_v8 = vld [vmem:[%s7174_s1 + $0xbc0] ss:$16 sps:$4 sm:$0xff]   ;;  %v4974_v9 = vld [vmem:[%s7174_s1 + $0x9a4] ss:$16 sps:$4 sm:$0xff]  }
  0x8a   : > { %3418 = vmatpush2.bf16.msra.mxu0 %v4904_v10  ;;  %v4977_v10 = vld [vmem:[%s7174_s1 + $0xba4] ss:$16 sps:$4 sm:$0xff]  }
  0x8b   : > { %3461 = vmatpush2.bf16.msra.mxu1 %v4907_v11  ;;  %3473 = vmatprep.subr.bf16.mxu0 %v4914_v13  ;;  %v4972_v11 = vld [vmem:[%s7174_s1 + $0x9a0] ss:$16 sps:$4 sm:$0xff]   ;;  %v4980_v13 = vld [vmem:[%s7174_s1 + $0x984] ss:$16 sps:$4 sm:$0xff]  }
  0x8c   : > { %3516 = vmatprep.subr.bf16.mxu1 %v4917_v14  ;;  %v4983_v14 = vld [vmem:[%s7174_s1 + $0xb84] ss:$16 sps:$4 sm:$0xff]  }
  0x8d   : > { %3420 = vmatmul.mubr.bf16.vlgmr.msra.gmra.mxu0 %v6005_v51 }
  0x8e   : > { %3463 = vmatmul.mubr.bf16.vlgmr.msra.gmra.mxu1 %v5800_v63  ;;  %3474 = vmatpush1.bf16.msra.mxu0 %v4912_v15  ;;  %v4978_v15 = vld [vmem:[%s7174_s1 + $0x980] ss:$16 sps:$4 sm:$0xff]  }
  0x8f   : > { %3517 = vmatpush1.bf16.msra.mxu1 %v4915_v16  ;;  %3475 = vmatprep.subr.bf16.mxu0 %v4920_v17  ;;  %v4981_v16 = vld [vmem:[%s7174_s1 + $0xb80] ss:$16 sps:$4 sm:$0xff]   ;;  %v4986_v17 = vld [vmem:[%s7174_s1 + $0x964] ss:$16 sps:$4 sm:$0xff]  }
  0x90   : > { %3518 = vmatprep.subr.bf16.mxu1 %v4923_v18  ;;  %3505 = vmatprep.mubr.bf16.mxu0 %v6054_v33  ;;  %v4989_v18 = vld [vmem:[%s7174_s1 + $0xb64] ss:$16 sps:$4 sm:$0xff]  }
  0x91   : > { %3548 = vmatprep.mubr.bf16.mxu1 %v6059_v34 }
  0x92   : > { %3476 = vmatpush1.bf16.msra.mxu0 %v4918_v19  ;;  %v4984_v19 = vld [vmem:[%s7174_s1 + $0x960] ss:$16 sps:$4 sm:$0xff]  }
  0x93   : > { %3519 = vmatpush1.bf16.msra.mxu1 %v4921_v23  ;;  %3477 = vmatprep.subr.bf16.mxu0 %v4926_v24  ;;  %v4995_v23 = vld [vmem:[%s7174_s1 + $0xb44] ss:$16 sps:$4 sm:$0xff]   ;;  %v4990_v24 = vld [vmem:[%s7174_s1 + $0x940] ss:$16 sps:$4 sm:$0xff]  }
  0x94   : > { %3520 = vmatprep.subr.bf16.mxu1 %v4929_v26  ;;  %v4998_v26 = vld [vmem:[%s7174_s1 + $0x924] ss:$16 sps:$4 sm:$0xff]  }
  0x96   : > { %3478 = vmatpush1.bf16.msra.mxu0 %v4924_v29  ;;  %v4187_v29 = vcombine.high %v6017_v20, %v5446_v28  ;;  %v5053_v28 = vld [vmem:[%s7174_s1 + $0xc00] ss:$16 sps:$4 sm:$0xff]  }
  0x97   : > { %3521 = vmatpush1.bf16.msra.mxu1 %v4927_v54  ;;  %3479 = vmatprep.subr.bf16.mxu0 %v4932_v31  ;;  %v5001_v54 = vld [vmem:[%s7174_s1 + $0xb24] ss:$16 sps:$4 sm:$0xff]   ;;  %v4999_v31 = vld [vmem:[%s7174_s1 + $0xb20] ss:$16 sps:$4 sm:$0xff]  }
  0x98   : > { %3522 = vmatprep.subr.bf16.mxu1 %v4935_v32  ;;  %v5004_v32 = vld [vmem:[%s7174_s1 + $0x904] ss:$16 sps:$4 sm:$0xff]   ;;  %v330_v20 = vrot.slane %v4187_v29, 1  ;;  %v5056_v29 = vld [vmem:[%s7174_s1 + $0xe00] ss:$16 sps:$4 sm:$0xff]  }
  0x9a   : > { %3480 = vmatpush1.bf16.msra.mxu0 %v4930_v35  ;;  %v6206_v35 = vld [vmem:[%s5659_s22 + $0x18] sm:$0xee] }
  0x9b   : > { %3523 = vmatpush1.bf16.msra.mxu1 %v4933_v36  ;;  %3481 = vmatprep.subr.bf16.mxu0 %v4938_v47  ;;  %v5007_v36 = vld [vmem:[%s7174_s1 + $0xb04] ss:$16 sps:$4 sm:$0xff]   ;;  %v5002_v47 = vld [vmem:[%s7174_s1 + $0x900] ss:$16 sps:$4 sm:$0xff]  }
  0x9c   : > { %3524 = vmatprep.subr.bf16.mxu1 %v4941_v55  ;;  %v5005_v55 = vld [vmem:[%s7174_s1 + $0xb00] ss:$16 sps:$4 sm:$0xff]  }
  0x9e   : > { %3482 = vmatpush1.bf16.msra.mxu0 %v4936_v38  ;;  %v6218_v38 = vld [vmem:[%s5659_s22 + $0x24] sm:$0x11] }
  0x9f   : > { %3525 = vmatpush1.bf16.msra.mxu1 %v4939_v39  ;;  %3483 = vmatprep.subr.bf16.mxu0 %v4944_v40  ;;  %v4192_v39 = vcombine.high %v6206_v35, %v6218_v38  ;;  %v355_v40 = vrot.slane %v330_v20, 4 }
  0xa0   : > { %3526 = vmatprep.subr.bf16.mxu1 %v4947_v41  ;;  %v5013_v41 = vld [vmem:[%s7174_s1 + $0xce4] ss:$16 sps:$4 sm:$0xff]  }
  0xa2   : > { %3484 = vmatpush1.bf16.msra.mxu0 %v4942_v42  ;;  %v5016_v42 = vld [vmem:[%s7174_s1 + $0xee4] ss:$16 sps:$4 sm:$0xff]  }
  0xa3   : > { %3527 = vmatpush1.bf16.msra.mxu1 %v4945_v43  ;;  %3485 = vmatprep.subr.bf16.mxu0 %v4950_v44  ;;  %v5011_v43 = vld [vmem:[%s7174_s1 + $0xce0] ss:$16 sps:$4 sm:$0xff]  }
  0xa4   : > { %3528 = vmatprep.subr.bf16.mxu1 %v4953_v45  ;;  %v5014_v44 = vld [vmem:[%s7174_s1 + $0xee0] ss:$16 sps:$4 sm:$0xff]   ;;  %v4195_v45 = vrot.slane %v4192_v39, 5 }
  0xa5   : > { %v5066_v39 = vld [vmem:[%s7174_s1 + $0xdc0] ss:$16 sps:$4 sm:$0xff]  }
  0xa6   : > { %3486 = vmatpush1.bf16.msra.mxu0 %v4948_v46  ;;  %v6236_v46 = vsel %vm360_vm0, %v5759_v37, %v355_v40  ;;  %v5020_v37 = vld [vmem:[%s7174_s1 + $0xec0] ss:$16 sps:$4 sm:$0xff]   ;;  %v5074_v40 = vld [vmem:[%s7174_s1 + $0xda4] ss:$16 sps:$4 sm:$0xff]  }
  0xa7   : > { %3529 = vmatpush1.bf16.msra.mxu1 %v4951_v48  ;;  %3487 = vmatprep.subr.bf16.mxu0 %v4956_v49  ;;  %v5019_v48 = vld [vmem:[%s7174_s1 + $0xcc4] ss:$16 sps:$4 sm:$0xff]  }
  0xa8   : > { %3530 = vmatprep.subr.bf16.mxu1 %v4959_v52  ;;  %v5022_v49 = vld [vmem:[%s7174_s1 + $0xec4] ss:$16 sps:$4 sm:$0xff]   ;;  %v5017_v52 = vld [vmem:[%s7174_s1 + $0xcc0] ss:$16 sps:$4 sm:$0xff]  }
  0xaa   : > { %3488 = vmatpush1.bf16.msra.mxu0 %v4954_v59  ;;  %v6253_v59 = vsel %vm360_vm0, %v330_v20, %v4195_v45  ;;  %v5063_v20 = vld [vmem:[%s7174_s1 + $0xe8] ss:$16 sps:$4 sm:$0xff]   ;;  %v5078_v45 = vld [vmem:[%s7174_s1 + $0xd80] ss:$16 sps:$4 sm:$0xff]  }
  0xab   : > { %3531 = vmatpush1.bf16.msra.mxu1 %v4957_v60  ;;  %3489 = vmatprep.subr.bf16.mxu0 %v4962_v61  ;;  %v5025_v60 = vld [vmem:[%s7174_s1 + $0xca4] ss:$16 sps:$4 sm:$0xff]  }
  0xac   : > { %3532 = vmatprep.subr.bf16.mxu1 %v4965_v62  ;;  %v5028_v61 = vld [vmem:[%s7174_s1 + $0xea4] ss:$16 sps:$4 sm:$0xff]   ;;  %v5473_v62 = vmov 0  }
  0xae   : > { %3490 = vmatpush2.bf16.msra.mxu0 %v4960_v0  ;;  %v5023_v0 = vld [vmem:[%s7174_s1 + $0xca0] ss:$16 sps:$4 sm:$0xff]  }
  0xaf   : > { %3533 = vmatpush2.bf16.msra.mxu1 %v4963_v1  ;;  %3491 = vmatprep.subr.bf16.mxu0 %v4968_v5  ;;  %v5026_v1 = vld [vmem:[%s7174_s1 + $0xea0] ss:$16 sps:$4 sm:$0xff]   ;;  %v5031_v5 = vld [vmem:[%s7174_s1 + $0xc84] ss:$16 sps:$4 sm:$0xff]  }
  0xb0   : > { %3534 = vmatprep.subr.bf16.mxu1 %v4971_v6  ;;  %v5034_v6 = vld [vmem:[%s7174_s1 + $0xe84] ss:$16 sps:$4 sm:$0xff]  }
  0xb2   : > { %3492 = vmatpush2.bf16.msra.mxu0 %v4966_v7  ;;  %v5029_v7 = vld [vmem:[%s7174_s1 + $0xc80] ss:$16 sps:$4 sm:$0xff]  }
  0xb3   : > { %3535 = vmatpush2.bf16.msra.mxu1 %v4969_v8  ;;  %3493 = vmatprep.subr.bf16.mxu0 %v4974_v9  ;;  %v5032_v8 = vld [vmem:[%s7174_s1 + $0xe80] ss:$16 sps:$4 sm:$0xff]   ;;  %v5037_v9 = vld [vmem:[%s7174_s1 + $0xc64] ss:$16 sps:$4 sm:$0xff]  }
  0xb4   : > { %3536 = vmatprep.subr.bf16.mxu1 %v4977_v10  ;;  %v5040_v10 = vld [vmem:[%s7174_s1 + $0xe64] ss:$16 sps:$4 sm:$0xff]  }
  0xb6   : > { %3494 = vmatpush2.bf16.msra.mxu0 %v4972_v11  ;;  %v5035_v11 = vld [vmem:[%s7174_s1 + $0xc60] ss:$16 sps:$4 sm:$0xff]  }
  0xb7   : > { %3537 = vmatpush2.bf16.msra.mxu1 %v4975_v12  ;;  %3495 = vmatprep.subr.bf16.mxu0 %v4980_v13  ;;  %v5038_v12 = vld [vmem:[%s7174_s1 + $0xe60] ss:$16 sps:$4 sm:$0xff]   ;;  %v5043_v13 = vld [vmem:[%s7174_s1 + $0xc44] ss:$16 sps:$4 sm:$0xff]  }
  0xb8   : > { %3538 = vmatprep.subr.bf16.mxu1 %v4983_v14  ;;  %v5046_v14 = vld [vmem:[%s7174_s1 + $0xe44] ss:$16 sps:$4 sm:$0xff]  }
  0xba   : > { %3496 = vmatpush2.bf16.msra.mxu0 %v4978_v15  ;;  %v5041_v15 = vld [vmem:[%s7174_s1 + $0xc40] ss:$16 sps:$4 sm:$0xff]  }
  0xbb   : > { %3539 = vmatpush2.bf16.msra.mxu1 %v4981_v16  ;;  %3497 = vmatprep.subr.bf16.mxu0 %v4986_v17  ;;  %v5044_v16 = vld [vmem:[%s7174_s1 + $0xe40] ss:$16 sps:$4 sm:$0xff]   ;;  %v5049_v17 = vld [vmem:[%s7174_s1 + $0xc24] ss:$16 sps:$4 sm:$0xff]  }
  0xbc   : > { %3540 = vmatprep.subr.bf16.mxu1 %v4989_v18  ;;  %v5052_v18 = vld [vmem:[%s7174_s1 + $0xe24] ss:$16 sps:$4 sm:$0xff]  }
  0xbe   : > { %3498 = vmatpush2.bf16.msra.mxu0 %v4984_v19  ;;  %v4190_v19 = vld [vmem:[%s5659_s22 + $0x20] sm:$0xe] }
  0xbf   : > { %3541 = vmatpush2.bf16.msra.mxu1 %v4987_v53  ;;  %3499 = vmatprep.subr.bf16.mxu0 %v4992_v21  ;;  %v5047_v53 = vld [vmem:[%s7174_s1 + $0xc20] ss:$16 sps:$4 sm:$0xff]  }
  0xc0   : > { %3542 = vmatprep.subr.bf16.mxu1 %v4995_v23  ;;  %v5050_v21 = vld [vmem:[%s7174_s1 + $0xe20] ss:$16 sps:$4 sm:$0xff]   ;;  %v5055_v23 = vld [vmem:[%s7174_s1 + $0xc04] ss:$16 sps:$4 sm:$0xff]  }
  0xc2   : > { %3500 = vmatpush2.bf16.msra.mxu0 %v4990_v24  ;;  %v5448_v24 = vld [vmem:[%s5659_s22 + $0x2c] sm:$0x1] }
  0xc3   : > { %3543 = vmatpush2.bf16.msra.mxu1 %v4993_v25  ;;  %3501 = vmatprep.subr.bf16.mxu0 %v4998_v26  ;;  %v4193_v25 = vcombine.low %v4190_v19, %v5448_v24  ;;  %v5058_v26 = vld [vmem:[%s7174_s1 + $0xe04] ss:$16 sps:$4 sm:$0xff]   ;;  %v5118_v19 = vld [vmem:[%s7174_s1 + $0x1cc] ss:$16 sps:$4 sm:$0xff]  }
  0xc4   : > { %3544 = vmatprep.subr.bf16.mxu1 %v5001_v54  ;;  %v5061_v54 = vld [vmem:[%s7174_s1 + $0xde4] ss:$16 sps:$4 sm:$0xff]   ;;  %v5127_v24 = vld [vmem:[%s7174_s1 + $0x2ac] ss:$16 sps:$4 sm:$0xff]  }
  0xc6   : > { %3502 = vmatpush2.bf16.msra.mxu0 %v4996_v30  ;;  %v4196_v30 = vrot.slane %v4193_v25, 5  ;;  %v5122_v25 = vld [vmem:[%s7174_s1 + $0x1a8] ss:$16 sps:$4 sm:$0xff]  }
  0xc7   : > { %3545 = vmatpush2.bf16.msra.mxu1 %v4999_v31  ;;  %3503 = vmatprep.subr.bf16.mxu0 %v5004_v32  ;;  %v5065_v31 = vld [vmem:[%s7174_s1 + $0xec] ss:$16 sps:$4 sm:$0xff]   ;;  %v5059_v32 = vld [vmem:[%s7174_s1 + $0xde0] ss:$16 sps:$4 sm:$0xff]  }
  0xc8   : > { %3546 = vmatprep.subr.bf16.mxu1 %v5007_v36  ;;  %v6345_v36 = vsel %vm360_vm0, %v6036_v27, %v4196_v30  ;;  %v5069_v27 = vld [vmem:[%s7174_s1 + $0xc8] ss:$16 sps:$4 sm:$0xff]   ;;  %v5136_v30 = vld [vmem:[%s7174_s1 + $0x16c] ss:$16 sps:$4 sm:$0xff]  }
  0xca   : > { %3504 = vmatpush2.bf16.msra.mxu0 %v5002_v47  ;;  %v5068_v47 = vld [vmem:[%s7174_s1 + $0xdc4] ss:$16 sps:$4 sm:$0xff]  }
  0xcb   : > { %3547 = vmatpush2.bf16.msra.mxu1 %v5005_v55  ;;  %3559 = vmatprep.subr.bf16.mxu0 %v5013_v41  ;;  %v5071_v55 = vld [vmem:[%s7174_s1 + $0xcc] ss:$16 sps:$4 sm:$0xff]  }
  0xcc   : > { %3602 = vmatprep.subr.bf16.mxu1 %v5016_v42  ;;  %v5077_v41 = vld [vmem:[%s7174_s1 + $0xac] ss:$16 sps:$4 sm:$0xff]   ;;  %v5072_v42 = vld [vmem:[%s7174_s1 + $0xda0] ss:$16 sps:$4 sm:$0xff]  }
  0xcd   : > { %3506 = vmatmul.mubr.bf16.vlgmr.msra.gmra.mxu0 %v5818_v4 }
  0xce   : > { %3549 = vmatmul.mubr.bf16.vlgmr.msra.gmra.mxu1 %v6236_v46  ;;  %3560 = vmatpush1.bf16.msra.mxu0 %v5011_v43  ;;  %v5075_v43 = vld [vmem:[%s7174_s1 + $0xa8] ss:$16 sps:$4 sm:$0xff]  }
  0xcf   : > { %3603 = vmatpush1.bf16.msra.mxu1 %v5014_v44  ;;  %3561 = vmatprep.subr.bf16.mxu0 %v5019_v48  ;;  %v5080_v44 = vld [vmem:[%s7174_s1 + $0xd84] ss:$16 sps:$4 sm:$0xff]   ;;  %v5081_v48 = vld [vmem:[%s7174_s1 + $0x88] ss:$16 sps:$4 sm:$0xff]  }
  0xd0   : > { %3604 = vmatprep.subr.bf16.mxu1 %v5022_v49  ;;  %3634 = vmatprep.mubr.bf16.mxu1 %v5473_v62  ;;  %v5086_v49 = vld [vmem:[%s7174_s1 + $0xd64] ss:$16 sps:$4 sm:$0xff]  }
  0xd1   : > { %3591 = vmatprep.mubr.bf16.mxu0 %v6253_v59 }
  0xd2   : > { %3562 = vmatpush1.bf16.msra.mxu0 %v5017_v52  ;;  %v5089_v52 = vld [vmem:[%s7174_s1 + $0x6c] ss:$16 sps:$4 sm:$0xff]  }
  0xd3   : > { %3605 = vmatpush1.bf16.msra.mxu1 %v5020_v37  ;;  %3563 = vmatprep.subr.bf16.mxu0 %v5025_v60  ;;  %v5084_v37 = vld [vmem:[%s7174_s1 + $0xd60] ss:$16 sps:$4 sm:$0xff]   ;;  %v5087_v60 = vld [vmem:[%s7174_s1 + $0x68] ss:$16 sps:$4 sm:$0xff]  }
  0xd4   : > { %3606 = vmatprep.subr.bf16.mxu1 %v5028_v61  ;;  %v5092_v61 = vld [vmem:[%s7174_s1 + $0xd44] ss:$16 sps:$4 sm:$0xff]  }
  0xd6   : > { %3564 = vmatpush1.bf16.msra.mxu0 %v5023_v0  ;;  %v5095_v0 = vld [vmem:[%s7174_s1 + $0x4c] ss:$16 sps:$4 sm:$0xff]  }
  0xd7   : > { %3607 = vmatpush1.bf16.msra.mxu1 %v5026_v1  ;;  %3565 = vmatprep.subr.bf16.mxu0 %v5031_v5  ;;  %v5090_v1 = vld [vmem:[%s7174_s1 + $0xd40] ss:$16 sps:$4 sm:$0xff]   ;;  %v5093_v5 = vld [vmem:[%s7174_s1 + $0x48] ss:$16 sps:$4 sm:$0xff]  }
  0xd8   : > { %3608 = vmatprep.subr.bf16.mxu1 %v5034_v6  ;;  %v5098_v6 = vld [vmem:[%s7174_s1 + $0xd24] ss:$16 sps:$4 sm:$0xff]  }
  0xda   : > { %3566 = vmatpush1.bf16.msra.mxu0 %v5029_v7  ;;  %v5101_v7 = vld [vmem:[%s7174_s1 + $0x2c] ss:$16 sps:$4 sm:$0xff]  }
  0xdb   : > { %3609 = vmatpush1.bf16.msra.mxu1 %v5032_v8  ;;  %3567 = vmatprep.subr.bf16.mxu0 %v5037_v9  ;;  %v5096_v8 = vld [vmem:[%s7174_s1 + $0xd20] ss:$16 sps:$4 sm:$0xff]   ;;  %v5099_v9 = vld [vmem:[%s7174_s1 + $0x28] ss:$16 sps:$4 sm:$0xff]  }
  0xdc   : > { %3610 = vmatprep.subr.bf16.mxu1 %v5040_v10  ;;  %v5104_v10 = vld [vmem:[%s7174_s1 + $0xd04] ss:$16 sps:$4 sm:$0xff]  }
  0xde   : > { %3568 = vmatpush1.bf16.msra.mxu0 %v5035_v11  ;;  %v4191_v11 = vcombine.low %v6206_v35, %v6218_v38  ;;  %v5112_v35 = vld [vmem:[%s7174_s1 + $0x1ec] ss:$16 sps:$4 sm:$0xff]  }
  0xdf   : > { %3611 = vmatpush1.bf16.msra.mxu1 %v5038_v12  ;;  %3569 = vmatprep.subr.bf16.mxu0 %v5043_v13  ;;  %v5107_v12 = vld [vmem:[%s7174_s1 + $0xc] ss:$16 sps:$4 sm:$0xff]   ;;  %v5102_v13 = vld [vmem:[%s7174_s1 + $0xd00] ss:$16 sps:$4 sm:$0xff]  }
  0xe0   : > { %3612 = vmatprep.subr.bf16.mxu1 %v5046_v14  ;;  %v5105_v14 = vld [vmem:[%s7174_s1 + $0x8] ss:$16 sps:$4 sm:$0xff]   ;;  %v5115_v38 = vld [vmem:[%s7174_s1 + $0x2ec] ss:$16 sps:$4 sm:$0xff]  }
  0xe2   : > { %3570 = vmatpush1.bf16.msra.mxu0 %v5041_v15  ;;  %v4194_v15 = vrot.slane %v4191_v11, 5  ;;  %v5176_v11 = vld [vmem:[%s7174_s1 + $0x388] ss:$16 sps:$4 sm:$0xff]  }
  0xe3   : > { %3613 = vmatpush1.bf16.msra.mxu1 %v5044_v16  ;;  %3571 = vmatprep.subr.bf16.mxu0 %v5049_v17  ;;  %v5110_v16 = vld [vmem:[%s7174_s1 + $0x1e8] ss:$16 sps:$4 sm:$0xff]  }
  0xe4   : > { %3614 = vmatprep.subr.bf16.mxu1 %v5052_v18  ;;  %v5113_v17 = vld [vmem:[%s7174_s1 + $0x2e8] ss:$16 sps:$4 sm:$0xff]   ;;  %v6449_v18 = vsel %vm360_vm0, %v6034_v50, %v4194_v15 }
  0xe5   : > { %v5119_v50 = vld [vmem:[%s7174_s1 + $0x2c8] ss:$16 sps:$4 sm:$0xff]  }
  0xe6   : > { %3572 = vmatpush1.bf16.msra.mxu0 %v5047_v53  ;;  %v5121_v53 = vld [vmem:[%s7174_s1 + $0x2cc] ss:$16 sps:$4 sm:$0xff]   ;;  %v5185_v15 = vld [vmem:[%s7174_s1 + $0x468] ss:$16 sps:$4 sm:$0xff]  }
  0xe7   : > { %3615 = vmatpush1.bf16.msra.mxu1 %v5050_v21  ;;  %3573 = vmatprep.subr.bf16.mxu0 %v5055_v23  ;;  %v5116_v21 = vld [vmem:[%s7174_s1 + $0x1c8] ss:$16 sps:$4 sm:$0xff]   ;;  %v5124_v23 = vld [vmem:[%s7174_s1 + $0x1ac] ss:$16 sps:$4 sm:$0xff]  }
  0xe8   : > { %3616 = vmatprep.subr.bf16.mxu1 %v5058_v26  ;;  %v5125_v26 = vld [vmem:[%s7174_s1 + $0x2a8] ss:$16 sps:$4 sm:$0xff]  }
  0xea   : > { %3574 = vmatpush1.bf16.msra.mxu0 %v5053_v28  ;;  %v5130_v28 = vld [vmem:[%s7174_s1 + $0x18c] ss:$16 sps:$4 sm:$0xff]  }
  0xeb   : > { %3617 = vmatpush1.bf16.msra.mxu1 %v5056_v29  ;;  %3575 = vmatprep.subr.bf16.mxu0 %v5061_v54  ;;  %v5128_v29 = vld [vmem:[%s7174_s1 + $0x188] ss:$16 sps:$4 sm:$0xff]  }
  0xec   : > { %3645 = vmatprep.subr.bf16.mxu1 %v5065_v31  ;;  %v5131_v54 = vld [vmem:[%s7174_s1 + $0x288] ss:$16 sps:$4 sm:$0xff]   ;;  %v5139_v31 = vld [vmem:[%s7174_s1 + $0x26c] ss:$16 sps:$4 sm:$0xff]  }
  0xee   : > { %3635 = vmatmul.mubr.bf16.vlgmr.msra.gmra.mxu1 %v6345_v36  ;;  %3576 = vmatpush2.bf16.msra.mxu0 %v5059_v32  ;;  %v5134_v32 = vld [vmem:[%s7174_s1 + $0x168] ss:$16 sps:$4 sm:$0xff]  }
  0xef   : > { %3646 = vmatpush1.bf16.msra.mxu1 %v5063_v20  ;;  %3577 = vmatprep.subr.bf16.mxu0 %v5068_v47  ;;  %v5137_v20 = vld [vmem:[%s7174_s1 + $0x268] ss:$16 sps:$4 sm:$0xff]   ;;  %v5142_v47 = vld [vmem:[%s7174_s1 + $0x14c] ss:$16 sps:$4 sm:$0xff]  }
  0xf0   : > { %3647 = vmatprep.subr.bf16.mxu1 %v5071_v55  ;;  %3677 = vmatprep.mubr.bf16.mxu1 %v5698_v58  ;;  %v5083_v58 = vld [vmem:[%s7174_s1 + $0x8c] ss:$16 sps:$4 sm:$0xff]  }
  0xf1   : > { %v5145_v55 = vld [vmem:[%s7174_s1 + $0x24c] ss:$16 sps:$4 sm:$0xff]  }
  0xf2   : > { %3578 = vmatpush2.bf16.msra.mxu0 %v5066_v39  ;;  %v5140_v39 = vld [vmem:[%s7174_s1 + $0x148] ss:$16 sps:$4 sm:$0xff]  }
  0xf3   : > { %3648 = vmatpush1.bf16.msra.mxu1 %v5069_v27  ;;  %3579 = vmatprep.subr.bf16.mxu0 %v5074_v40  ;;  %v5143_v27 = vld [vmem:[%s7174_s1 + $0x248] ss:$16 sps:$4 sm:$0xff]   ;;  %v5148_v40 = vld [vmem:[%s7174_s1 + $0x12c] ss:$16 sps:$4 sm:$0xff]  }
  0xf4   : > { %3649 = vmatprep.subr.bf16.mxu1 %v5077_v41  ;;  %v5151_v41 = vld [vmem:[%s7174_s1 + $0x22c] ss:$16 sps:$4 sm:$0xff]  }
  0xf6   : > { %3580 = vmatpush2.bf16.msra.mxu0 %v5072_v42  ;;  %v5146_v42 = vld [vmem:[%s7174_s1 + $0x128] ss:$16 sps:$4 sm:$0xff]  }
  0xf7   : > { %3650 = vmatpush1.bf16.msra.mxu1 %v5075_v43  ;;  %3581 = vmatprep.subr.bf16.mxu0 %v5080_v44  ;;  %v5149_v43 = vld [vmem:[%s7174_s1 + $0x228] ss:$16 sps:$4 sm:$0xff]   ;;  %v5154_v44 = vld [vmem:[%s7174_s1 + $0x10c] ss:$16 sps:$4 sm:$0xff]  }
  0xf8   : > { %3651 = vmatprep.subr.bf16.mxu1 %v5083_v58  ;;  %v5157_v58 = vld [vmem:[%s7174_s1 + $0x20c] ss:$16 sps:$4 sm:$0xff]  }
  0xfa   : > { %3582 = vmatpush2.bf16.msra.mxu0 %v5078_v45  ;;  %v5152_v45 = vld [vmem:[%s7174_s1 + $0x108] ss:$16 sps:$4 sm:$0xff]  }
  0xfb   : > { %3652 = vmatpush1.bf16.msra.mxu1 %v5081_v48  ;;  %3583 = vmatprep.subr.bf16.mxu0 %v5086_v49  ;;  %v5155_v48 = vld [vmem:[%s7174_s1 + $0x208] ss:$16 sps:$4 sm:$0xff]   ;;  %v5160_v49 = vld [vmem:[%s7174_s1 + $0x3ec] ss:$16 sps:$4 sm:$0xff]  }
  0xfc   : > { %3653 = vmatprep.subr.bf16.mxu1 %v5089_v52  ;;  %v5163_v52 = vld [vmem:[%s7174_s1 + $0x4ec] ss:$16 sps:$4 sm:$0xff]  }
  0xfe   : > { %3584 = vmatpush2.bf16.msra.mxu0 %v5084_v37  ;;  %v5158_v37 = vld [vmem:[%s7174_s1 + $0x3e8] ss:$16 sps:$4 sm:$0xff]  }
  0xff   : > { %3654 = vmatpush1.bf16.msra.mxu1 %v5087_v60  ;;  %3585 = vmatprep.subr.bf16.mxu0 %v5092_v61  ;;  %v5161_v60 = vld [vmem:[%s7174_s1 + $0x4e8] ss:$16 sps:$4 sm:$0xff]   ;;  %v5166_v61 = vld [vmem:[%s7174_s1 + $0x3cc] ss:$16 sps:$4 sm:$0xff]  }
 0x100   : > { %3655 = vmatprep.subr.bf16.mxu1 %v5095_v0  ;;  %v5169_v0 = vld [vmem:[%s7174_s1 + $0x4cc] ss:$16 sps:$4 sm:$0xff]  }
 0x102   : > { %3586 = vmatpush2.bf16.msra.mxu0 %v5090_v1  ;;  %v5164_v1 = vld [vmem:[%s7174_s1 + $0x3c8] ss:$16 sps:$4 sm:$0xff]  }
 0x103   : > { %3656 = vmatpush1.bf16.msra.mxu1 %v5093_v5  ;;  %3587 = vmatprep.subr.bf16.mxu0 %v5098_v6  ;;  %v5167_v5 = vld [vmem:[%s7174_s1 + $0x4c8] ss:$16 sps:$4 sm:$0xff]   ;;  %v5172_v6 = vld [vmem:[%s7174_s1 + $0x3ac] ss:$16 sps:$4 sm:$0xff]  }
 0x104   : > { %3657 = vmatprep.subr.bf16.mxu1 %v5101_v7  ;;  %v5175_v7 = vld [vmem:[%s7174_s1 + $0x4ac] ss:$16 sps:$4 sm:$0xff]  }
 0x106   : > { %3588 = vmatpush2.bf16.msra.mxu0 %v5096_v8  ;;  %v5170_v8 = vld [vmem:[%s7174_s1 + $0x3a8] ss:$16 sps:$4 sm:$0xff]  }
 0x107   : > { %3658 = vmatpush1.bf16.msra.mxu1 %v5099_v9  ;;  %3589 = vmatprep.subr.bf16.mxu0 %v5104_v10  ;;  %v5178_v9 = vld [vmem:[%s7174_s1 + $0x38c] ss:$16 sps:$4 sm:$0xff]  }
 0x108   : > { %3659 = vmatprep.subr.bf16.mxu1 %v5107_v12  ;;  %v5181_v10 = vld [vmem:[%s7174_s1 + $0x48c] ss:$16 sps:$4 sm:$0xff]  }
 0x109   : > { %v5184_v12 = vld [vmem:[%s7174_s1 + $0x36c] ss:$16 sps:$4 sm:$0xff]  }
 0x10a   : > { %3590 = vmatpush2.bf16.msra.mxu0 %v5102_v13  ;;  %v5187_v13 = vld [vmem:[%s7174_s1 + $0x46c] ss:$16 sps:$4 sm:$0xff]  }
 0x10b   : > { %3660 = vmatpush1.bf16.msra.mxu1 %v5105_v14  ;;  %3688 = vmatprep.subr.bf16.mxu0 %v5115_v38  ;;  %v5182_v14 = vld [vmem:[%s7174_s1 + $0x368] ss:$16 sps:$4 sm:$0xff]   ;;  %v5193_v38 = vld [vmem:[%s7174_s1 + $0x44c] ss:$16 sps:$4 sm:$0xff]  }
 0x10c   : > { %3661 = vmatprep.subr.bf16.mxu1 %v5112_v35  ;;  %v5190_v35 = vld [vmem:[%s7174_s1 + $0x34c] ss:$16 sps:$4 sm:$0xff]  }
 0x10d   : > { %3592 = vmatmul.mubr.bf16.vlgmr.msra.gmra.mxu0 %v6449_v18 }
 0x10e   : > { %3689 = vmatpush1.bf16.msra.mxu0 %v5113_v17  ;;  %3720 = vmatprep.mubr.bf16.mxu0 %v5744_v22  ;;  %v5133_v22 = vld [vmem:[%s7174_s1 + $0x28c] ss:$16 sps:$4 sm:$0xff]   ;;  %v5191_v17 = vld [vmem:[%s7174_s1 + $0x448] ss:$16 sps:$4 sm:$0xff]  }
 0x10f   : > { %3662 = vmatpush2.bf16.msra.mxu1 %v5110_v16  ;;  %3690 = vmatprep.subr.bf16.mxu0 %v5121_v53  ;;  %v5188_v16 = vld [vmem:[%s7174_s1 + $0x348] ss:$16 sps:$4 sm:$0xff]   ;;  %v5199_v53 = vld [vmem:[%s7174_s1 + $0x42c] ss:$16 sps:$4 sm:$0xff]  }
 0x110   : > { %3663 = vmatprep.subr.bf16.mxu1 %v5118_v19  ;;  %v5196_v19 = vld [vmem:[%s7174_s1 + $0x32c] ss:$16 sps:$4 sm:$0xff]  }
 0x112   : > { %3691 = vmatpush1.bf16.msra.mxu0 %v5119_v50  ;;  %v5197_v50 = vld [vmem:[%s7174_s1 + $0x428] ss:$16 sps:$4 sm:$0xff]  }
 0x113   : > { %3664 = vmatpush2.bf16.msra.mxu1 %v5116_v21  ;;  %3692 = vmatprep.subr.bf16.mxu0 %v5127_v24  ;;  %v5194_v21 = vld [vmem:[%s7174_s1 + $0x328] ss:$16 sps:$4 sm:$0xff]   ;;  %v5205_v24 = vld [vmem:[%s7174_s1 + $0x40c] ss:$16 sps:$4 sm:$0xff]  }
 0x114   : > { %3665 = vmatprep.subr.bf16.mxu1 %v5124_v23  ;;  %v5202_v23 = vld [vmem:[%s7174_s1 + $0x30c] ss:$16 sps:$4 sm:$0xff]  }
 0x116   : > { %3693 = vmatpush1.bf16.msra.mxu0 %v5125_v26  ;;  %v5203_v26 = vld [vmem:[%s7174_s1 + $0x408] ss:$16 sps:$4 sm:$0xff]  }
 0x117   : > { %3666 = vmatpush2.bf16.msra.mxu1 %v5122_v25  ;;  %3694 = vmatprep.subr.bf16.mxu0 %v5133_v22  ;;  %v5200_v25 = vld [vmem:[%s7174_s1 + $0x308] ss:$16 sps:$4 sm:$0xff]   ;;  %v5211_v22 = vld [vmem:[%s7174_s1 + $0x6ec] ss:$16 sps:$4 sm:$0xff]  }
 0x118   : > { %3667 = vmatprep.subr.bf16.mxu1 %v5130_v28  ;;  %v5208_v28 = vld [vmem:[%s7174_s1 + $0x5ec] ss:$16 sps:$4 sm:$0xff]  }
 0x11a   : > { %3695 = vmatpush1.bf16.msra.mxu0 %v5131_v54  ;;  %v5209_v54 = vld [vmem:[%s7174_s1 + $0x6e8] ss:$16 sps:$4 sm:$0xff]  }
 0x11b   : > { %3668 = vmatpush2.bf16.msra.mxu1 %v5128_v29  ;;  %3696 = vmatprep.subr.bf16.mxu0 %v5139_v31  ;;  %v5206_v29 = vld [vmem:[%s7174_s1 + $0x5e8] ss:$16 sps:$4 sm:$0xff]   ;;  %v5217_v31 = vld [vmem:[%s7174_s1 + $0x6cc] ss:$16 sps:$4 sm:$0xff]  }
 0x11c   : > { %3669 = vmatprep.subr.bf16.mxu1 %v5136_v30  ;;  %v5214_v30 = vld [vmem:[%s7174_s1 + $0x5cc] ss:$16 sps:$4 sm:$0xff]  }
 0x11e   : > { %3697 = vmatpush1.bf16.msra.mxu0 %v5137_v20  ;;  %v5215_v20 = vld [vmem:[%s7174_s1 + $0x6c8] ss:$16 sps:$4 sm:$0xff]  }
 0x11f   : > { %3670 = vmatpush2.bf16.msra.mxu1 %v5134_v32  ;;  %3698 = vmatprep.subr.bf16.mxu0 %v5145_v55  ;;  %v5212_v32 = vld [vmem:[%s7174_s1 + $0x5c8] ss:$16 sps:$4 sm:$0xff]  }
 0x120   : > { %3671 = vmatprep.subr.bf16.mxu1 %v5142_v47  ;;  %v5220_v47 = vld [vmem:[%s7174_s1 + $0x5ac] ss:$16 sps:$4 sm:$0xff]   ;;  %v5218_v55 = vld [vmem:[%s7174_s1 + $0x5a8] ss:$16 sps:$4 sm:$0xff]  }
 0x122   : > { %3699 = vmatpush1.bf16.msra.mxu0 %v5143_v27  ;;  %v5226_v27 = vld [vmem:[%s7174_s1 + $0x58c] ss:$16 sps:$4 sm:$0xff]  }
 0x123   : > { %3672 = vmatpush2.bf16.msra.mxu1 %v5140_v39  ;;  %3700 = vmatprep.subr.bf16.mxu0 %v5151_v41  ;;  %v5221_v39 = vld [vmem:[%s7174_s1 + $0x6a8] ss:$16 sps:$4 sm:$0xff]  }
 0x124   : > { %3673 = vmatprep.subr.bf16.mxu1 %v5148_v40  ;;  %v5224_v40 = vld [vmem:[%s7174_s1 + $0x588] ss:$16 sps:$4 sm:$0xff]  }
 0x125   : > { %v5227_v41 = vld [vmem:[%s7174_s1 + $0x688] ss:$16 sps:$4 sm:$0xff]  }
 0x126   : > { %3701 = vmatpush1.bf16.msra.mxu0 %v5149_v43  ;;  %v5235_v43 = vld [vmem:[%s7174_s1 + $0x66c] ss:$16 sps:$4 sm:$0xff]  }
 0x127   : > { %3674 = vmatpush2.bf16.msra.mxu1 %v5146_v42  ;;  %3702 = vmatprep.subr.bf16.mxu0 %v5157_v58  ;;  %v5232_v42 = vld [vmem:[%s7174_s1 + $0x56c] ss:$16 sps:$4 sm:$0xff]   ;;  %v5233_v58 = vld [vmem:[%s7174_s1 + $0x668] ss:$16 sps:$4 sm:$0xff]  }
 0x128   : > { %3675 = vmatprep.subr.bf16.mxu1 %v5154_v44  ;;  %v5230_v44 = vld [vmem:[%s7174_s1 + $0x568] ss:$16 sps:$4 sm:$0xff]  }
 0x12a   : > { %3703 = vmatpush1.bf16.msra.mxu0 %v5155_v48  ;;  %v5241_v48 = vld [vmem:[%s7174_s1 + $0x64c] ss:$16 sps:$4 sm:$0xff]  }
 0x12b   : > { %3676 = vmatpush2.bf16.msra.mxu1 %v5152_v45  ;;  %3704 = vmatprep.subr.bf16.mxu0 %v5160_v49  ;;  %v5238_v45 = vld [vmem:[%s7174_s1 + $0x54c] ss:$16 sps:$4 sm:$0xff]   ;;  %v5236_v49 = vld [vmem:[%s7174_s1 + $0x548] ss:$16 sps:$4 sm:$0xff]  }
 0x12c   : > { %3731 = vmatprep.subr.bf16.mxu1 %v5163_v52  ;;  %v5239_v52 = vld [vmem:[%s7174_s1 + $0x648] ss:$16 sps:$4 sm:$0xff]  }
 0x12e   : > { %3678 = vmatmul.mubr.bf16.vlgmr.msra.gmra.mxu1 %v5785_v56  ;;  %3705 = vmatpush2.bf16.msra.mxu0 %v5158_v37  ;;  %v5173_v56 = vld [vmem:[%s7174_s1 + $0x4a8] ss:$16 sps:$4 sm:$0xff]   ;;  %v5244_v37 = vld [vmem:[%s7174_s1 + $0x52c] ss:$16 sps:$4 sm:$0xff]  }
 0x12f   : > { %3732 = vmatpush1.bf16.msra.mxu1 %v5161_v60  ;;  %3706 = vmatprep.subr.bf16.mxu0 %v5166_v61  ;;  %v5247_v60 = vld [vmem:[%s7174_s1 + $0x62c] ss:$16 sps:$4 sm:$0xff]   ;;  %v5242_v61 = vld [vmem:[%s7174_s1 + $0x528] ss:$16 sps:$4 sm:$0xff]  }
 0x130   : > { %3733 = vmatprep.subr.bf16.mxu1 %v5169_v0  ;;  %3763 = vmatprep.mubr.bf16.mxu1 %v5811_v2  ;;  %v5179_v2 = vld [vmem:[%s7174_s1 + $0x488] ss:$16 sps:$4 sm:$0xff]  }
 0x131   : > { %v5245_v0 = vld [vmem:[%s7174_s1 + $0x628] ss:$16 sps:$4 sm:$0xff]  }
 0x132   : > { %3707 = vmatpush2.bf16.msra.mxu0 %v5164_v1  ;;  %v5250_v1 = vld [vmem:[%s7174_s1 + $0x50c] ss:$16 sps:$4 sm:$0xff]  }
 0x133   : > { %3734 = vmatpush1.bf16.msra.mxu1 %v5167_v5  ;;  %3708 = vmatprep.subr.bf16.mxu0 %v5172_v6  ;;  %v5253_v5 = vld [vmem:[%s7174_s1 + $0x60c] ss:$16 sps:$4 sm:$0xff]   ;;  %v5248_v6 = vld [vmem:[%s7174_s1 + $0x508] ss:$16 sps:$4 sm:$0xff]  }
 0x134   : > { %3735 = vmatprep.subr.bf16.mxu1 %v5175_v7  ;;  %v5251_v7 = vld [vmem:[%s7174_s1 + $0x608] ss:$16 sps:$4 sm:$0xff]  }
 0x136   : > { %3709 = vmatpush2.bf16.msra.mxu0 %v5170_v8  ;;  %v5256_v8 = vld [vmem:[%s7174_s1 + $0x7ec] ss:$16 sps:$4 sm:$0xff]  }
 0x137   : > { %3736 = vmatpush1.bf16.msra.mxu1 %v5173_v56  ;;  %3710 = vmatprep.subr.bf16.mxu0 %v5178_v9  ;;  %v5259_v56 = vld [vmem:[%s7174_s1 + $0x8ec] ss:$16 sps:$4 sm:$0xff]   ;;  %v5254_v9 = vld [vmem:[%s7174_s1 + $0x7e8] ss:$16 sps:$4 sm:$0xff]  }
 0x138   : > { %3737 = vmatprep.subr.bf16.mxu1 %v5181_v10  ;;  %v5257_v10 = vld [vmem:[%s7174_s1 + $0x8e8] ss:$16 sps:$4 sm:$0xff]  }
 0x13a   : > { %3711 = vmatpush2.bf16.msra.mxu0 %v5176_v11  ;;  %v5262_v11 = vld [vmem:[%s7174_s1 + $0x7cc] ss:$16 sps:$4 sm:$0xff]  }
 0x13b   : > { %3738 = vmatpush1.bf16.msra.mxu1 %v5179_v2  ;;  %3712 = vmatprep.subr.bf16.mxu0 %v5184_v12  ;;  %v5265_v2 = vld [vmem:[%s7174_s1 + $0x8cc] ss:$16 sps:$4 sm:$0xff]   ;;  %v5260_v12 = vld [vmem:[%s7174_s1 + $0x7c8] ss:$16 sps:$4 sm:$0xff]  }
 0x13c   : > { %3739 = vmatprep.subr.bf16.mxu1 %v5187_v13  ;;  %v5263_v13 = vld [vmem:[%s7174_s1 + $0x8c8] ss:$16 sps:$4 sm:$0xff]  }
 0x13e   : > { %3713 = vmatpush2.bf16.msra.mxu0 %v5182_v14  ;;  %v5268_v14 = vld [vmem:[%s7174_s1 + $0x7ac] ss:$16 sps:$4 sm:$0xff]  }
 0x13f   : > { %3740 = vmatpush1.bf16.msra.mxu1 %v5185_v15  ;;  %3714 = vmatprep.subr.bf16.mxu0 %v5190_v35  ;;  %v5266_v15 = vld [vmem:[%s7174_s1 + $0x7a8] ss:$16 sps:$4 sm:$0xff]  }
 0x140   : > { %3741 = vmatprep.subr.bf16.mxu1 %v5193_v38  ;;  %v5269_v35 = vld [vmem:[%s7174_s1 + $0x8a8] ss:$16 sps:$4 sm:$0xff]   ;;  %v5274_v38 = vld [vmem:[%s7174_s1 + $0x78c] ss:$16 sps:$4 sm:$0xff]  }
 0x142   : > { %3715 = vmatpush2.bf16.msra.mxu0 %v5188_v16  ;;  %v5272_v16 = vld [vmem:[%s7174_s1 + $0x788] ss:$16 sps:$4 sm:$0xff]  }
 0x143   : > { %3742 = vmatpush1.bf16.msra.mxu1 %v5191_v17  ;;  %3716 = vmatprep.subr.bf16.mxu0 %v5196_v19  ;;  %v5275_v17 = vld [vmem:[%s7174_s1 + $0x888] ss:$16 sps:$4 sm:$0xff]   ;;  %v5280_v19 = vld [vmem:[%s7174_s1 + $0x76c] ss:$16 sps:$4 sm:$0xff]  }
 0x144   : > { %3743 = vmatprep.subr.bf16.mxu1 %v5199_v53  ;;  %v5283_v53 = vld [vmem:[%s7174_s1 + $0x86c] ss:$16 sps:$4 sm:$0xff]  }
 0x146   : > { %3717 = vmatpush2.bf16.msra.mxu0 %v5194_v21  ;;  %v5278_v21 = vld [vmem:[%s7174_s1 + $0x768] ss:$16 sps:$4 sm:$0xff]  }
 0x147   : > { %3744 = vmatpush1.bf16.msra.mxu1 %v5197_v50  ;;  %3718 = vmatprep.subr.bf16.mxu0 %v5202_v23  ;;  %v5281_v50 = vld [vmem:[%s7174_s1 + $0x868] ss:$16 sps:$4 sm:$0xff]   ;;  %v5286_v23 = vld [vmem:[%s7174_s1 + $0x74c] ss:$16 sps:$4 sm:$0xff]  }
 0x148   : > { %3745 = vmatprep.subr.bf16.mxu1 %v5205_v24  ;;  %v5289_v24 = vld [vmem:[%s7174_s1 + $0x84c] ss:$16 sps:$4 sm:$0xff]  }
 0x14a   : > { %3719 = vmatpush2.bf16.msra.mxu0 %v5200_v25  ;;  %v5284_v25 = vld [vmem:[%s7174_s1 + $0x748] ss:$16 sps:$4 sm:$0xff]  }
 0x14b   : > { %3746 = vmatpush1.bf16.msra.mxu1 %v5203_v26  ;;  %3774 = vmatprep.subr.bf16.mxu0 %v5211_v22  ;;  %v5287_v26 = vld [vmem:[%s7174_s1 + $0x848] ss:$16 sps:$4 sm:$0xff]   ;;  %v5295_v22 = vld [vmem:[%s7174_s1 + $0x82c] ss:$16 sps:$4 sm:$0xff]  }
 0x14c   : > { %3747 = vmatprep.subr.bf16.mxu1 %v5208_v28  ;;  %v5292_v28 = vld [vmem:[%s7174_s1 + $0x72c] ss:$16 sps:$4 sm:$0xff]  }
 0x14d   : > { %3721 = vmatmul.mubr.bf16.vlgmr.msra.gmra.mxu0 %v5788_v57  ;;  %v5223_v57 = vld [vmem:[%s7174_s1 + $0x6ac] ss:$16 sps:$4 sm:$0xff]  }
 0x14e   : > { %3775 = vmatpush1.bf16.msra.mxu0 %v5209_v54  ;;  %3806 = vmatprep.mubr.bf16.mxu0 %v5815_v3  ;;  %v5229_v3 = vld [vmem:[%s7174_s1 + $0x68c] ss:$16 sps:$4 sm:$0xff]   ;;  %v5293_v54 = vld [vmem:[%s7174_s1 + $0x828] ss:$16 sps:$4 sm:$0xff]  }
 0x14f   : > { %3748 = vmatpush2.bf16.msra.mxu1 %v5206_v29  ;;  %3776 = vmatprep.subr.bf16.mxu0 %v5217_v31  ;;  %v5290_v29 = vld [vmem:[%s7174_s1 + $0x728] ss:$16 sps:$4 sm:$0xff]   ;;  %v5301_v31 = vld [vmem:[%s7174_s1 + $0x80c] ss:$16 sps:$4 sm:$0xff]  }
 0x150   : > { %3749 = vmatprep.subr.bf16.mxu1 %v5214_v30  ;;  %v5298_v30 = vld [vmem:[%s7174_s1 + $0x70c] ss:$16 sps:$4 sm:$0xff]  }
 0x152   : > { %3777 = vmatpush1.bf16.msra.mxu0 %v5215_v20  ;;  %v5299_v20 = vld [vmem:[%s7174_s1 + $0x808] ss:$16 sps:$4 sm:$0xff]  }
 0x153   : > { %3750 = vmatpush2.bf16.msra.mxu1 %v5212_v32  ;;  %3778 = vmatprep.subr.bf16.mxu0 %v5223_v57  ;;  %v5296_v32 = vld [vmem:[%s7174_s1 + $0x708] ss:$16 sps:$4 sm:$0xff]   ;;  %v5307_v57 = vld [vmem:[%s7174_s1 + $0xaec] ss:$16 sps:$4 sm:$0xff]  }
 0x154   : > { %3751 = vmatprep.subr.bf16.mxu1 %v5220_v47  ;;  %v5304_v47 = vld [vmem:[%s7174_s1 + $0x9ec] ss:$16 sps:$4 sm:$0xff]  }
 0x156   : > { %3779 = vmatpush1.bf16.msra.mxu0 %v5221_v39  ;;  %v5305_v39 = vld [vmem:[%s7174_s1 + $0xae8] ss:$16 sps:$4 sm:$0xff]  }
 0x157   : > { %3752 = vmatpush2.bf16.msra.mxu1 %v5218_v55  ;;  %3780 = vmatprep.subr.bf16.mxu0 %v5229_v3  ;;  %v5302_v55 = vld [vmem:[%s7174_s1 + $0x9e8] ss:$16 sps:$4 sm:$0xff]   ;;  %v5313_v3 = vld [vmem:[%s7174_s1 + $0xacc] ss:$16 sps:$4 sm:$0xff]  }
 0x158   : > { %3753 = vmatprep.subr.bf16.mxu1 %v5226_v27  ;;  %v5310_v27 = vld [vmem:[%s7174_s1 + $0x9cc] ss:$16 sps:$4 sm:$0xff]  }
 0x15a   : > { %3781 = vmatpush1.bf16.msra.mxu0 %v5227_v41  ;;  %v5311_v41 = vld [vmem:[%s7174_s1 + $0xac8] ss:$16 sps:$4 sm:$0xff]  }
 0x15b   : > { %3754 = vmatpush2.bf16.msra.mxu1 %v5224_v40  ;;  %3782 = vmatprep.subr.bf16.mxu0 %v5235_v43  ;;  %v5308_v40 = vld [vmem:[%s7174_s1 + $0x9c8] ss:$16 sps:$4 sm:$0xff]  }
 0x15c   : > { %3755 = vmatprep.subr.bf16.mxu1 %v5232_v42  ;;  %v5316_v42 = vld [vmem:[%s7174_s1 + $0x9ac] ss:$16 sps:$4 sm:$0xff]   ;;  %v5314_v43 = vld [vmem:[%s7174_s1 + $0x9a8] ss:$16 sps:$4 sm:$0xff]  }
 0x15e   : > { %3783 = vmatpush1.bf16.msra.mxu0 %v5233_v58  ;;  %v5322_v58 = vld [vmem:[%s7174_s1 + $0x98c] ss:$16 sps:$4 sm:$0xff]  }
 0x15f   : > { %3756 = vmatpush2.bf16.msra.mxu1 %v5230_v44  ;;  %3784 = vmatprep.subr.bf16.mxu0 %v5241_v48  ;;  %v5317_v44 = vld [vmem:[%s7174_s1 + $0xaa8] ss:$16 sps:$4 sm:$0xff]  }
 0x160   : > { %3757 = vmatprep.subr.bf16.mxu1 %v5238_v45  ;;  %v5320_v45 = vld [vmem:[%s7174_s1 + $0x988] ss:$16 sps:$4 sm:$0xff]  }
 0x161   : > { %v5323_v48 = vld [vmem:[%s7174_s1 + $0xa88] ss:$16 sps:$4 sm:$0xff]  }
 0x162   : > { %3785 = vmatpush1.bf16.msra.mxu0 %v5239_v52  ;;  %v5331_v52 = vld [vmem:[%s7174_s1 + $0xa6c] ss:$16 sps:$4 sm:$0xff]  }
 0x163   : > { %3758 = vmatpush2.bf16.msra.mxu1 %v5236_v49  ;;  %3786 = vmatprep.subr.bf16.mxu0 %v5247_v60  ;;  %v5328_v49 = vld [vmem:[%s7174_s1 + $0x96c] ss:$16 sps:$4 sm:$0xff]   ;;  %v5329_v60 = vld [vmem:[%s7174_s1 + $0xa68] ss:$16 sps:$4 sm:$0xff]  }
 0x164   : > { %3759 = vmatprep.subr.bf16.mxu1 %v5244_v37  ;;  %v5326_v37 = vld [vmem:[%s7174_s1 + $0x968] ss:$16 sps:$4 sm:$0xff]  }
 0x166   : > { %3787 = vmatpush1.bf16.msra.mxu0 %v5245_v0  ;;  %v5337_v0 = vld [vmem:[%s7174_s1 + $0xa4c] ss:$16 sps:$4 sm:$0xff]  }
 0x167   : > { %3760 = vmatpush2.bf16.msra.mxu1 %v5242_v61  ;;  %3788 = vmatprep.subr.bf16.mxu0 %v5253_v5  ;;  %v5334_v61 = vld [vmem:[%s7174_s1 + $0x94c] ss:$16 sps:$4 sm:$0xff]   ;;  %v5335_v5 = vld [vmem:[%s7174_s1 + $0xa48] ss:$16 sps:$4 sm:$0xff]  }
 0x168   : > { %3761 = vmatprep.subr.bf16.mxu1 %v5250_v1  ;;  %v5332_v1 = vld [vmem:[%s7174_s1 + $0x948] ss:$16 sps:$4 sm:$0xff]  }
 0x16a   : > { %3789 = vmatpush1.bf16.msra.mxu0 %v5251_v7  ;;  %v5343_v7 = vld [vmem:[%s7174_s1 + $0xa2c] ss:$16 sps:$4 sm:$0xff]  }
 0x16b   : > { %3762 = vmatpush2.bf16.msra.mxu1 %v5248_v6  ;;  %3790 = vmatprep.subr.bf16.mxu0 %v5256_v8  ;;  %v5340_v6 = vld [vmem:[%s7174_s1 + $0x92c] ss:$16 sps:$4 sm:$0xff]   ;;  %v5338_v8 = vld [vmem:[%s7174_s1 + $0x928] ss:$16 sps:$4 sm:$0xff]  }
 0x16c   : > { %3817 = vmatprep.subr.bf16.mxu1 %v5259_v56  ;;  %v5341_v56 = vld [vmem:[%s7174_s1 + $0xa28] ss:$16 sps:$4 sm:$0xff]  }
 0x16e   : > { %3764 = vmatmul.mubr.bf16.vlgmr.msra.gmra.mxu1 %v6005_v51  ;;  %3791 = vmatpush2.bf16.msra.mxu0 %v5254_v9  ;;  %v5271_v51 = vld [vmem:[%s7174_s1 + $0x8ac] ss:$16 sps:$4 sm:$0xff]  }
 0x16f   : > { %3818 = vmatpush1.bf16.msra.mxu1 %v5257_v10  ;;  %3792 = vmatprep.subr.bf16.mxu0 %v5262_v11  ;;  %v5346_v9 = vld [vmem:[%s7174_s1 + $0x90c] ss:$16 sps:$4 sm:$0xff]   ;;  %v5344_v11 = vld [vmem:[%s7174_s1 + $0x908] ss:$16 sps:$4 sm:$0xff]  }
 0x170   : > { %3819 = vmatprep.subr.bf16.mxu1 %v5265_v2  ;;  %3849 = vmatprep.mubr.bf16.mxu1 %v6054_v33  ;;  %v5277_v33 = vld [vmem:[%s7174_s1 + $0x88c] ss:$16 sps:$4 sm:$0xff]   ;;  %v5347_v2 = vld [vmem:[%s7174_s1 + $0xa08] ss:$16 sps:$4 sm:$0xff]  }
 0x171   : > { %v5349_v10 = vld [vmem:[%s7174_s1 + $0xa0c] ss:$16 sps:$4 sm:$0xff]  }
 0x172   : > { %3793 = vmatpush2.bf16.msra.mxu0 %v5260_v12  ;;  %v5352_v12 = vld [vmem:[%s7174_s1 + $0xbec] ss:$16 sps:$4 sm:$0xff]  }
 0x173   : > { %3820 = vmatpush1.bf16.msra.mxu1 %v5263_v13  ;;  %3794 = vmatprep.subr.bf16.mxu0 %v5268_v14  ;;  %v5355_v13 = vld [vmem:[%s7174_s1 + $0xcec] ss:$16 sps:$4 sm:$0xff]   ;;  %v5350_v14 = vld [vmem:[%s7174_s1 + $0xbe8] ss:$16 sps:$4 sm:$0xff]  }
 0x174   : > { %3821 = vmatprep.subr.bf16.mxu1 %v5271_v51  ;;  %v5353_v51 = vld [vmem:[%s7174_s1 + $0xce8] ss:$16 sps:$4 sm:$0xff]  }
 0x176   : > { %3795 = vmatpush2.bf16.msra.mxu0 %v5266_v15  ;;  %v5358_v15 = vld [vmem:[%s7174_s1 + $0xbcc] ss:$16 sps:$4 sm:$0xff]  }
 0x177   : > { %3822 = vmatpush1.bf16.msra.mxu1 %v5269_v35  ;;  %3796 = vmatprep.subr.bf16.mxu0 %v5274_v38  ;;  %v5361_v35 = vld [vmem:[%s7174_s1 + $0xccc] ss:$16 sps:$4 sm:$0xff]   ;;  %v5356_v38 = vld [vmem:[%s7174_s1 + $0xbc8] ss:$16 sps:$4 sm:$0xff]  }
 0x178   : > { %3823 = vmatprep.subr.bf16.mxu1 %v5277_v33  ;;  %v5359_v33 = vld [vmem:[%s7174_s1 + $0xcc8] ss:$16 sps:$4 sm:$0xff]  }
 0x17a   : > { %3797 = vmatpush2.bf16.msra.mxu0 %v5272_v16  ;;  %v5364_v16 = vld [vmem:[%s7174_s1 + $0xbac] ss:$16 sps:$4 sm:$0xff]  }
 0x17b   : > { %3824 = vmatpush1.bf16.msra.mxu1 %v5275_v17  ;;  %3798 = vmatprep.subr.bf16.mxu0 %v5280_v19  ;;  %v5362_v17 = vld [vmem:[%s7174_s1 + $0xba8] ss:$16 sps:$4 sm:$0xff]  }
 0x17c   : > { %3825 = vmatprep.subr.bf16.mxu1 %v5283_v53  ;;  %v5365_v19 = vld [vmem:[%s7174_s1 + $0xca8] ss:$16 sps:$4 sm:$0xff]   ;;  %v5370_v53 = vld [vmem:[%s7174_s1 + $0xb8c] ss:$16 sps:$4 sm:$0xff]  }
 0x17e   : > { %3799 = vmatpush2.bf16.msra.mxu0 %v5278_v21  ;;  %v5368_v21 = vld [vmem:[%s7174_s1 + $0xb88] ss:$16 sps:$4 sm:$0xff]  }
 0x17f   : > { %3826 = vmatpush1.bf16.msra.mxu1 %v5281_v50  ;;  %3800 = vmatprep.subr.bf16.mxu0 %v5286_v23  ;;  %v5371_v50 = vld [vmem:[%s7174_s1 + $0xc88] ss:$16 sps:$4 sm:$0xff]   ;;  %v5376_v23 = vld [vmem:[%s7174_s1 + $0xb6c] ss:$16 sps:$4 sm:$0xff]  }
 0x180   : > { %3827 = vmatprep.subr.bf16.mxu1 %v5289_v24  ;;  %v5379_v24 = vld [vmem:[%s7174_s1 + $0xc6c] ss:$16 sps:$4 sm:$0xff]  }
 0x182   : > { %3801 = vmatpush2.bf16.msra.mxu0 %v5284_v25  ;;  %v5374_v25 = vld [vmem:[%s7174_s1 + $0xb68] ss:$16 sps:$4 sm:$0xff]  }
 0x183   : > { %3828 = vmatpush1.bf16.msra.mxu1 %v5287_v26  ;;  %3802 = vmatprep.subr.bf16.mxu0 %v5292_v28  ;;  %v5377_v26 = vld [vmem:[%s7174_s1 + $0xc68] ss:$16 sps:$4 sm:$0xff]   ;;  %v5382_v28 = vld [vmem:[%s7174_s1 + $0xb4c] ss:$16 sps:$4 sm:$0xff]  }
 0x184   : > { %3829 = vmatprep.subr.bf16.mxu1 %v5295_v22  ;;  %v5385_v22 = vld [vmem:[%s7174_s1 + $0xc4c] ss:$16 sps:$4 sm:$0xff]  }
 0x186   : > { %3803 = vmatpush2.bf16.msra.mxu0 %v5290_v29  ;;  %v5380_v29 = vld [vmem:[%s7174_s1 + $0xb48] ss:$16 sps:$4 sm:$0xff]  }
 0x187   : > { %3830 = vmatpush1.bf16.msra.mxu1 %v5293_v54  ;;  %3804 = vmatprep.subr.bf16.mxu0 %v5298_v30  ;;  %v5383_v54 = vld [vmem:[%s7174_s1 + $0xc48] ss:$16 sps:$4 sm:$0xff]   ;;  %v5388_v30 = vld [vmem:[%s7174_s1 + $0xb2c] ss:$16 sps:$4 sm:$0xff]  }
 0x188   : > { %3831 = vmatprep.subr.bf16.mxu1 %v5301_v31  ;;  %v5391_v31 = vld [vmem:[%s7174_s1 + $0xc2c] ss:$16 sps:$4 sm:$0xff]  }
 0x18a   : > { %3805 = vmatpush2.bf16.msra.mxu0 %v5296_v32  ;;  %v5386_v32 = vld [vmem:[%s7174_s1 + $0xb28] ss:$16 sps:$4 sm:$0xff]  }
 0x18b   : > { %3832 = vmatpush1.bf16.msra.mxu1 %v5299_v20  ;;  %3860 = vmatprep.subr.bf16.mxu0 %v5307_v57  ;;  %v5389_v20 = vld [vmem:[%s7174_s1 + $0xc28] ss:$16 sps:$4 sm:$0xff]   ;;  %v5397_v57 = vld [vmem:[%s7174_s1 + $0xc0c] ss:$16 sps:$4 sm:$0xff]  }
 0x18c   : > { %3833 = vmatprep.subr.bf16.mxu1 %v5304_v47  ;;  %v5394_v47 = vld [vmem:[%s7174_s1 + $0xb0c] ss:$16 sps:$4 sm:$0xff]  }
 0x18d   : > { %3807 = vmatmul.mubr.bf16.vlgmr.msra.gmra.mxu0 %v5800_v63  ;;  %v5319_v63 = vld [vmem:[%s7174_s1 + $0xaac] ss:$16 sps:$4 sm:$0xff]  }
 0x18e   : > { %3861 = vmatpush1.bf16.msra.mxu0 %v5305_v39  ;;  %3892 = vmatprep.mubr.bf16.mxu0 %v6059_v34  ;;  %v5325_v34 = vld [vmem:[%s7174_s1 + $0xa8c] ss:$16 sps:$4 sm:$0xff]   ;;  %v5395_v39 = vld [vmem:[%s7174_s1 + $0xc08] ss:$16 sps:$4 sm:$0xff]  }
 0x18f   : > { %3834 = vmatpush2.bf16.msra.mxu1 %v5302_v55  ;;  %3862 = vmatprep.subr.bf16.mxu0 %v5313_v3  ;;  %v5392_v55 = vld [vmem:[%s7174_s1 + $0xb08] ss:$16 sps:$4 sm:$0xff]   ;;  %v5403_v3 = vld [vmem:[%s7174_s1 + $0xeec] ss:$16 sps:$4 sm:$0xff]  }
 0x190   : > { %3835 = vmatprep.subr.bf16.mxu1 %v5310_v27  ;;  %v5400_v27 = vld [vmem:[%s7174_s1 + $0xdec] ss:$16 sps:$4 sm:$0xff]  }
 0x192   : > { %3863 = vmatpush1.bf16.msra.mxu0 %v5311_v41  ;;  %v5401_v41 = vld [vmem:[%s7174_s1 + $0xee8] ss:$16 sps:$4 sm:$0xff]  }
 0x193   : > { %3836 = vmatpush2.bf16.msra.mxu1 %v5308_v40  ;;  %3864 = vmatprep.subr.bf16.mxu0 %v5319_v63  ;;  %v5398_v40 = vld [vmem:[%s7174_s1 + $0xde8] ss:$16 sps:$4 sm:$0xff]   ;;  %v5409_v63 = vld [vmem:[%s7174_s1 + $0xecc] ss:$16 sps:$4 sm:$0xff]  }
 0x194   : > { %3837 = vmatprep.subr.bf16.mxu1 %v5316_v42  ;;  %v5406_v42 = vld [vmem:[%s7174_s1 + $0xdcc] ss:$16 sps:$4 sm:$0xff]  }
 0x196   : > { %3865 = vmatpush1.bf16.msra.mxu0 %v5317_v44  ;;  %v5407_v44 = vld [vmem:[%s7174_s1 + $0xec8] ss:$16 sps:$4 sm:$0xff]  }
 0x197   : > { %3838 = vmatpush2.bf16.msra.mxu1 %v5314_v43  ;;  %3866 = vmatprep.subr.bf16.mxu0 %v5325_v34  ;;  %v5404_v43 = vld [vmem:[%s7174_s1 + $0xdc8] ss:$16 sps:$4 sm:$0xff]  }
 0x198   : > { %3839 = vmatprep.subr.bf16.mxu1 %v5322_v58  ;;  %v5412_v58 = vld [vmem:[%s7174_s1 + $0xdac] ss:$16 sps:$4 sm:$0xff]   ;;  %v5410_v34 = vld [vmem:[%s7174_s1 + $0xda8] ss:$16 sps:$4 sm:$0xff]  }
 0x19a   : > { %3867 = vmatpush1.bf16.msra.mxu0 %v5323_v48  ;;  %v5418_v48 = vld [vmem:[%s7174_s1 + $0xd8c] ss:$16 sps:$4 sm:$0xff]  }
 0x19b   : > { %3840 = vmatpush2.bf16.msra.mxu1 %v5320_v45  ;;  %3868 = vmatprep.subr.bf16.mxu0 %v5331_v52  ;;  %v5413_v45 = vld [vmem:[%s7174_s1 + $0xea8] ss:$16 sps:$4 sm:$0xff]  }
 0x19c   : > { %3841 = vmatprep.subr.bf16.mxu1 %v5328_v49  ;;  %v5416_v49 = vld [vmem:[%s7174_s1 + $0xd88] ss:$16 sps:$4 sm:$0xff]  }
 0x19d   : > { %v5419_v52 = vld [vmem:[%s7174_s1 + $0xe88] ss:$16 sps:$4 sm:$0xff]  }
 0x19e   : > { %3869 = vmatpush1.bf16.msra.mxu0 %v5329_v60  ;;  %v5427_v60 = vld [vmem:[%s7174_s1 + $0xe6c] ss:$16 sps:$4 sm:$0xff]  }
 0x19f   : > { %3842 = vmatpush2.bf16.msra.mxu1 %v5326_v37  ;;  %3870 = vmatprep.subr.bf16.mxu0 %v5337_v0  ;;  %v5424_v37 = vld [vmem:[%s7174_s1 + $0xd6c] ss:$16 sps:$4 sm:$0xff]   ;;  %v5425_v0 = vld [vmem:[%s7174_s1 + $0xe68] ss:$16 sps:$4 sm:$0xff]  }
 0x1a0   : > { %3843 = vmatprep.subr.bf16.mxu1 %v5334_v61  ;;  %v5422_v61 = vld [vmem:[%s7174_s1 + $0xd68] ss:$16 sps:$4 sm:$0xff]  }
 0x1a2   : > { %3871 = vmatpush1.bf16.msra.mxu0 %v5335_v5  ;;  %v5433_v5 = vld [vmem:[%s7174_s1 + $0xe4c] ss:$16 sps:$4 sm:$0xff]  }
 0x1a3   : > { %3844 = vmatpush2.bf16.msra.mxu1 %v5332_v1  ;;  %3872 = vmatprep.subr.bf16.mxu0 %v5343_v7  ;;  %v5430_v1 = vld [vmem:[%s7174_s1 + $0xd4c] ss:$16 sps:$4 sm:$0xff]   ;;  %v5431_v7 = vld [vmem:[%s7174_s1 + $0xe48] ss:$16 sps:$4 sm:$0xff]  }
 0x1a4   : > { %3845 = vmatprep.subr.bf16.mxu1 %v5340_v6  ;;  %v5428_v6 = vld [vmem:[%s7174_s1 + $0xd48] ss:$16 sps:$4 sm:$0xff]  }
 0x1a6   : > { %3873 = vmatpush1.bf16.msra.mxu0 %v5341_v56  ;;  %v5439_v56 = vld [vmem:[%s7174_s1 + $0xe2c] ss:$16 sps:$4 sm:$0xff]  }
 0x1a7   : > { %3846 = vmatpush2.bf16.msra.mxu1 %v5338_v8  ;;  %3874 = vmatprep.subr.bf16.mxu0 %v5349_v10  ;;  %v5436_v8 = vld [vmem:[%s7174_s1 + $0xd2c] ss:$16 sps:$4 sm:$0xff]   ;;  %v5437_v10 = vld [vmem:[%s7174_s1 + $0xe28] ss:$16 sps:$4 sm:$0xff]  }
 0x1a8   : > { %3847 = vmatprep.subr.bf16.mxu1 %v5346_v9  ;;  %v5434_v9 = vld [vmem:[%s7174_s1 + $0xd28] ss:$16 sps:$4 sm:$0xff]  }
 0x1aa   : > { %3875 = vmatpush1.bf16.msra.mxu0 %v5347_v2  ;;  %v5445_v2 = vld [vmem:[%s7174_s1 + $0xe0c] ss:$16 sps:$4 sm:$0xff]  }
 0x1ab   : > { %3848 = vmatpush2.bf16.msra.mxu1 %v5344_v11  ;;  %3876 = vmatprep.subr.bf16.mxu0 %v5352_v12  ;;  %v5442_v11 = vld [vmem:[%s7174_s1 + $0xd0c] ss:$16 sps:$4 sm:$0xff]   ;;  %v5440_v12 = vld [vmem:[%s7174_s1 + $0xd08] ss:$16 sps:$4 sm:$0xff]  }
 0x1ac   : > { %3903 = vmatprep.subr.bf16.mxu1 %v5355_v13  ;;  %v5443_v13 = vld [vmem:[%s7174_s1 + $0xe08] ss:$16 sps:$4 sm:$0xff]  }
 0x1ae   : > { %3850 = vmatmul.mubr.bf16.vlgmr.msra.gmra.mxu1 %v5818_v4  ;;  %3877 = vmatpush2.bf16.msra.mxu0 %v5350_v14  ;;  %v5367_v4 = vld [vmem:[%s7174_s1 + $0xcac] ss:$16 sps:$4 sm:$0xff]   ;;  %v3335_v14 = vpop.f32.mrf.mxu0 }
 0x1af   : > { %3904 = vmatpush1.bf16.msra.mxu1 %v5353_v51  ;;  %3878 = vmatprep.subr.bf16.mxu0 %v5358_v15  ;;  %v3378_v51 = vpop.f32.mrf.mxu1 }
 0x1b0   : > { %3905 = vmatprep.subr.bf16.mxu1 %v5361_v35  ;;  %3935 = vmatprep.mubr.bf16.mxu1 %v6253_v59  ;;  %v5373_v59 = vld [vmem:[%s7174_s1 + $0xc8c] ss:$16 sps:$4 sm:$0xff]   ;;  %v3337_v15 = vpop.f32.mrf.mxu0 }
 0x1b1   : > { %v3380_v35 = vpop.f32.mrf.mxu1 }
 0x1b2   : > { %3879 = vmatpush2.bf16.msra.mxu0 %v5356_v38  ;;  %v3339_v38 = vpop.f32.mrf.mxu0 }
 0x1b3   : > { %3906 = vmatpush1.bf16.msra.mxu1 %v5359_v33  ;;  %3880 = vmatprep.subr.bf16.mxu0 %v5364_v16  ;;  %v3382_v33 = vpop.f32.mrf.mxu1 }
 0x1b4   : > { %3907 = vmatprep.subr.bf16.mxu1 %v5367_v4  ;;  %v3341_v16 = vpop.f32.mrf.mxu0 }
 0x1b5   : > { %v3384_v4 = vpop.f32.mrf.mxu1 }
 0x1b6   : > { %3881 = vmatpush2.bf16.msra.mxu0 %v5362_v17  ;;  %v3421_v17 = vpop.f32.mrf.mxu0 }
 0x1b7   : > { %3908 = vmatpush1.bf16.msra.mxu1 %v5365_v19  ;;  %3882 = vmatprep.subr.bf16.mxu0 %v5370_v53  ;;  %v3464_v19 = vpop.f32.mrf.mxu1 }
 0x1b8   : > { %3909 = vmatprep.subr.bf16.mxu1 %v5373_v59  ;;  %v3423_v53 = vpop.f32.mrf.mxu0 }
 0x1b9   : > { %v3466_v59 = vpop.f32.mrf.mxu1 }
 0x1ba   : > { %3883 = vmatpush2.bf16.msra.mxu0 %v5368_v21  ;;  %v3425_v21 = vpop.f32.mrf.mxu0 }
 0x1bb   : > { %3910 = vmatpush1.bf16.msra.mxu1 %v5371_v50  ;;  %3884 = vmatprep.subr.bf16.mxu0 %v5376_v23  ;;  %v3468_v50 = vpop.f32.mrf.mxu1 }
 0x1bc   : > { %3911 = vmatprep.subr.bf16.mxu1 %v5379_v24  ;;  %v3427_v23 = vpop.f32.mrf.mxu0 }
 0x1bd   : > { %v3470_v24 = vpop.f32.mrf.mxu1 }
 0x1be   : > { %3885 = vmatpush2.bf16.msra.mxu0 %v5374_v25  ;;  %v3507_v25 = vpop.f32.mrf.mxu0 }
 0x1bf   : > { %3912 = vmatpush1.bf16.msra.mxu1 %v5377_v26  ;;  %3886 = vmatprep.subr.bf16.mxu0 %v5382_v28 }
 0x1c0   : > { %3913 = vmatprep.subr.bf16.mxu1 %v5385_v22  ;;  %v3509_v26 = vpop.f32.mrf.mxu0 }
 0x1c2   : > { %3887 = vmatpush2.bf16.msra.mxu0 %v5380_v29  ;;  %v3511_v28 = vpop.f32.mrf.mxu0 }
 0x1c3   : > { %3914 = vmatpush1.bf16.msra.mxu1 %v5383_v54  ;;  %3888 = vmatprep.subr.bf16.mxu0 %v5388_v30 }
 0x1c4   : > { %3915 = vmatprep.subr.bf16.mxu1 %v5391_v31  ;;  %v3513_v29 = vpop.f32.mrf.mxu0 }
 0x1c6   : > { %3889 = vmatpush2.bf16.msra.mxu0 %v5386_v32 }
 0x1c7   : > { %3916 = vmatpush1.bf16.msra.mxu1 %v5389_v20  ;;  %3890 = vmatprep.subr.bf16.mxu0 %v5394_v47 }
 0x1c8   : > { %3917 = vmatprep.subr.bf16.mxu1 %v5397_v57 }
 0x1ca   : > { %3891 = vmatpush2.bf16.msra.mxu0 %v5392_v55 }
 0x1cb   : > { %3918 = vmatpush1.bf16.msra.mxu1 %v5395_v39  ;;  %3946 = vmatprep.subr.bf16.mxu0 %v5403_v3 }
 0x1cc   : > { %3919 = vmatprep.subr.bf16.mxu1 %v5400_v27 }
 0x1cd   : > { %3893 = vmatmul.mubr.bf16.vlgmr.msra.gmra.mxu0 %v6236_v46  ;;  %v5415_v46 = vld [vmem:[%s7174_s1 + $0xeac] ss:$16 sps:$4 sm:$0xff]   ;;  %v7131_v31 = vpop.f32.mrf.mxu0 }
 0x1ce   : > { %3947 = vmatpush1.bf16.msra.mxu0 %v5401_v41  ;;  %3978 = vmatprep.mubr.bf16.mxu0 %v5473_v62  ;;  %v5421_v62 = vld [vmem:[%s7174_s1 + $0xe8c] ss:$16 sps:$4 sm:$0xff]  }
 0x1cf   : > { %3920 = vmatpush2.bf16.msra.mxu1 %v5398_v40  ;;  %3948 = vmatprep.subr.bf16.mxu0 %v5409_v63  ;;  %v7135_v20 = vpop.f32.mrf.mxu0 }
 0x1d0   : > { %3921 = vmatprep.subr.bf16.mxu1 %v5406_v42 }
 0x1d1   : > { %v3597_v57 = vpop.f32.mrf.mxu0 }
 0x1d2   : > { %3949 = vmatpush1.bf16.msra.mxu0 %v5407_v44 }
 0x1d3   : > { %3922 = vmatpush2.bf16.msra.mxu1 %v5404_v43  ;;  %3950 = vmatprep.subr.bf16.mxu0 %v5415_v46  ;;  %v3599_v39 = vpop.f32.mrf.mxu0 }
 0x1d4   : > { %3923 = vmatprep.subr.bf16.mxu1 %v5412_v58 }
 0x1d6   : > { %3951 = vmatpush1.bf16.msra.mxu0 %v5413_v45 }
 0x1d7   : > { %3924 = vmatpush2.bf16.msra.mxu1 %v5410_v34  ;;  %3952 = vmatprep.subr.bf16.mxu0 %v5421_v62 }
 0x1d8   : > { %3925 = vmatprep.subr.bf16.mxu1 %v5418_v48 }
 0x1da   : > { %3953 = vmatpush1.bf16.msra.mxu0 %v5419_v52  ;;  %v3385_v52 = vadd.f32 %v3384_v4, %v3341_v16 }
 0x1db   : > { %3926 = vmatpush2.bf16.msra.mxu1 %v5416_v49  ;;  %3954 = vmatprep.subr.bf16.mxu0 %v5427_v60  ;;  %v3383_v49 = vadd.f32 %v3382_v33, %v3339_v38  ;;  %v3381_v60 = vadd.f32 %v3380_v35, %v3337_v15 }
 0x1dc   : > { %3927 = vmatprep.subr.bf16.mxu1 %v5424_v37  ;;  %v3379_v37 = vadd.f32 %v3378_v51, %v3335_v14 }
 0x1de   : > { %3955 = vmatpush1.bf16.msra.mxu0 %v5425_v0  ;;  %v3428_v0 = vadd.f32 %v3427_v23, %v3385_v52 }
 0x1df   : > { %3928 = vmatpush2.bf16.msra.mxu1 %v5422_v61  ;;  %3956 = vmatprep.subr.bf16.mxu0 %v5433_v5  ;;  %v3426_v61 = vadd.f32 %v3425_v21, %v3383_v49 }
 0x1e0   : > { %3929 = vmatprep.subr.bf16.mxu1 %v5430_v1 }
 0x1e2   : > { %3957 = vmatpush1.bf16.msra.mxu0 %v5431_v7  ;;  %v3424_v7 = vadd.f32 %v3423_v53, %v3381_v60 }
 0x1e3   : > { %3930 = vmatpush2.bf16.msra.mxu1 %v5428_v6  ;;  %3958 = vmatprep.subr.bf16.mxu0 %v5439_v56  ;;  %v3422_v6 = vadd.f32 %v3421_v17, %v3379_v37 }
 0x1e4   : > { %3931 = vmatprep.subr.bf16.mxu1 %v5436_v8  ;;  %v3991_v8 = vlaneseq }
 0x1e6   : > { %3959 = vmatpush1.bf16.msra.mxu0 %v5437_v10  ;;  %v3469_v10 = vadd.f32 %v3468_v50, %v3426_v61 }
 0x1e7   : > { %3932 = vmatpush2.bf16.msra.mxu1 %v5434_v9  ;;  %3960 = vmatprep.subr.bf16.mxu0 %v5445_v2  ;;  %v3465_v2 = vadd.f32 %v3464_v19, %v3422_v6 }
 0x1e8   : > { %3933 = vmatprep.subr.bf16.mxu1 %v5442_v11  ;;  %v3471_v11 = vadd.f32 %v3470_v24, %v3428_v0 }
 0x1e9   : > { %v3508_v51 = vadd.f32 %v3507_v25, %v3465_v2 }
 0x1ea   : > { %3961 = vmatpush1.bf16.msra.mxu0 %v5443_v13  ;;  %v3512_v13 = vadd.f32 %v3511_v28, %v3469_v10 }
 0x1eb   : > { %3934 = vmatpush2.bf16.msra.mxu1 %v5440_v12  ;;  %v3467_v12 = vadd.f32 %v3466_v59, %v3424_v7 }
 0x1ed   : > { %3979 = vmatmul.mubr.bf16.vlgmr.msra.gmra.mxu0 %v6345_v36  ;;  %v3510_v35 = vadd.f32 %v3509_v26, %v3467_v12  ;;  %v3989_v26 = vld [vmem:[%s7175_s2] sm:$0xf] }
 0x1ee   : > { %3936 = vmatmul.mubr.bf16.vlgmr.msra.gmra.mxu1 %v6449_v18  ;;  %v3550_v18 = vpop.f32.mrf.mxu1 }
 0x1ef   : > { %v3551_v23 = vadd.f32 %v3550_v18, %v3508_v51 }
 0x1f0   : > { %v7127_v36 = vpop.f32.mrf.mxu1 }
 0x1f1   : > { %v3553_v28 = vadd.f32 %v7127_v36, %v3510_v35 }
 0x1f2   : > { %v3554_v22 = vpop.f32.mrf.mxu1 }
 0x1f3   : > { %v3555_v4 = vadd.f32 %v3554_v22, %v3512_v13  ;;  %v3596_v18 = vadd.f32 %v7135_v20, %v3553_v28 }
 0x1f4   : > { %v3556_v54 = vpop.f32.mrf.mxu1 }
 0x1f6   : > { %v7129_v30 = vpop.f32.mrf.mxu1 }
 0x1f7   : > { %7178 = vst [vmem:[#allocation2_spill] sm:$0xff] %v7129_v30  ;;  %v7141_v30 = vshrl.u32 %v3991_v8, 7 }
 0x1f8   : > { %v7133_v32 = vpop.f32.mrf.mxu1 }
 0x1f9   : > { %7179 = vst [vmem:[#allocation3_spill] sm:$0xff] %v7133_v32  ;;  %v3514_v32 = vadd.f32 %v3513_v29, %v3471_v11  ;;  %v3993_v53 = vsub.s32 0, %v7141_v30  ;;  %v3598_v29 = vadd.f32 %v3597_v57, %v3555_v4  ;;  %v4001_v25 = vsub.s32 2, %v7141_v30 }
 0x1fa   : > { %v7137_v47 = vpop.f32.mrf.mxu1  ;;  %v4005_v57 = vsub.s32 3, %v7141_v30 }
 0x1fb   : > { %v3557_v17 = vadd.f32 %v3556_v54, %v3514_v32 }
 0x1fc   : > { %v7139_v55 = vpop.f32.mrf.mxu1  ;;  %v4006_v7 = vrot.slane %v3989_v26, %v4005_v57 }
 0x1fd   : > { %v3600_v49 = vadd.f32 %v3599_v39, %v3557_v17 }
 0x1fe   : > { %v3679_v27 = vpop.f32.mrf.mxu1  ;;  %v7180_v60 = vld [vmem:[#allocation2_spill] sm:$0xff] }
 0x200   : > { %v3681_v40 = vpop.f32.mrf.mxu1  ;;  %v7181_v0 = vld [vmem:[#allocation3_spill] sm:$0xff] }
 0x202   : > { %v3683_v42 = vpop.f32.mrf.mxu1 }
 0x204   : > { %v3685_v43 = vpop.f32.mrf.mxu1 }
 0x20d   : > { %v3722_v3 = vpop.f32.mrf.mxu0 }
 0x20e   : > { %v3723_v15 = vadd.f32 %v3722_v3, %v3679_v27  ;;  %v3594_v3 = vadd.f32 %v7131_v31, %v3551_v23  ;;  %v4002_v31 = vrot.slane %v3989_v26, %v4001_v25 }
 0x20f   : > { %v3724_v41 = vpop.f32.mrf.mxu0 }
 0x210   : > { %v3725_v33 = vadd.f32 %v3724_v41, %v3681_v40  ;;  %v3997_v40 = vsub.s32 1, %v7141_v30  ;;  %v3637_v61 = vadd.f32 %v7180_v60, %v3594_v3  ;;  %v3639_v30 = vadd.f32 %v7181_v0, %v3596_v18 }
 0x211   : > { %v3726_v63 = vpop.f32.mrf.mxu0 }
 0x212   : > { %v3727_v19 = vadd.f32 %v3726_v63, %v3683_v42 }
 0x213   : > { %v3728_v44 = vpop.f32.mrf.mxu0 }
 0x214   : > { %v3729_v22 = vadd.f32 %v3728_v44, %v3685_v43  ;;  %v3641_v43 = vadd.f32 %v7137_v47, %v3598_v29  ;;  %v3643_v44 = vadd.f32 %v7139_v55, %v3600_v49  ;;  %v4019_v47 = vld [vmem:[%s7176_s3] sm:$0xf] }
 0x215   : > { %v4032_v11 = vrot.slane %v4019_v47, %v4001_v25  ;;  %v4024_v35 = vrot.slane %v4019_v47, %v3993_v53 }
 0x22e   : > { %v3765_v58 = vpop.f32.mrf.mxu1 }
 0x22f   : > { %v3766_v16 = vadd.f32 %v3765_v58, %v3723_v15 }
 0x230   : > { %v3767_v34 = vpop.f32.mrf.mxu1 }
 0x231   : > { %v3768_v59 = vadd.f32 %v3767_v34, %v3725_v33 }
 0x232   : > { %v3769_v48 = vpop.f32.mrf.mxu1 }
 0x233   : > { %v3770_v54 = vadd.f32 %v3769_v48, %v3727_v19 }
 0x234   : > { %v3771_v1 = vpop.f32.mrf.mxu1 }
 0x235   : > { %v3772_v39 = vadd.f32 %v3771_v1, %v3729_v22  ;;  %v3998_v1 = vrot.slane %v3989_v26, %v3997_v40 }
 0x237   : > { %v4016_v10 = vmul.f32 %v3998_v1, %v3643_v44  ;;  %v4012_v33 = vmul.f32 %v3998_v1, %v3639_v30 }
 0x24d   : > { %v3808_v46 = vpop.f32.mrf.mxu0 }
 0x24e   : > { %v3809_v24 = vadd.f32 %v3808_v46, %v3766_v16  ;;  %v3994_v46 = vrot.slane %v3989_v26, %v3993_v53  ;;  %v4028_v16 = vrot.slane %v4019_v47, %v3997_v40 }
 0x24f   : > { %v3810_v45 = vpop.f32.mrf.mxu0 }
 0x250   : > { %v3811_v32 = vadd.f32 %v3810_v45, %v3768_v59  ;;  %v4011_v15 = vmul.f32 %v3994_v46, %v3637_v61  ;;  %v4042_v26 = vadd.f32 %v4028_v16, %v4012_v33 }
 0x251   : > { %v3812_v62 = vpop.f32.mrf.mxu0 }
 0x252   : > { %v3813_v42 = vadd.f32 %v3812_v62, %v3770_v54  ;;  %v4041_v25 = vadd.f32 %v4024_v35, %v4011_v15 }
 0x253   : > { %v3814_v5 = vpop.f32.mrf.mxu0 }
 0x254   : > { %v3815_v48 = vadd.f32 %v3814_v5, %v3772_v39  ;;  %v4015_v5 = vmul.f32 %v3994_v46, %v3641_v43 }
 0x256   : > { %v4045_v19 = vadd.f32 %v4024_v35, %v4015_v5 }
 0x258   : > { %v4053_v53 = vmax.f32 %v4045_v19, 0.0 }
 0x26e   : > { %v3851_v56 = vpop.f32.mrf.mxu1 }
 0x26f   : > { %v3852_v27 = vadd.f32 %v3851_v56, %v3809_v24  ;;  %v4046_v24 = vadd.f32 %v4028_v16, %v4016_v10 }
 0x270   : > { %v3853_v38 = vpop.f32.mrf.mxu1 }
 0x271   : > { %v3854_v63 = vadd.f32 %v3853_v38, %v3811_v32 }
 0x272   : > { %v3855_v21 = vpop.f32.mrf.mxu1 }
 0x273   : > { %v3856_v20 = vadd.f32 %v3855_v21, %v3813_v42  ;;  %v4036_v21 = vrot.slane %v4019_v47, %v4005_v57 }
 0x274   : > { %v3857_v41 = vpop.f32.mrf.mxu1 }
 0x275   : > { %v3858_v55 = vadd.f32 %v3857_v41, %v3815_v48  ;;  %v4049_v41 = vmax.f32 %v4041_v25, 0.0 }
 0x28d   : > { %v3894_v9 = vpop.f32.mrf.mxu0 }
 0x28e   : > { %v3895_v58 = vadd.f32 %v3894_v9, %v3852_v27  ;;  %v4054_v27 = vmax.f32 %v4046_v24, 0.0 }
 0x28f   : > { %v3896_v14 = vpop.f32.mrf.mxu0 }
 0x290   : > { %v3897_v52 = vadd.f32 %v3896_v14, %v3854_v63  ;;  %v4057_v63 = vmax.f32 %v4049_v41, %v4053_v53 }
 0x291   : > { %v3898_v50 = vpop.f32.mrf.mxu0 }
 0x292   : > { %v3899_v8 = vadd.f32 %v3898_v50, %v3856_v20 }
 0x293   : > { %v3900_v36 = vpop.f32.mrf.mxu0 }
 0x294   : > { %v3901_v13 = vadd.f32 %v3900_v36, %v3858_v55  ;;  %v4050_v36 = vmax.f32 %v4042_v26, 0.0 }
 0x2ad   : > { %v3980_v45 = vpop.f32.mrf.mxu0 }
 0x2ae   : > { %v3937_v34 = vpop.f32.mrf.mxu1 }
 0x2af   : > { %v3938_v37 = vadd.f32 %v3937_v34, %v3895_v58  ;;  %v3982_v6 = vpop.f32.mrf.mxu0  ;;  %v4058_v58 = vmax.f32 %v4050_v36, %v4054_v27 }
 0x2b0   : > { %v3939_v62 = vpop.f32.mrf.mxu1 }
 0x2b1   : > { %v3981_v56 = vadd.f32 %v3980_v45, %v3938_v37  ;;  %v3940_v9 = vadd.f32 %v3939_v62, %v3897_v52  ;;  %v3984_v12 = vpop.f32.mrf.mxu0 }
 0x2b2   : > { %v3941_v2 = vpop.f32.mrf.mxu1 }
 0x2b3   : > { %v4013_v38 = vmul.f32 %v4002_v31, %v3981_v56  ;;  %v3983_v14 = vadd.f32 %v3982_v6, %v3940_v9  ;;  %v3942_v51 = vadd.f32 %v3941_v2, %v3899_v8  ;;  %v3986_v59 = vpop.f32.mrf.mxu0 }
 0x2b4   : > { %v3943_v4 = vpop.f32.mrf.mxu1 }
 0x2b5   : > { %v4014_v17 = vmul.f32 %v4006_v7, %v3983_v14  ;;  %v3985_v23 = vadd.f32 %v3984_v12, %v3942_v51  ;;  %v3944_v50 = vadd.f32 %v3943_v4, %v3901_v13  ;;  %v4043_v28 = vadd.f32 %v4032_v11, %v4013_v38 }
 0x2b7   : > { %v4017_v29 = vmul.f32 %v4002_v31, %v3985_v23  ;;  %v3987_v49 = vadd.f32 %v3986_v59, %v3944_v50  ;;  %v4044_v22 = vadd.f32 %v4036_v21, %v4014_v17  ;;  %v4051_v3 = vmax.f32 %v4043_v28, 0.0 }
 0x2b9   : > { %v4047_v54 = vadd.f32 %v4032_v11, %v4017_v29  ;;  %v4018_v32 = vmul.f32 %v4006_v7, %v3987_v49  ;;  %v4052_v57 = vmax.f32 %v4044_v22, 0.0 }
 0x2bb   : > { %v4055_v18 = vmax.f32 %v4047_v54, 0.0  ;;  %v4048_v40 = vadd.f32 %v4036_v21, %v4018_v32 }
 0x2bd   : > { %v4059_v39 = vmax.f32 %v4051_v3, %v4055_v18  ;;  %v4056_v42 = vmax.f32 %v4048_v40, 0.0 }
 0x2bf   : > { %v4060_v46 = vmax.f32 %v4052_v57, %v4056_v42  ;;  %v4061_v43 = vmax.f32 %v4057_v63, %v4059_v39 }
 0x2c1   : > { %v4062_v44 = vmax.f32 %v4058_v58, %v4060_v46 }
 0x2c3   : > { %v4681_v34 = vpack.c.bf16 %v4062_v44, %v4061_v43 }
 0x2c5   : > { %4071 = vst [vmem:[%s233_s12] sm:$0xff] %v4681_v34 }
 0x2c6 PF: > { %s14_s17 = sadd.s32 1, %s5471_s17   ;;  %s7182_s15 = smov %s5467_s16 }
 0x2c7   : > { %p11_p5 = scmp.ge.s32.totalorder %s14_s17, 4   ;;  %s7183_s16 = smov %s7185_s18 }
 0x2c9   :  { %13 = sbr.rel (!%p11_p5) target bundleno = 2 (0x2), region = 67 }

// kernel: forward.5
= control target key start
LH: loop header
LB: loop body
LE: loop exit
PB: predicated region body
PF: predicated region fallthrough
CT: control target
= control target key end

     0   :  { %v310_v28 = vlaneseq  ;;  %v3340_v36 = vmov 1966171168   ;;  %s4246_s0 = inlined_call_operand.vmem [shape: bf16[2,2048], index: 0, kind: input, shape index: {}]   ;;  %s4247_s1 = inlined_call_operand.vmem [shape: bf16[2048,128], index: 1, kind: input, shape index: {}]   ;;  %s4248_s2 = inlined_call_operand.vmem [shape: f32[1,128], index: 2, kind: input, shape index: {}]   ;;  %s4249_s3 = inlined_call_operand.vmem [shape: f32[128,20], index: 3, kind: input, shape index: {}]   ;;  %s4250_s4 = inlined_call_operand.vmem [shape: f32[1,20], index: 4, kind: input, shape index: {}]   ;;  %s4251_s5 = inlined_call_operand.vmem [shape: f32[20,640], index: 5, kind: input, shape index: {}]   ;;  %s4252_s6 = inlined_call_operand.vmem [shape: f32[20,640], index: 6, kind: input, shape index: {}]   ;;  %s4253_s7 = inlined_call_operand.vmem [shape: f32[128,128], index: 7, kind: input, shape index: {}]   ;;  %s4254_s8 = inlined_call_operand.vmem [shape: f32[128,128], index: 8, kind: input, shape index: {}]   ;;  %s4255_s9 = inlined_call_operand.vmem [shape: f32[128,10], index: 9, kind: input, shape index: {}]   ;;  %s4256_s10 = inlined_call_operand.vmem [shape: f32[1,10], index: 10, kind: input, shape index: {}]   ;;  %s4257_s11 = inlined_call_operand.hbm [shape: f32[2,10], index: 11, kind: output, shape index: {}]  }
   0x1   :  { %v3184_v0 = vld [vmem:[%s4247_s1 + $0x78] sm:$0xff]   ;;  %v3188_v4 = vld [vmem:[%s4247_s1 + $0x70] sm:$0xff]   ;;  %v3192_v8 = vld [vmem:[%s4247_s1 + $0x68] sm:$0xff]   ;;  %v308_v37 = vunpack.c.l.s4 %v3340_v36 }
   0x2   :  { %v3185_v1 = vld [vmem:[%s4247_s1 + $0xf8] sm:$0xff]   ;;  %2760 = vmatprep.subr.bf16.mxu0 %v3184_v0  ;;  %v3189_v5 = vld [vmem:[%s4247_s1 + $0xf0] sm:$0xff]   ;;  %v3193_v9 = vld [vmem:[%s4247_s1 + $0xe8] sm:$0xff]   ;;  %v311_v33 = vshrl.u32 %v310_v28, 7 }
   0x3   :  { %v3186_v2 = vld [vmem:[%s4247_s1 + $0x38] sm:$0xff]   ;;  %2782 = vmatprep.subr.bf16.mxu1 %v3185_v1  ;;  %v3190_v6 = vld [vmem:[%s4247_s1 + $0x30] sm:$0xff]   ;;  %v3194_v10 = vld [vmem:[%s4247_s1 + $0x28] sm:$0xff]   ;;  %v309_v40 = vunpack.c.0.s8 %v308_v37 }
   0x4   :  { %v3187_v3 = vld [vmem:[%s4247_s1 + $0xb8] sm:$0xff]   ;;  %2761 = vmatpush3.bf16.msra.mxu0 %v3186_v2  ;;  %v3191_v7 = vld [vmem:[%s4247_s1 + $0xb0] sm:$0xff]   ;;  %v3195_v11 = vld [vmem:[%s4247_s1 + $0xa8] sm:$0xff]  }
   0x5   :  { %2783 = vmatpush3.bf16.msra.mxu1 %v3187_v3  ;;  %2762 = vmatprep.subr.bf16.mxu0 %v3188_v4  ;;  %v3196_v12 = vld [vmem:[%s4247_s1 + $0x60] sm:$0xff]   ;;  %v3200_v16 = vld [vmem:[%s4247_s1 + $0x58] sm:$0xff]   ;;  %v3204_v20 = vld [vmem:[%s4247_s1 + $0x50] sm:$0xff]   ;;  %v3515_v41 = vsub.s32 %v309_v40, %v311_v33 }
   0x6   :  { %2784 = vmatprep.subr.bf16.mxu1 %v3189_v5  ;;  %v3197_v13 = vld [vmem:[%s4247_s1 + $0xe0] sm:$0xff]   ;;  %v3201_v17 = vld [vmem:[%s4247_s1 + $0xd8] sm:$0xff]   ;;  %v3205_v21 = vld [vmem:[%s4247_s1 + $0xd0] sm:$0xff]  }
   0x7   :  { %v3198_v14 = vld [vmem:[%s4247_s1 + $0x20] sm:$0xff]   ;;  %v3202_v18 = vld [vmem:[%s4247_s1 + $0x18] sm:$0xff]   ;;  %v3206_v22 = vld [vmem:[%s4247_s1 + $0x10] sm:$0xff]  }
   0x8   :  { %2763 = vmatpush3.bf16.msra.mxu0 %v3190_v6  ;;  %v3199_v15 = vld [vmem:[%s4247_s1 + $0xa0] sm:$0xff]   ;;  %v3203_v19 = vld [vmem:[%s4247_s1 + $0x98] sm:$0xff]   ;;  %v3207_v23 = vld [vmem:[%s4247_s1 + $0x90] sm:$0xff]  }
   0x9   :  { %2785 = vmatpush3.bf16.msra.mxu1 %v3191_v7  ;;  %2764 = vmatprep.subr.bf16.mxu0 %v3192_v8  ;;  %v3208_v24 = vld [vmem:[%s4247_s1 + $0x48] sm:$0xff]   ;;  %v3212_v29 = vld [vmem:[%s4247_s1 + $0x40] sm:$0xff]   ;;  %v3217_v35 = vld [vmem:[%s4247_s1 + $0x178] sm:$0xff]  }
   0xa   :  { %2786 = vmatprep.subr.bf16.mxu1 %v3193_v9  ;;  %v3209_v25 = vld [vmem:[%s4247_s1 + $0xc8] sm:$0xff]   ;;  %v3213_v30 = vld [vmem:[%s4247_s1 + $0xc0] sm:$0xff]   ;;  %v3218_v38 = vld [vmem:[%s4247_s1 + $0x1f8] sm:$0xff]  }
   0xb   :  { %v3210_v26 = vld [vmem:[%s4247_s1 + $0x8] sm:$0xff]   ;;  %v3214_v31 = vld [vmem:[%s4247_s1] sm:$0xff]   ;;  %v3219_v48 = vld [vmem:[%s4247_s1 + $0x138] sm:$0xff]  }
   0xc   :  { %2765 = vmatpush3.bf16.msra.mxu0 %v3194_v10  ;;  %v3211_v27 = vld [vmem:[%s4247_s1 + $0x88] sm:$0xff]   ;;  %v3215_v32 = vld [vmem:[%s4247_s1 + $0x80] sm:$0xff]   ;;  %v3221_v51 = vld [vmem:[%s4247_s1 + $0x170] sm:$0xff]  }
   0xd   :  { %2787 = vmatpush3.bf16.msra.mxu1 %v3195_v11  ;;  %2766 = vmatprep.subr.bf16.mxu0 %v3196_v12  ;;  %v46_v34 = vld [vmem:[%s4246_s0] sm:$0xff]  ;;  %v3220_v53 = vld [vmem:[%s4247_s1 + $0x1b8] sm:$0xff]   ;;  %v3222_v54 = vld [vmem:[%s4247_s1 + $0x1f0] sm:$0xff]  }
   0xe   :  { %2788 = vmatprep.subr.bf16.mxu1 %v3197_v13  ;;  %v306_v39 = vcombine.high %v46_v34, %v46_v34  ;;  %v313_v42 = vrot.slane %v46_v34, %v3515_v41  ;;  %v3223_v56 = vld [vmem:[%s4247_s1 + $0x130] sm:$0xff]   ;;  %v3225_v57 = vld [vmem:[%s4247_s1 + $0x168] sm:$0xff]   ;;  %v3229_v61 = vld [vmem:[%s4247_s1 + $0x160] sm:$0xff]  }
   0xf   :  { %v3224_v58 = vld [vmem:[%s4247_s1 + $0x1b0] sm:$0xff]   ;;  %v3226_v59 = vld [vmem:[%s4247_s1 + $0x1e8] sm:$0xff]   ;;  %v3230_v63 = vld [vmem:[%s4247_s1 + $0x1e0] sm:$0xff]  }
  0x10   :  { %2767 = vmatpush3.bf16.msra.mxu0 %v3198_v14  ;;  %v3519_v43 = vrot.slane %v306_v39, %v3515_v41  ;;  %v321_v44 = vcombine.high %v313_v42, %v313_v42  ;;  %v329_v45 = vrot.slane %v313_v42, %v3515_v41  ;;  %v3227_v60 = vld [vmem:[%s4247_s1 + $0x128] sm:$0xff]   ;;  %v3231_v0 = vld [vmem:[%s4247_s1 + $0x120] sm:$0xff]   ;;  %v3233_v1 = vld [vmem:[%s4247_s1 + $0x158] sm:$0xff]  }
  0x11   :  { %2789 = vmatpush3.bf16.msra.mxu1 %v3199_v15  ;;  %2768 = vmatprep.subr.bf16.mxu0 %v3200_v16  ;;  %v3228_v62 = vld [vmem:[%s4247_s1 + $0x1a8] sm:$0xff]   ;;  %v3232_v2 = vld [vmem:[%s4247_s1 + $0x1a0] sm:$0xff]   ;;  %v3234_v3 = vld [vmem:[%s4247_s1 + $0x1d8] sm:$0xff]  }
  0x12   :  { %2790 = vmatprep.subr.bf16.mxu1 %v3201_v17  ;;  %v322_v46 = vcombine.high %v3519_v43, %v3519_v43  ;;  %v343_v47 = vrot.slane %v321_v44, %v3515_v41  ;;  %v351_v50 = vcombine.high %v329_v45, %v329_v45  ;;  %v3235_v4 = vld [vmem:[%s4247_s1 + $0x118] sm:$0xff]   ;;  %v3237_v5 = vld [vmem:[%s4247_s1 + $0x150] sm:$0xff]   ;;  %v3241_v9 = vld [vmem:[%s4247_s1 + $0x148] sm:$0xff]   ;;  %v336_v17 = vrot.slane %v3519_v43, %v3515_v41 }
  0x13   :  { %v3236_v6 = vld [vmem:[%s4247_s1 + $0x198] sm:$0xff]   ;;  %v3238_v7 = vld [vmem:[%s4247_s1 + $0x1d0] sm:$0xff]   ;;  %v3242_v11 = vld [vmem:[%s4247_s1 + $0x1c8] sm:$0xff]  }
  0x14   :  { %2769 = vmatpush3.bf16.msra.mxu0 %v3202_v18  ;;  %v350_v49 = vrot.slane %v322_v46, %v3515_v41  ;;  %1220 = vmatprep.mubr.bf16.mxu0 %v343_v47  ;;  %v353_v52 = vcombine.high %v343_v47, %v343_v47  ;;  %v3239_v8 = vld [vmem:[%s4247_s1 + $0x110] sm:$0xff]   ;;  %v3243_v12 = vld [vmem:[%s4247_s1 + $0x108] sm:$0xff]   ;;  %v3245_v13 = vld [vmem:[%s4247_s1 + $0x140] sm:$0xff]  }
  0x15   :  { %2791 = vmatpush3.bf16.msra.mxu1 %v3203_v19  ;;  %2770 = vmatprep.subr.bf16.mxu0 %v3204_v20  ;;  %v3240_v10 = vld [vmem:[%s4247_s1 + $0x190] sm:$0xff]   ;;  %v3244_v14 = vld [vmem:[%s4247_s1 + $0x188] sm:$0xff]   ;;  %v3246_v15 = vld [vmem:[%s4247_s1 + $0x1c0] sm:$0xff]  }
  0x16   :  { %2792 = vmatprep.subr.bf16.mxu1 %v3205_v21  ;;  %v354_v55 = vcombine.high %v350_v49, %v350_v49  ;;  %1260 = vmatprep.mubr.bf16.mxu1 %v353_v52  ;;  %v3247_v16 = vld [vmem:[%s4247_s1 + $0x100] sm:$0xff]   ;;  %v3249_v18 = vld [vmem:[%s4247_s1 + $0x278] sm:$0xff]   ;;  %v3256_v28 = vld [vmem:[%s4247_s1 + $0x2b0] sm:$0xff]  }
  0x17   :  { %v3248_v19 = vld [vmem:[%s4247_s1 + $0x180] sm:$0xff]   ;;  %v3250_v20 = vld [vmem:[%s4247_s1 + $0x2f8] sm:$0xff]   ;;  %v3269_v39 = vld [vmem:[%s4247_s1 + $0x250] sm:$0xff]  }
  0x18   :  { %2771 = vmatpush3.bf16.msra.mxu0 %v3206_v22  ;;  %v3251_v21 = vld [vmem:[%s4247_s1 + $0x238] sm:$0xff]   ;;  %v352_v22 = vcombine.high %v336_v17, %v336_v17  ;;  %v3262_v33 = vld [vmem:[%s4247_s1 + $0x2e0] sm:$0xff]   ;;  %v3270_v42 = vld [vmem:[%s4247_s1 + $0x2d0] sm:$0xff]  }
  0x19   :  { %2793 = vmatpush3.bf16.msra.mxu1 %v3207_v23  ;;  %2772 = vmatprep.subr.bf16.mxu0 %v3208_v24  ;;  %v3253_v23 = vld [vmem:[%s4247_s1 + $0x270] sm:$0xff]   ;;  %v3252_v24 = vld [vmem:[%s4247_s1 + $0x2b8] sm:$0xff]   ;;  %v3263_v34 = vld [vmem:[%s4247_s1 + $0x220] sm:$0xff]  }
  0x1a   :  { %2794 = vmatprep.subr.bf16.mxu1 %v3209_v25  ;;  %v3254_v25 = vld [vmem:[%s4247_s1 + $0x2f0] sm:$0xff]   ;;  %v3264_v36 = vld [vmem:[%s4247_s1 + $0x2a0] sm:$0xff]   ;;  %v3266_v37 = vld [vmem:[%s4247_s1 + $0x2d8] sm:$0xff]  }
  0x1b   :  { %v3268_v40 = vld [vmem:[%s4247_s1 + $0x298] sm:$0xff]   ;;  %v3271_v43 = vld [vmem:[%s4247_s1 + $0x210] sm:$0xff]   ;;  %v3273_v44 = vld [vmem:[%s4247_s1 + $0x248] sm:$0xff]  }
  0x1c   :  { %2773 = vmatpush3.bf16.msra.mxu0 %v3210_v26  ;;  %v3255_v26 = vld [vmem:[%s4247_s1 + $0x230] sm:$0xff]  }
  0x1d   :  { %2795 = vmatpush3.bf16.msra.mxu1 %v3211_v27  ;;  %2774 = vmatprep.subr.bf16.mxu0 %v3212_v29  ;;  %v3257_v27 = vld [vmem:[%s4247_s1 + $0x268] sm:$0xff]   ;;  %v3272_v46 = vld [vmem:[%s4247_s1 + $0x290] sm:$0xff]  }
  0x1e   :  { %2796 = vmatprep.subr.bf16.mxu1 %v3213_v30  ;;  %v3258_v29 = vld [vmem:[%s4247_s1 + $0x2e8] sm:$0xff]  }
  0x1f   :  { %v3259_v30 = vld [vmem:[%s4247_s1 + $0x228] sm:$0xff]  }
  0x20   :  { %2775 = vmatpush3.bf16.msra.mxu0 %v3214_v31  ;;  %v3261_v31 = vld [vmem:[%s4247_s1 + $0x260] sm:$0xff]  }
  0x21   :  { %2797 = vmatpush3.bf16.msra.mxu1 %v3215_v32  ;;  %2804 = vmatprep.subr.bf16.mxu0 %v3217_v35  ;;  %v3260_v32 = vld [vmem:[%s4247_s1 + $0x2a8] sm:$0xff]   ;;  %v3265_v35 = vld [vmem:[%s4247_s1 + $0x258] sm:$0xff]  }
  0x22   :  { %2826 = vmatprep.subr.bf16.mxu1 %v3218_v38  ;;  %v3267_v38 = vld [vmem:[%s4247_s1 + $0x218] sm:$0xff]  }
  0x23   :  { %1221 = vmatmul.mubr.bf16.vlgmr.msra.gmra.mxu0 %v329_v45  ;;  %v47_v45 = vld [vmem:[%s4246_s0 + $0x8] sm:$0xff] }
  0x24   :  { %2805 = vmatpush3.bf16.msra.mxu0 %v3219_v48  ;;  %1261 = vmatmul.mubr.bf16.vlgmr.msra.gmra.mxu1 %v351_v50  ;;  %v362_v47 = vrot.slane %v47_v45, %v3515_v41  ;;  %v355_v48 = vcombine.high %v47_v45, %v47_v45  ;;  %v3275_v50 = vld [vmem:[%s4247_s1 + $0x208] sm:$0xff]  }
  0x25   :  { %2806 = vmatprep.subr.bf16.mxu0 %v3221_v51  ;;  %2827 = vmatpush3.bf16.msra.mxu1 %v3220_v53  ;;  %v3277_v53 = vld [vmem:[%s4247_s1 + $0x240] sm:$0xff]  }
  0x26   :  { %1300 = vmatprep.mubr.bf16.mxu0 %v350_v49  ;;  %2828 = vmatprep.subr.bf16.mxu1 %v3222_v54  ;;  %v3274_v49 = vld [vmem:[%s4247_s1 + $0x2c8] sm:$0xff]   ;;  %v370_v51 = vcombine.high %v362_v47, %v362_v47  ;;  %v3704_v52 = vrot.slane %v355_v48, %v3515_v41 }
  0x27   :  { %1340 = vmatprep.mubr.bf16.mxu1 %v354_v55  ;;  %v3276_v54 = vld [vmem:[%s4247_s1 + $0x288] sm:$0xff]  }
  0x28   :  { %2807 = vmatpush3.bf16.msra.mxu0 %v3223_v56  ;;  %v392_v55 = vrot.slane %v370_v51, %v3515_v41  ;;  %v371_v56 = vcombine.high %v3704_v52, %v3704_v52 }
  0x29   :  { %2808 = vmatprep.subr.bf16.mxu0 %v3225_v57  ;;  %2829 = vmatpush3.bf16.msra.mxu1 %v3224_v58  ;;  %v3278_v57 = vld [vmem:[%s4247_s1 + $0x2c0] sm:$0xff]  }
  0x2a   :  { %2830 = vmatprep.subr.bf16.mxu1 %v3226_v59  ;;  %v3279_v58 = vld [vmem:[%s4247_s1 + $0x200] sm:$0xff]   ;;  %v402_v59 = vcombine.high %v392_v55, %v392_v55 }
  0x2c   :  { %2809 = vmatpush3.bf16.msra.mxu0 %v3227_v60  ;;  %v378_v60 = vrot.slane %v362_v47, %v3515_v41 }
  0x2d   :  { %2810 = vmatprep.subr.bf16.mxu0 %v3229_v61  ;;  %2831 = vmatpush3.bf16.msra.mxu1 %v3228_v62  ;;  %v3281_v61 = vld [vmem:[%s4247_s1 + $0x378] sm:$0xff]   ;;  %v3280_v62 = vld [vmem:[%s4247_s1 + $0x280] sm:$0xff]  }
  0x2e   :  { %2832 = vmatprep.subr.bf16.mxu1 %v3230_v63  ;;  %v399_v63 = vrot.slane %v371_v56, %v3515_v41 }
  0x30   :  { %2811 = vmatpush3.bf16.msra.mxu0 %v3231_v0  ;;  %v3282_v0 = vld [vmem:[%s4247_s1 + $0x3f8] sm:$0xff]  }
  0x31   :  { %2812 = vmatprep.subr.bf16.mxu0 %v3233_v1  ;;  %2833 = vmatpush3.bf16.msra.mxu1 %v3232_v2  ;;  %v3283_v1 = vld [vmem:[%s4247_s1 + $0x338] sm:$0xff]   ;;  %v400_v2 = vcombine.high %v378_v60, %v378_v60 }
  0x32   :  { %2834 = vmatprep.subr.bf16.mxu1 %v3234_v3  ;;  %v3285_v3 = vld [vmem:[%s4247_s1 + $0x370] sm:$0xff]  }
  0x34   :  { %2813 = vmatpush3.bf16.msra.mxu0 %v3235_v4  ;;  %v3284_v4 = vld [vmem:[%s4247_s1 + $0x3b8] sm:$0xff]  }
  0x35   :  { %2814 = vmatprep.subr.bf16.mxu0 %v3237_v5  ;;  %2835 = vmatpush3.bf16.msra.mxu1 %v3236_v6  ;;  %v403_v5 = vcombine.high %v399_v63, %v399_v63  ;;  %v3286_v6 = vld [vmem:[%s4247_s1 + $0x3f0] sm:$0xff]  }
  0x36   :  { %2836 = vmatprep.subr.bf16.mxu1 %v3238_v7  ;;  %v3287_v7 = vld [vmem:[%s4247_s1 + $0x330] sm:$0xff]  }
  0x38   :  { %2815 = vmatpush3.bf16.msra.mxu0 %v3239_v8  ;;  %v3289_v8 = vld [vmem:[%s4247_s1 + $0x368] sm:$0xff]  }
  0x39   :  { %2816 = vmatprep.subr.bf16.mxu0 %v3241_v9  ;;  %2837 = vmatpush3.bf16.msra.mxu1 %v3240_v10  ;;  %v3288_v9 = vld [vmem:[%s4247_s1 + $0x3b0] sm:$0xff]   ;;  %v3290_v10 = vld [vmem:[%s4247_s1 + $0x3e8] sm:$0xff]  }
  0x3a   :  { %2838 = vmatprep.subr.bf16.mxu1 %v3242_v11  ;;  %v3291_v11 = vld [vmem:[%s4247_s1 + $0x328] sm:$0xff]  }
  0x3c   :  { %2817 = vmatpush3.bf16.msra.mxu0 %v3243_v12  ;;  %v3293_v12 = vld [vmem:[%s4247_s1 + $0x360] sm:$0xff]  }
  0x3d   :  { %2818 = vmatprep.subr.bf16.mxu0 %v3245_v13  ;;  %2839 = vmatpush3.bf16.msra.mxu1 %v3244_v14  ;;  %v3292_v13 = vld [vmem:[%s4247_s1 + $0x3a8] sm:$0xff]   ;;  %v3294_v14 = vld [vmem:[%s4247_s1 + $0x3e0] sm:$0xff]  }
  0x3e   :  { %2840 = vmatprep.subr.bf16.mxu1 %v3246_v15  ;;  %v3295_v15 = vld [vmem:[%s4247_s1 + $0x320] sm:$0xff]  }
  0x40   :  { %2819 = vmatpush3.bf16.msra.mxu0 %v3247_v16  ;;  %v3297_v16 = vld [vmem:[%s4247_s1 + $0x358] sm:$0xff]  }
  0x41   :  { %2848 = vmatprep.subr.bf16.mxu0 %v3249_v18  ;;  %2841 = vmatpush3.bf16.msra.mxu1 %v3248_v19  ;;  %v3298_v18 = vld [vmem:[%s4247_s1 + $0x3d8] sm:$0xff]  }
  0x42   :  { %2870 = vmatprep.subr.bf16.mxu1 %v3250_v20  ;;  %v3299_v19 = vld [vmem:[%s4247_s1 + $0x318] sm:$0xff]   ;;  %v3301_v20 = vld [vmem:[%s4247_s1 + $0x350] sm:$0xff]  }
  0x43   :  { %1301 = vmatmul.mubr.bf16.vlgmr.msra.gmra.mxu0 %v336_v17  ;;  %v3296_v17 = vld [vmem:[%s4247_s1 + $0x3a0] sm:$0xff]  }
  0x44   :  { %2849 = vmatpush3.bf16.msra.mxu0 %v3251_v21  ;;  %1341 = vmatmul.mubr.bf16.vlgmr.msra.gmra.mxu1 %v352_v22  ;;  %v3300_v21 = vld [vmem:[%s4247_s1 + $0x398] sm:$0xff]   ;;  %v3302_v22 = vld [vmem:[%s4247_s1 + $0x3d0] sm:$0xff]  }
  0x45   :  { %2850 = vmatprep.subr.bf16.mxu0 %v3253_v23  ;;  %2871 = vmatpush3.bf16.msra.mxu1 %v3252_v24  ;;  %v3303_v23 = vld [vmem:[%s4247_s1 + $0x310] sm:$0xff]   ;;  %v3305_v24 = vld [vmem:[%s4247_s1 + $0x348] sm:$0xff]  }
  0x46   :  { %2872 = vmatprep.subr.bf16.mxu1 %v3254_v25  ;;  %1380 = vmatprep.mubr.bf16.mxu0 %v392_v55 }
  0x47   :  { %1420 = vmatprep.mubr.bf16.mxu1 %v402_v59 }
  0x48   :  { %2851 = vmatpush3.bf16.msra.mxu0 %v3255_v26 }
  0x49   :  { %2852 = vmatprep.subr.bf16.mxu0 %v3257_v27  ;;  %2873 = vmatpush3.bf16.msra.mxu1 %v3256_v28 }
  0x4a   :  { %2874 = vmatprep.subr.bf16.mxu1 %v3258_v29 }
  0x4c   :  { %2853 = vmatpush3.bf16.msra.mxu0 %v3259_v30 }
  0x4d   :  { %2854 = vmatprep.subr.bf16.mxu0 %v3261_v31  ;;  %2875 = vmatpush3.bf16.msra.mxu1 %v3260_v32 }
  0x4e   :  { %2876 = vmatprep.subr.bf16.mxu1 %v3262_v33 }
  0x50   :  { %2855 = vmatpush3.bf16.msra.mxu0 %v3263_v34 }
  0x51   :  { %2856 = vmatprep.subr.bf16.mxu0 %v3265_v35  ;;  %2877 = vmatpush3.bf16.msra.mxu1 %v3264_v36 }
  0x52   :  { %2878 = vmatprep.subr.bf16.mxu1 %v3266_v37 }
  0x54   :  { %2857 = vmatpush3.bf16.msra.mxu0 %v3267_v38 }
  0x55   :  { %2858 = vmatprep.subr.bf16.mxu0 %v3269_v39  ;;  %2879 = vmatpush3.bf16.msra.mxu1 %v3268_v40 }
  0x56   :  { %2880 = vmatprep.subr.bf16.mxu1 %v3270_v42 }
  0x58   :  { %2859 = vmatpush3.bf16.msra.mxu0 %v3271_v43 }
  0x59   :  { %2860 = vmatprep.subr.bf16.mxu0 %v3273_v44  ;;  %2881 = vmatpush3.bf16.msra.mxu1 %v3272_v46 }
  0x5a   :  { %2882 = vmatprep.subr.bf16.mxu1 %v3274_v49 }
  0x5c   :  { %2861 = vmatpush3.bf16.msra.mxu0 %v3275_v50 }
  0x5d   :  { %2862 = vmatprep.subr.bf16.mxu0 %v3277_v53  ;;  %2883 = vmatpush3.bf16.msra.mxu1 %v3276_v54 }
  0x5e   :  { %2884 = vmatprep.subr.bf16.mxu1 %v3278_v57 }
  0x60   :  { %2863 = vmatpush3.bf16.msra.mxu0 %v3279_v58 }
  0x61   :  { %2892 = vmatprep.subr.bf16.mxu0 %v3281_v61  ;;  %2885 = vmatpush3.bf16.msra.mxu1 %v3280_v62 }
  0x62   :  { %2914 = vmatprep.subr.bf16.mxu1 %v3282_v0 }
  0x63   :  { %1381 = vmatmul.mubr.bf16.vlgmr.msra.gmra.mxu0 %v378_v60 }
  0x64   :  { %2893 = vmatpush3.bf16.msra.mxu0 %v3283_v1  ;;  %1460 = vmatprep.mubr.bf16.mxu0 %v399_v63 }
  0x65   :  { %1421 = vmatmul.mubr.bf16.vlgmr.msra.gmra.mxu1 %v400_v2  ;;  %2894 = vmatprep.subr.bf16.mxu0 %v3285_v3 }
  0x66   :  { %2915 = vmatpush3.bf16.msra.mxu1 %v3284_v4  ;;  %1500 = vmatprep.mubr.bf16.mxu1 %v403_v5 }
  0x67   :  { %2916 = vmatprep.subr.bf16.mxu1 %v3286_v6 }
  0x68   :  { %2895 = vmatpush3.bf16.msra.mxu0 %v3287_v7 }
  0x69   :  { %2896 = vmatprep.subr.bf16.mxu0 %v3289_v8 }
  0x6a   :  { %2917 = vmatpush3.bf16.msra.mxu1 %v3288_v9 }
  0x6b   :  { %2918 = vmatprep.subr.bf16.mxu1 %v3290_v10 }
  0x6c   :  { %2897 = vmatpush3.bf16.msra.mxu0 %v3291_v11 }
  0x6d   :  { %2898 = vmatprep.subr.bf16.mxu0 %v3293_v12 }
  0x6e   :  { %2919 = vmatpush3.bf16.msra.mxu1 %v3292_v13 }
  0x6f   :  { %2920 = vmatprep.subr.bf16.mxu1 %v3294_v14 }
  0x70   :  { %2899 = vmatpush3.bf16.msra.mxu0 %v3295_v15 }
  0x71   :  { %2900 = vmatprep.subr.bf16.mxu0 %v3297_v16 }
  0x72   :  { %2921 = vmatpush3.bf16.msra.mxu1 %v3296_v17 }
  0x73   :  { %2922 = vmatprep.subr.bf16.mxu1 %v3298_v18 }
  0x74   :  { %2901 = vmatpush3.bf16.msra.mxu0 %v3299_v19 }
  0x75   :  { %2902 = vmatprep.subr.bf16.mxu0 %v3301_v20 }
  0x76   :  { %16 = vsyncpa [#allocation4], 0  ;;  %2923 = vmatpush3.bf16.msra.mxu1 %v3300_v21  ;;  %v3304_v25 = vld [vmem:[%s4247_s1 + $0x390] sm:$0xff]   ;;  %v3306_v26 = vld [vmem:[%s4247_s1 + $0x3c8] sm:$0xff]   ;;  %v385_v32 = vrot.slane %v3704_v52, %v3515_v41  ;;  %v3341_v36 = vmov 0.0   ;;  %vm3342_vm0 = vmmov 0  }
  0x77   :  { %2924 = vmatprep.subr.bf16.mxu1 %v3302_v22  ;;  %v3307_v27 = vld [vmem:[%s4247_s1 + $0x308] sm:$0xff]   ;;  %v3309_v28 = vld [vmem:[%s4247_s1 + $0x340] sm:$0xff]   ;;  %v1538_v35 = vld [vmem:[%s4249_s3 + $0x78] sm:$0xff]  ;;  %44 = vst [vmem:[#allocation2] sm:$0x3] %v3341_v36  ;;  %vm1859_vm1 = vcmask 1043456  }
  0x78   :  { %2903 = vmatpush3.bf16.msra.mxu0 %v3303_v23  ;;  %v3308_v29 = vld [vmem:[%s4247_s1 + $0x388] sm:$0xff]   ;;  %v3310_v30 = vld [vmem:[%s4247_s1 + $0x3c0] sm:$0xff]   ;;  %v401_v34 = vcombine.high %v385_v32, %v385_v32  ;;  %v1537_v41 = vld [vmem:[%s4249_s3 + $0x70] sm:$0xff]  ;;  %vm1855_vm14 = vcmask 162816   ;;  %s3349_s20 = smov [#allocation3]  }
  0x79   :  { %2904 = vmatprep.subr.bf16.mxu0 %v3305_v24  ;;  %v3311_v31 = vld [vmem:[%s4247_s1 + $0x300] sm:$0xff]   ;;  %v1536_v37 = vld [vmem:[%s4249_s3 + $0x68] sm:$0xff]  ;;  %v1534_v39 = vld [vmem:[%s4249_s3 + $0x58] sm:$0xff]  ;;  %s2597_s21 = sshll.u32 %s3349_s20, 4  ;;  %s2598_s21 = int_to_ptr.vmem [resolvable:$true] %s2597_s21 }
  0x7a   :  { %2925 = vmatpush3.bf16.msra.mxu1 %v3304_v25  ;;  %v3312_v33 = vld [vmem:[%s4247_s1 + $0x380] sm:$0xff]   ;;  %v1533_v40 = vld [vmem:[%s4249_s3 + $0x50] sm:$0xff]  ;;  %v1532_v42 = vld [vmem:[%s4249_s3 + $0x48] sm:$0xff]  ;;  %p3323_p1 = scmp.lt.s32.totalorder %s2598_s21, %s2598_s21 }
  0x7b   :  { %2926 = vmatprep.subr.bf16.mxu1 %v3306_v26  ;;  %v1535_v38 = vld [vmem:[%s4249_s3 + $0x60] sm:$0xff]  ;;  %v1530_v44 = vld [vmem:[%s4249_s3 + $0x38] sm:$0xff]  ;;  %v1529_v45 = vld [vmem:[%s4249_s3 + $0x30] sm:$0xff] }
  0x7c   :  { %2905 = vmatpush3.bf16.msra.mxu0 %v3307_v27  ;;  %v1531_v43 = vld [vmem:[%s4249_s3 + $0x40] sm:$0xff]  ;;  %v1528_v46 = vld [vmem:[%s4249_s3 + $0x28] sm:$0xff]  ;;  %v1526_v48 = vld [vmem:[%s4249_s3 + $0x18] sm:$0xff] }
  0x7d   :  { %2906 = vmatprep.subr.bf16.mxu0 %v3309_v28  ;;  %v1527_v47 = vld [vmem:[%s4249_s3 + $0x20] sm:$0xff]  ;;  %v1525_v49 = vld [vmem:[%s4249_s3 + $0x10] sm:$0xff]  ;;  %v1524_v50 = vld [vmem:[%s4249_s3 + $0x8] sm:$0xff] }
  0x7e   :  { %2927 = vmatpush3.bf16.msra.mxu1 %v3308_v29  ;;  %v1523_v51 = vld [vmem:[%s4249_s3] sm:$0xff] }
  0x7f   :  { %2928 = vmatprep.subr.bf16.mxu1 %v3310_v30 }
  0x80   :  { %2907 = vmatpush3.bf16.msra.mxu0 %v3311_v31  ;;  %v45_v31 = vld [vmem:[#allocation2] sm:$0x3] }
  0x81   :  { %3012 = vmatprep.subr.mxu0 %v3341_v36 }
  0x82   :  { %2929 = vmatpush3.bf16.msra.mxu1 %v3312_v33 }
  0x83   :  { %1461 = vmatmul.mubr.bf16.vlgmr.msra.gmra.mxu0 %v385_v32  ;;  %3047 = vmatprep.subr.mxu1 %v3341_v36 }
  0x84   :  { %3013 = vmatpush3.msra.mxu0 %v1538_v35  ;;  %3044 = vmatprep.mubr.msk.f32.mxu0 %vm3342_vm0, %v3341_v36 }
  0x85   :  { %1501 = vmatmul.mubr.bf16.vlgmr.msra.gmra.mxu1 %v401_v34  ;;  %3014 = vmatprep.subr.mxu0 %v3341_v36 }
  0x86   :  { %3015 = vmatpush3.msra.mxu0 %v1537_v41  ;;  %3053 = vmatprep.mubr.msk.f32.mxu1 %vm3342_vm0, %v3341_v36 }
  0x87   :  { %3016 = vmatprep.subr.mxu0 %v3341_v36 }
  0x88   :  { %3017 = vmatpush3.msra.mxu0 %v1536_v37  ;;  %v2733_v37 = vld [vmem:[%s4248_s2] ss:$0 sm:$0xff] }
  0x89   :  { %3018 = vmatprep.subr.mxu0 %v3341_v36 }
  0x8a   :  { %3019 = vmatpush3.msra.mxu0 %v1535_v38 }
  0x8b   :  { %3020 = vmatprep.subr.mxu0 %v3341_v36 }
  0x8c   :  { %3021 = vmatpush3.msra.mxu0 %v1534_v39 }
  0x8d   :  { %3022 = vmatprep.subr.mxu0 %v3341_v36 }
  0x8e   :  { %3023 = vmatpush3.msra.mxu0 %v1533_v40 }
  0x8f   :  { %3024 = vmatprep.subr.mxu0 %v3341_v36 }
  0x90   :  { %3025 = vmatpush3.msra.mxu0 %v1532_v42  ;;  %v1854_v42 = vld [vmem:[%s4252_s6 + $0x70] sm:$0xf] }
  0x91   :  { %3026 = vmatprep.subr.mxu0 %v3341_v36  ;;  %3048 = vmatpush3.msk.msra.mxu1 %vm1859_vm1, %v1854_v42 }
  0x92   :  { %3027 = vmatpush3.msra.mxu0 %v1531_v43  ;;  %v1851_v43 = vld [vmem:[%s4252_s6 + $0x58] sm:$0xf]  ;;  %3049 = vmatprep.subr.mxu1 %v3341_v36 }
  0x93   :  { %3028 = vmatprep.subr.mxu0 %v3341_v36 }
  0x94   :  { %3029 = vmatpush3.msra.mxu0 %v1530_v44  ;;  %v1846_v44 = vld [vmem:[%s4252_s6 + $0x30] sm:$0xff] }
  0x95   :  { %3030 = vmatprep.subr.mxu0 %v3341_v36 }
  0x96   :  { %3031 = vmatpush3.msra.mxu0 %v1529_v45  ;;  %v1850_v45 = vld [vmem:[%s4252_s6 + $0x50] sm:$0xf] }
  0x97   :  { %3032 = vmatprep.subr.mxu0 %v3341_v36 }
  0x98   :  { %3033 = vmatpush3.msra.mxu0 %v1528_v46  ;;  %v1849_v46 = vld [vmem:[%s4252_s6 + $0x48] sm:$0xff] }
  0x99   :  { %3034 = vmatprep.subr.mxu0 %v3341_v36  ;;  %3050 = vmatpush3.msra.mxu1 %v1849_v46 }
  0x9a   :  { %3035 = vmatpush3.msra.mxu0 %v1527_v47  ;;  %v1845_v47 = vld [vmem:[%s4252_s6 + $0x28] sm:$0xff]  ;;  %3051 = vmatprep.subr.mxu1 %v3341_v36 }
  0x9b   :  { %3036 = vmatprep.subr.mxu0 %v3341_v36 }
  0x9c   :  { %3037 = vmatpush3.msra.mxu0 %v1526_v48  ;;  %v1841_v48 = vld [vmem:[%s4252_s6 + $0x8] sm:$0xff] }
  0x9d   :  { %3038 = vmatprep.subr.mxu0 %v3341_v36 }
  0x9e   :  { %3039 = vmatpush3.msra.mxu0 %v1525_v49  ;;  %v1844_v49 = vld [vmem:[%s4252_s6 + $0x20] sm:$0xff] }
  0x9f   :  { %3040 = vmatprep.subr.mxu0 %v3341_v36  ;;  %3052 = vmatpush3.msra.mxu1 %v1844_v49 }
  0xa0   :  { %3041 = vmatpush3.msra.mxu0 %v1524_v50  ;;  %v1840_v50 = vld [vmem:[%s4252_s6] sm:$0xff] }
  0xa1   :  { %3042 = vmatprep.subr.mxu0 %v3341_v36 }
  0xa2   :  { %3043 = vmatpush3.msra.mxu0 %v1523_v51  ;;  %v1732_v51 = vld [vmem:[%s4251_s5 + $0x58] sm:$0xf] }
  0xa3   :  { %2743 = vmatprep.subr.msk.mxu0 %vm1859_vm1, %v1851_v43  ;;  %2751 = vmatprep.subr.msk.mxu1 %vm1859_vm1, %v1732_v51 }
  0xe3   :  { %v2776_v52 = vpop.f32.mrf.mxu0 }
  0xe4   :  { %v2798_v53 = vpop.f32.mrf.mxu1 }
  0xe5   :  { %v2777_v54 = vpop.f32.mrf.mxu0 }
  0xe6   :  { %v2778_v55 = vadd.f32 %v2777_v54, %v2776_v52  ;;  %v2799_v56 = vpop.f32.mrf.mxu1  ;;  %v1853_v52 = vld [vmem:[%s4252_s6 + $0x68] sm:$0xf] }
  0xe7   :  { %v2779_v57 = vpop.f32.mrf.mxu0  ;;  %v2800_v58 = vadd.f32 %v2799_v56, %v2798_v53  ;;  %v2734_v53 = vld [vmem:[%s4250_s4] ss:$0 sm:$0xff] }
  0xe8   :  { %v2801_v59 = vpop.f32.mrf.mxu1 }
  0xe9   :  { %v2780_v60 = vpop.f32.mrf.mxu0  ;;  %v1263_v61 = vadd.f32 %v2800_v58, %v2778_v55 }
  0xea   :  { %v2802_v62 = vpop.f32.mrf.mxu1 }
 0x103   :  { %v2820_v63 = vpop.f32.mrf.mxu0 }
 0x104   :  { %v2842_v0 = vpop.f32.mrf.mxu1 }
 0x105   :  { %v2821_v1 = vpop.f32.mrf.mxu0 }
 0x106   :  { %v2843_v2 = vpop.f32.mrf.mxu1  ;;  %v2822_v15 = vadd.f32 %v2821_v1, %v2820_v63 }
 0x107   :  { %v2823_v3 = vpop.f32.mrf.mxu0  ;;  %v2844_v17 = vadd.f32 %v2843_v2, %v2842_v0 }
 0x108   :  { %v2845_v4 = vpop.f32.mrf.mxu1  ;;  %v1303_v16 = vadd.f32 %v2822_v15, %v1263_v61 }
 0x109   :  { %v2824_v5 = vpop.f32.mrf.mxu0 }
 0x10a   :  { %v2846_v6 = vpop.f32.mrf.mxu1  ;;  %v1343_v19 = vadd.f32 %v2844_v17, %v1303_v16  ;;  %v3343_v5 = vmov 683565275   ;;  %v3347_v16 = vmov 920167782  }
 0x123   :  { %v2864_v7 = vpop.f32.mrf.mxu0 }
 0x125   :  { %v2886_v8 = vpop.f32.mrf.mxu1  ;;  %v2865_v9 = vpop.f32.mrf.mxu0 }
 0x126   :  { %v2866_v18 = vadd.f32 %v2865_v9, %v2864_v7  ;;  %v3344_v7 = vmov 2475754826  }
 0x127   :  { %v2887_v10 = vpop.f32.mrf.mxu1  ;;  %v2867_v11 = vpop.f32.mrf.mxu0 }
 0x128   :  { %v1383_v20 = vadd.f32 %v2866_v18, %v1343_v19  ;;  %v2888_v21 = vadd.f32 %v2887_v10, %v2886_v8  ;;  %v3345_v10 = vmov 2131351028   ;;  %v3348_v19 = vmov 1326507024  }
 0x129   :  { %v2889_v12 = vpop.f32.mrf.mxu1  ;;  %v2868_v13 = vpop.f32.mrf.mxu0 }
 0x12a   :  { %v1423_v25 = vadd.f32 %v2888_v21, %v1383_v20  ;;  %v3346_v13 = vmov 2102212464  }
 0x12b   :  { %v2890_v14 = vpop.f32.mrf.mxu1 }
 0x143   :  { %v2908_v22 = vpop.f32.mrf.mxu0 }
 0x145   :  { %v2930_v23 = vpop.f32.mrf.mxu1  ;;  %v2909_v24 = vpop.f32.mrf.mxu0 }
 0x146   :  { %v2910_v26 = vadd.f32 %v2909_v24, %v2908_v22 }
 0x147   :  { %v2931_v27 = vpop.f32.mrf.mxu1  ;;  %v2911_v28 = vpop.f32.mrf.mxu0 }
 0x148   :  { %v1463_v29 = vadd.f32 %v2910_v26, %v1423_v25  ;;  %v2932_v30 = vadd.f32 %v2931_v27, %v2930_v23 }
 0x149   :  { %v2933_v32 = vpop.f32.mrf.mxu1  ;;  %v2912_v33 = vpop.f32.mrf.mxu0 }
 0x14a   :  { %v1503_v34 = vadd.f32 %v2932_v30, %v1463_v29 }
 0x14b   :  { %v2934_v35 = vpop.f32.mrf.mxu1 }
 0x14c   :  { %v1508_v41 = vadd.f32 %v1503_v34, %v45_v31 }
 0x14e   :  { %1509 = vst [vmem:[#allocation2] sm:$0x3] %v1508_v41 }
 0x155   :  { %v1513_v38 = vld [vmem:[#allocation2] sm:$0x3] }
 0x156   :  { %v1521_v39 = vadd.f32 %v2733_v37, %v1513_v38 }
 0x158   :  { %v1522_v40 = vmax.f32 %v1521_v39, 0.0 }
 0x15a   :  { %3045 = vmatmul.mubr.f32.vlgmr.msra.gmra.mxu0 %v1522_v40 }
 0x15b   :  { %1939 = vmatprep.mubr.f32.mxu0 %v3341_v36  ;;  %2744 = vmatpush1.msk.msra.mxu0 %vm1859_vm1, %v1850_v45 }
 0x15c   :  { %1903 = vmatprep.subr.mxu0 %v1846_v44 }
 0x15d   :  { %1904 = vmatpush1.msra.mxu0 %v1845_v47 }
 0x15e   :  { %1905 = vmatprep.subr.mxu0 %v1841_v48 }
 0x15f   :  { %1906 = vmatpush1.msra.mxu0 %v1840_v50 }
 0x160   :  { %2746 = vmatprep.subr.msk.mxu0 %vm1859_vm1, %v1853_v52 }
 0x21a   :  { %v1612_v54 = vpop.f32.mrf.mxu0 }
 0x21b   :  { %v1613_v55 = vadd.f32 %v2734_v53, %v1612_v54 }
 0x21c   :  { %v3046_v56 = vpop.f32.mrf.mxu0 }
 0x21d   :  { %v1616_v57 = vmax.f32 %v1613_v55, 0.0 }
 0x21f   :  { %v3941_v58 = vmul.f32 0.5, %v1616_v57 }
 0x221   :  { %v1621_v59 = vand.u32 2139095040, %v3941_v58  ;;  %v1618_v63 = vand.u32 2147483647, %v3941_v58  ;;  %vm1620_vm9 = vcmp.lt.s32.totalorder %v3941_v58, 0  ;;  %vm1710_vm15 = vweird.f32 %v3941_v58 }
 0x223   :  { %v1622_v60 = vshrl.u32 %v1621_v59, 23  ;;  %v1625_v2 = vand.u32 8388607, %v1618_v63  ;;  %vm1619_vm10 = vcmp.le.f32.partialorder %v1618_v63, 0.7853982 }
 0x225   :  { %v2735_v61 = vadd.s32 4294967169, %v1622_v60  ;;  %v1626_v21 = vor.u32 8388608, %v1625_v2 }
 0x227   :  { %v1628_v62 = vadd.s32 1, %v2735_v61  ;;  %v1666_v35 = vshll.u32 %v1626_v21, 8 }
 0x229   :  { %vm1629_vm2 = vcmp.gt.s32.totalorder %v1628_v62, 0 }
 0x22a   :  { %v1630_v0 = vsel %vm1629_vm2, %v1628_v62, 0 }
 0x22b   :  { %v1632_v1 = vand.u32 31, %v1630_v0  ;;  %v1631_v4 = vshrl.u32 %v1630_v0, 5 }
 0x22d   :  { %v1633_v3 = vsub.s32 32, %v1632_v1  ;;  %v1635_v6 = vshll.u32 %v3343_v5, %v1632_v1  ;;  %v1638_v8 = vshll.u32 %v3344_v7, %v1632_v1  ;;  %v1641_v12 = vshll.u32 %v3345_v10, %v1632_v1 }
 0x22e   :  { %v1644_v15 = vshll.u32 %v3346_v13, %v1632_v1  ;;  %v1647_v18 = vshll.u32 %v3347_v16, %v1632_v1  ;;  %vm1650_vm3 = vcmp.lt.s32.totalorder %v1631_v4, 1  ;;  %vm1653_vm4 = vcmp.lt.s32.totalorder %v1631_v4, 4 }
 0x22f   :  { %v1636_v9 = vshrl.u32 %v3344_v7, %v1633_v3  ;;  %v1639_v11 = vshrl.u32 %v3345_v10, %v1633_v3  ;;  %v1642_v14 = vshrl.u32 %v3346_v13, %v1633_v3  ;;  %v1645_v17 = vshrl.u32 %v3347_v16, %v1633_v3 }
 0x230   :  { %v1648_v20 = vshrl.u32 %v3348_v19, %v1633_v3  ;;  %v1634_v30 = vshrl.u32 %v3343_v5, %v1633_v3  ;;  %vm1652_vm5 = vcmp.lt.s32.totalorder %v1631_v4, 3  ;;  %vm1651_vm6 = vcmp.lt.s32.totalorder %v1631_v4, 2 }
 0x231   :  { %v1637_v22 = vor.u32 %v1636_v9, %v1635_v6  ;;  %v1640_v23 = vor.u32 %v1639_v11, %v1638_v8  ;;  %v1643_v24 = vor.u32 %v1642_v14, %v1641_v12  ;;  %v1646_v25 = vor.u32 %v1645_v17, %v1644_v15 }
 0x232   :  { %v1649_v26 = vor.u32 %v1648_v20, %v1647_v18 }
 0x233   :  { %v1655_v27 = vsel %vm1653_vm4, %v1643_v24, 2102212464  ;;  %v1658_v28 = vsel %vm1650_vm3, %v1637_v22, %v1640_v23  ;;  %v1662_v29 = vsel %vm1650_vm3, %v1640_v23, %v1643_v24  ;;  %v1659_v31 = vsel %vm1653_vm4, %v1646_v25, 920167782 }
 0x234   :  { %v1663_v32 = vsel %vm1653_vm4, %v1649_v26, 1326507024  ;;  %v1660_v33 = vsel %vm1652_vm5, %v1643_v24, %v1659_v31  ;;  %v1654_v41 = vsel %vm1650_vm3, %v1634_v30, %v1637_v22  ;;  %v1656_v37 = vsel %vm1652_vm5, %v1640_v23, %v1655_v27  ;;  %v1852_v24 = vld [vmem:[%s4252_s6 + $0x60] sm:$0xf]  ;;  %v1726_v30 = vld [vmem:[%s4251_s5 + $0x28] sm:$0xff] }
 0x235   :  { %v1664_v34 = vsel %vm1652_vm5, %v1646_v25, %v1663_v32  ;;  %v1661_v38 = vsel %vm1651_vm6, %v1658_v28, %v1660_v33  ;;  %v1657_v45 = vsel %vm1651_vm6, %v1654_v41, %v1656_v37  ;;  %v1731_v25 = vld [vmem:[%s4251_s5 + $0x50] sm:$0xf]  ;;  %v1848_v27 = vld [vmem:[%s4252_s6 + $0x40] sm:$0xff]  ;;  %v1843_v33 = vld [vmem:[%s4252_s6 + $0x18] sm:$0xff] }
 0x236   :  { %v1665_v39 = vsel %vm1651_vm6, %v1662_v29, %v1664_v34  ;;  %v3950_v43 = vmul.u32.u64.low %v1666_v35, %v1661_v38  ;;  %v3951_v44 = vmul.u32.u64.high %v1666_v35, %v1661_v38, %v3950_v43  ;;  %v1673_v47 = vmul.u32 %v1666_v35, %v1657_v45  ;;  %v1727_v28 = vld [vmem:[%s4251_s5 + $0x30] sm:$0xff]  ;;  %v1847_v29 = vld [vmem:[%s4252_s6 + $0x38] sm:$0xff]  ;;  %v1722_v34 = vld [vmem:[%s4251_s5 + $0x8] sm:$0xff] }
 0x237   :  { %v3947_v40 = vmul.u32.u64.low %v1666_v35, %v1665_v39  ;;  %v3948_v42 = vmul.u32.u64.high %v1666_v35, %v1665_v39, %v3947_v40  ;;  %v1842_v35 = vld [vmem:[%s4252_s6 + $0x10] sm:$0xff]  ;;  %v1721_v41 = vld [vmem:[%s4251_s5] sm:$0xff]  ;;  %v1734_v38 = vld [vmem:[%s4251_s5 + $0x68] sm:$0xf] }
 0x238   :  { %v1676_v46 = vadd.s32 1, %v3951_v44  ;;  %v1733_v40 = vld [vmem:[%s4251_s5 + $0x60] sm:$0xf]  ;;  %v1724_v45 = vld [vmem:[%s4251_s5 + $0x18] sm:$0xff] }
 0x239   :  { %vm1675_vm7 = vc.u32 %v3948_v42, %v3950_v43  ;;  %v1674_v60 = vadd.s32 %v3950_v43, %v3948_v42  ;;  %v1735_v42 = vld [vmem:[%s4251_s5 + $0x70] sm:$0xf]  ;;  %v1729_v43 = vld [vmem:[%s4251_s5 + $0x40] sm:$0xff] }
 0x23a   :  { %v1677_v48 = vsel %vm1675_vm7, %v1676_v46, %v3951_v44  ;;  %v1730_v44 = vld [vmem:[%s4251_s5 + $0x48] sm:$0xff]  ;;  %v1723_v46 = vld [vmem:[%s4251_s5 + $0x10] sm:$0xff] }
 0x23b   :  { %v1678_v49 = vadd.s32 %v1677_v48, %v1673_v47  ;;  %v1725_v47 = vld [vmem:[%s4251_s5 + $0x20] sm:$0xff]  ;;  %v2336_v48 = vld [vmem:[%s4253_s7 + $0x78] sm:$0xff] }
 0x23d   :  { %v1679_v50 = vadd.s32 536870912, %v1678_v49 }
 0x23f   :  { %v1680_v51 = vshrl.u32 %v1679_v50, 30  ;;  %v2335_v50 = vld [vmem:[%s4253_s7 + $0x70] sm:$0xff] }
 0x241   :  { %v1681_v52 = vshll.u32 %v1680_v51, 30  ;;  %v1704_v10 = vsub.s32 4, %v1680_v51 }
 0x243   :  { %v1682_v53 = vsub.s32 %v1678_v49, %v1681_v52  ;;  %v1705_v13 = vsel %vm1620_vm9, %v1704_v10, %v1680_v51  ;;  %v2422_v49 = vld [vmem:[%s4254_s8 + $0x78] sm:$0xff]  ;;  %v2421_v51 = vld [vmem:[%s4254_s8 + $0x70] sm:$0xff]  ;;  %v2334_v52 = vld [vmem:[%s4253_s7 + $0x68] sm:$0xff] }
 0x244   :  { %v1707_v14 = vsel %vm1619_vm10, 0, %v1705_v13  ;;  %v2324_v10 = vld [vmem:[%s4253_s7 + $0x18] sm:$0xff]  ;;  %v2409_v13 = vld [vmem:[%s4254_s8 + $0x10] sm:$0xff] }
 0x245   :  { %v1684_v54 = vsub.s32 0, %v1682_v53  ;;  %v1829_v15 = vadd.s32 3, %v1707_v14  ;;  %v1711_v21 = vand.u32 3, %v1707_v14  ;;  %v2322_v14 = vld [vmem:[%s4253_s7 + $0x8] sm:$0xff] }
 0x247   :  { %v2736_v55 = vmin.u32 %v1684_v54, %v1682_v53  ;;  %v1830_v16 = vand.u32 3, %v1829_v15  ;;  %vm1713_vm2 = vcmp.eq.s32.totalorder %v1711_v21, 0  ;;  %vm1716_vm3 = vcmp.eq.s32.totalorder %v1711_v21, 2  ;;  %v2333_v54 = vld [vmem:[%s4253_s7 + $0x60] sm:$0xff]  ;;  %v2408_v15 = vld [vmem:[%s4254_s8 + $0x8] sm:$0xff] }
 0x248   :  { %vm1712_vm4 = vcmp.lt.s32.totalorder %v1711_v21, 2 }
 0x249   :  { %v1686_v56 = vclz %v2736_v55  ;;  %vm1835_vm11 = vcmp.eq.s32.totalorder %v1830_v16, 2  ;;  %vm1832_vm12 = vcmp.eq.s32.totalorder %v1830_v16, 0  ;;  %vm1831_vm13 = vcmp.lt.s32.totalorder %v1830_v16, 2  ;;  %v2419_v55 = vld [vmem:[%s4254_s8 + $0x60] sm:$0xff] }
 0x24a   :  { %v2321_v16 = vld [vmem:[%s4253_s7] sm:$0xff] }
 0x24b   :  { %v2737_v57 = vadd.s32 4294967294, %v1686_v56  ;;  %v2332_v56 = vld [vmem:[%s4253_s7 + $0x58] sm:$0xff] }
 0x24d   :  { %vm2738_vm8 = vcmp.lt.s32.totalorder %v2737_v57, 0 }
 0x24e   :  { %v1689_v59 = vsel %vm2738_vm8, 0, %v2737_v57  ;;  %v2418_v57 = vld [vmem:[%s4254_s8 + $0x58] sm:$0xff] }
 0x24f   :  { %v1690_v61 = vsub.s32 32, %v1689_v59  ;;  %v1694_v62 = vsub.s32 4294967266, %v1689_v59  ;;  %v1691_v0 = vshll.u32 %v1682_v53, %v1689_v59  ;;  %v2420_v53 = vld [vmem:[%s4254_s8 + $0x68] sm:$0xff]  ;;  %v2331_v59 = vld [vmem:[%s4253_s7 + $0x50] sm:$0xff] }
 0x251   :  { %v1692_v1 = vshrl.u32 %v1674_v60, %v1690_v61  ;;  %v1695_v2 = vadd.s32 127, %v1694_v62  ;;  %v2417_v60 = vld [vmem:[%s4254_s8 + $0x50] sm:$0xff]  ;;  %v2330_v61 = vld [vmem:[%s4253_s7 + $0x48] sm:$0xff] }
 0x252   :  { %v2416_v62 = vld [vmem:[%s4254_s8 + $0x48] sm:$0xff] }
 0x253   :  { %v1693_v3 = vor.u32 %v1692_v1, %v1691_v0  ;;  %v1696_v4 = vshll.u32 %v1695_v2, 23  ;;  %v2329_v0 = vld [vmem:[%s4253_s7 + $0x40] sm:$0xff]  ;;  %v2328_v2 = vld [vmem:[%s4253_s7 + $0x38] sm:$0xff] }
 0x254   :  { %v2415_v1 = vld [vmem:[%s4254_s8 + $0x40] sm:$0xff] }
 0x255   :  { %v1697_v5 = vor.u32 4788187, %v1696_v4  ;;  %v1700_v7 = vcvt.s32.f32 %v1693_v3  ;;  %v2414_v3 = vld [vmem:[%s4254_s8 + $0x38] sm:$0xff]  ;;  %v2327_v4 = vld [vmem:[%s4253_s7 + $0x30] sm:$0xff] }
 0x257   :  { %v1698_v6 = vand.u32 2147483647, %v1697_v5  ;;  %v2413_v5 = vld [vmem:[%s4254_s8 + $0x30] sm:$0xff] }
 0x259   :  { %v1701_v8 = vmul.f32 %v1700_v7, %v1698_v6  ;;  %v2326_v6 = vld [vmem:[%s4253_s7 + $0x28] sm:$0xff] }
 0x25a   :  { %v2412_v7 = vld [vmem:[%s4254_s8 + $0x28] sm:$0xff] }
 0x25b   :  { %v1702_v9 = vxor.u32 2147483648, %v1701_v8 }
 0x25d   :  { %v1703_v11 = vsel %vm1620_vm9, %v1702_v9, %v1701_v8  ;;  %v2325_v8 = vld [vmem:[%s4253_s7 + $0x20] sm:$0xff] }
 0x25e   :  { %v1706_v12 = vsel %vm1619_vm10, %v3941_v58, %v1703_v11  ;;  %v1728_v58 = vld [vmem:[%s4251_s5 + $0x38] sm:$0xff]  ;;  %v2411_v9 = vld [vmem:[%s4254_s8 + $0x20] sm:$0xff] }
 0x25f   :  { %3314 = vcosq.f32 %v1706_v12  ;;  %v2410_v11 = vld [vmem:[%s4254_s8 + $0x18] sm:$0xff] }
 0x260   :  { %3316 = vsinq.f32 %v1706_v12  ;;  %v2323_v12 = vld [vmem:[%s4253_s7 + $0x10] sm:$0xff] }
 0x26c   :  { %v3315_v17 = vpop.eup %3314 }
 0x26d   :  { %v3317_v18 = vpop.eup %3316  ;;  %v1717_v19 = vxor.u32 2147483648, %v3315_v17 }
 0x26e   :  { %v1714_v20 = vxor.u32 2147483648, %v3317_v18 }
 0x26f   :  { %v1837_v22 = vsel %vm1835_vm11, %v1717_v19, %v3317_v18  ;;  %v1718_v32 = vsel %vm1716_vm3, %v1717_v19, %v3317_v18 }
 0x270   :  { %v1834_v23 = vsel %vm1832_vm12, %v3315_v17, %v1714_v20  ;;  %v1715_v31 = vsel %vm1713_vm2, %v3315_v17, %v1714_v20  ;;  %v2407_v17 = vld [vmem:[%s4254_s8] sm:$0xff] }
 0x271   :  { %v1838_v63 = vsel %vm1831_vm13, %v1834_v23, %v1837_v22  ;;  %v1719_v37 = vsel %vm1712_vm4, %v1715_v31, %v1718_v32 }
 0x272   :  { %v1839_v26 = vsel %vm1710_vm15, nan, %v1838_v63  ;;  %v1720_v39 = vsel %vm1710_vm15, nan, %v1719_v37 }
 0x273   :  { %2745 = vmatmul.mubr.msk.f32.vlgmr.msra.gmra.mxu0 %vm1855_vm14, %v1839_v26  ;;  %3054 = vmatmul.mubr.msk.f32.vlgmr.msra.gmra.mxu1 %vm1855_vm14, %v1839_v26 }
 0x274   :  { %2747 = vmatpush1.msk.msra.mxu0 %vm1859_vm1, %v1852_v24  ;;  %2752 = vmatpush1.msk.msra.mxu1 %vm1859_vm1, %v1731_v25 }
 0x275   :  { %1974 = vmatprep.subr.mxu0 %v1848_v27  ;;  %2133 = vmatprep.subr.mxu1 %v1727_v28 }
 0x276   :  { %1975 = vmatpush1.msra.mxu0 %v1847_v29  ;;  %2134 = vmatpush1.msra.mxu1 %v1726_v30 }
 0x277   :  { %1976 = vmatprep.subr.mxu0 %v1843_v33  ;;  %2135 = vmatprep.subr.mxu1 %v1722_v34 }
 0x278   :  { %1977 = vmatpush1.msra.mxu0 %v1842_v35  ;;  %2010 = vmatprep.mubr.f32.mxu0 %v3341_v36 }
 0x279   :  { %2136 = vmatpush1.msra.mxu1 %v1721_v41  ;;  %2169 = vmatprep.mubr.f32.mxu1 %v3341_v36 }
 0x27a   :  { %2748 = vmatmul.mubr.msk.f32.vlgmr.msra.gmra.mxu0 %vm1855_vm14, %v1839_v26  ;;  %2753 = vmatmul.mubr.msk.f32.vlgmr.msra.gmra.mxu1 %vm1855_vm14, %v1720_v39 }
 0x27b   :  { %2754 = vmatprep.subr.msk.mxu1 %vm1859_vm1, %v1734_v38  ;;  %3056 = vmatprep.subr.mxu0 %v3341_v36  ;;  %v2511_v38 = vld [vmem:[%s4255_s9 + $0x78] sm:$0xff] }
 0x27c   :  { %2755 = vmatpush1.msk.msra.mxu1 %vm1859_vm1, %v1733_v40  ;;  %3057 = vmatpush3.msk.msra.mxu0 %vm1859_vm1, %v1735_v42  ;;  %v2509_v40 = vld [vmem:[%s4255_s9 + $0x68] sm:$0xff]  ;;  %v2508_v42 = vld [vmem:[%s4255_s9 + $0x60] sm:$0xff] }
 0x27d   :  { %2204 = vmatprep.subr.mxu1 %v1729_v43  ;;  %3058 = vmatprep.subr.mxu0 %v3341_v36  ;;  %v2507_v43 = vld [vmem:[%s4255_s9 + $0x58] sm:$0xff] }
 0x27e   :  { %2205 = vmatpush1.msra.mxu1 %v1728_v58  ;;  %3059 = vmatpush3.msra.mxu0 %v1730_v44  ;;  %v2506_v58 = vld [vmem:[%s4255_s9 + $0x50] sm:$0xff]  ;;  %v2505_v44 = vld [vmem:[%s4255_s9 + $0x48] sm:$0xff] }
 0x27f   :  { %2206 = vmatprep.subr.mxu1 %v1724_v45  ;;  %3060 = vmatprep.subr.mxu0 %v3341_v36  ;;  %v2504_v45 = vld [vmem:[%s4255_s9 + $0x40] sm:$0xff] }
 0x280   :  { %2207 = vmatpush1.msra.mxu1 %v1723_v46  ;;  %2240 = vmatprep.mubr.f32.mxu1 %v3341_v36  ;;  %v2503_v46 = vld [vmem:[%s4255_s9 + $0x38] sm:$0xff] }
 0x281   :  { %3061 = vmatpush3.msra.mxu0 %v1725_v47  ;;  %3062 = vmatprep.mubr.msk.f32.mxu0 %vm3342_vm0, %v3341_v36  ;;  %v2502_v47 = vld [vmem:[%s4255_s9 + $0x30] sm:$0xff] }
 0x282   :  { %2756 = vmatmul.mubr.msk.f32.vlgmr.msra.gmra.mxu1 %vm1855_vm14, %v1720_v39  ;;  %3063 = vmatmul.mubr.msk.f32.vlgmr.msra.gmra.mxu0 %vm1855_vm14, %v1720_v39  ;;  %v2510_v39 = vld [vmem:[%s4255_s9 + $0x70] sm:$0xff] }
 0x283   :  { %3065 = vmatprep.subr.mxu1 %v3341_v36  ;;  %3100 = vmatprep.subr.mxu0 %v3341_v36 }
 0x284   :  { %3066 = vmatpush3.msra.mxu1 %v2336_v48  ;;  %3101 = vmatpush3.msra.mxu0 %v2422_v49  ;;  %v2501_v48 = vld [vmem:[%s4255_s9 + $0x28] sm:$0xff]  ;;  %v2500_v49 = vld [vmem:[%s4255_s9 + $0x20] sm:$0xff] }
 0x285   :  { %3067 = vmatprep.subr.mxu1 %v3341_v36  ;;  %3102 = vmatprep.subr.mxu0 %v3341_v36 }
 0x286   :  { %3068 = vmatpush3.msra.mxu1 %v2335_v50  ;;  %3103 = vmatpush3.msra.mxu0 %v2421_v51  ;;  %v2499_v50 = vld [vmem:[%s4255_s9 + $0x18] sm:$0xff]  ;;  %v2498_v51 = vld [vmem:[%s4255_s9 + $0x10] sm:$0xff] }
 0x287   :  { %3069 = vmatprep.subr.mxu1 %v3341_v36  ;;  %3104 = vmatprep.subr.mxu0 %v3341_v36 }
 0x288   :  { %3070 = vmatpush3.msra.mxu1 %v2334_v52  ;;  %3105 = vmatpush3.msra.mxu0 %v2420_v53  ;;  %v2497_v52 = vld [vmem:[%s4255_s9 + $0x8] sm:$0xff]  ;;  %v2496_v53 = vld [vmem:[%s4255_s9] sm:$0xff]  ;;  %s3318_s9 = scalar_lea.vmem %s2598_s21, 32 }
 0x289   :  { %3071 = vmatprep.subr.mxu1 %v3341_v36  ;;  %3106 = vmatprep.subr.mxu0 %v3341_v36  ;;  %p3319_p0 = scmp.ne.s32.totalorder %s2598_s21, %s3318_s9  ;;  %p3324_p2 = scmp.lt.s32.totalorder %s3318_s9, %s3318_s9 }
 0x28a   :  { %3072 = vmatpush3.msra.mxu1 %v2333_v54  ;;  %3107 = vmatpush3.msra.mxu0 %v2419_v55 }
 0x28b   :  { %3073 = vmatprep.subr.mxu1 %v3341_v36  ;;  %3108 = vmatprep.subr.mxu0 %v3341_v36  ;;  %p3325_p3 = por %p3324_p2, %p3323_p1 }
 0x28c   :  { %3074 = vmatpush3.msra.mxu1 %v2332_v56  ;;  %3109 = vmatpush3.msra.mxu0 %v2418_v57 }
 0x28d   :  { %3075 = vmatprep.subr.mxu1 %v3341_v36  ;;  %3110 = vmatprep.subr.mxu0 %v3341_v36  ;;  %p3326_p4 = pnand %p3325_p3, %p3319_p0 }
 0x28e   :  { %3076 = vmatpush3.msra.mxu1 %v2331_v59  ;;  %3111 = vmatpush3.msra.mxu0 %v2417_v60 }
 0x28f   :  { %3077 = vmatprep.subr.mxu1 %v3341_v36  ;;  %3112 = vmatprep.subr.mxu0 %v3341_v36 }
 0x290   :  { %3097 = vmatprep.mubr.msk.f32.mxu1 %vm3342_vm0, %v3341_v36  ;;  %3132 = vmatprep.mubr.msk.f32.mxu0 %vm3342_vm0, %v3341_v36 }
 0x291   :  { %3078 = vmatpush3.msra.mxu1 %v2330_v61  ;;  %3113 = vmatpush3.msra.mxu0 %v2416_v62  ;;  %v2759_v62 = vld [vmem:[%s4256_s10] ss:$0 sm:$0xff] }
 0x292   :  { %3079 = vmatprep.subr.mxu1 %v3341_v36  ;;  %3114 = vmatprep.subr.mxu0 %v3341_v36 }
 0x293   :  { %3080 = vmatpush3.msra.mxu1 %v2329_v0  ;;  %3115 = vmatpush3.msra.mxu0 %v2415_v1 }
 0x294   :  { %3081 = vmatprep.subr.mxu1 %v3341_v36  ;;  %3116 = vmatprep.subr.mxu0 %v3341_v36 }
 0x295   :  { %3082 = vmatpush3.msra.mxu1 %v2328_v2  ;;  %3117 = vmatpush3.msra.mxu0 %v2414_v3 }
 0x296   :  { %3083 = vmatprep.subr.mxu1 %v3341_v36  ;;  %3118 = vmatprep.subr.mxu0 %v3341_v36 }
 0x297   :  { %3084 = vmatpush3.msra.mxu1 %v2327_v4  ;;  %3119 = vmatpush3.msra.mxu0 %v2413_v5 }
 0x298   :  { %3085 = vmatprep.subr.mxu1 %v3341_v36  ;;  %3120 = vmatprep.subr.mxu0 %v3341_v36 }
 0x299   :  { %3086 = vmatpush3.msra.mxu1 %v2326_v6  ;;  %3121 = vmatpush3.msra.mxu0 %v2412_v7 }
 0x29a   :  { %3087 = vmatprep.subr.mxu1 %v3341_v36  ;;  %3122 = vmatprep.subr.mxu0 %v3341_v36 }
 0x29b   :  { %3088 = vmatpush3.msra.mxu1 %v2325_v8  ;;  %3123 = vmatpush3.msra.mxu0 %v2411_v9 }
 0x29c   :  { %3089 = vmatprep.subr.mxu1 %v3341_v36  ;;  %3124 = vmatprep.subr.mxu0 %v3341_v36 }
 0x29d   :  { %3090 = vmatpush3.msra.mxu1 %v2324_v10  ;;  %3125 = vmatpush3.msra.mxu0 %v2410_v11 }
 0x29e   :  { %3091 = vmatprep.subr.mxu1 %v3341_v36  ;;  %3126 = vmatprep.subr.mxu0 %v3341_v36 }
 0x29f   :  { %3092 = vmatpush3.msra.mxu1 %v2323_v12  ;;  %3127 = vmatpush3.msra.mxu0 %v2409_v13 }
 0x2a0   :  { %3093 = vmatprep.subr.mxu1 %v3341_v36  ;;  %3128 = vmatprep.subr.mxu0 %v3341_v36 }
 0x2a1   :  { %3094 = vmatpush3.msra.mxu1 %v2322_v14  ;;  %3129 = vmatpush3.msra.mxu0 %v2408_v15 }
 0x2a2   :  { %3095 = vmatprep.subr.mxu1 %v3341_v36  ;;  %3130 = vmatprep.subr.mxu0 %v3341_v36 }
 0x2a3   :  { %3096 = vmatpush3.msra.mxu1 %v2321_v16  ;;  %3131 = vmatpush3.msra.mxu0 %v2407_v17 }
 0x2a4   :  { %3135 = vmatprep.subr.mxu1 %v3341_v36 }
 0x333   :  { %v2083_v18 = vpop.f32.mrf.mxu1  ;;  %v1941_v19 = vpop.f32.mrf.mxu0 }
 0x335   :  { %v3055_v20 = vpop.f32.mrf.mxu1  ;;  %v1943_v21 = vpop.f32.mrf.mxu0 }
 0x33a   :  { %v2171_v22 = vpop.f32.mrf.mxu1  ;;  %v2012_v23 = vpop.f32.mrf.mxu0 }
 0x33b   :  { %v2172_v26 = vadd.f32 %v2171_v22, %v1941_v19 }
 0x33c   :  { %v2173_v63 = vpop.f32.mrf.mxu1  ;;  %v2014_v25 = vpop.f32.mrf.mxu0 }
 0x33d   :  { %v2174_v24 = vadd.f32 %v2173_v63, %v1943_v21 }
 0x33f   :  { %v2317_v29 = vmul.f32 %v2174_v24, %v2172_v26 }
 0x342   :  { %v2242_v27 = vpop.f32.mrf.mxu1  ;;  %v2313_v28 = vpop.f32.mrf.mxu0 }
 0x343   :  { %v2243_v30 = vadd.f32 %v2242_v27, %v2012_v23  ;;  %v2314_v35 = vadd.f32 %v2313_v28, %v2083_v18 }
 0x344   :  { %v2244_v31 = vpop.f32.mrf.mxu1  ;;  %v3064_v32 = vpop.f32.mrf.mxu0 }
 0x345   :  { %v2318_v33 = vmul.f32 %v2317_v29, %v2243_v30  ;;  %v2245_v34 = vadd.f32 %v2244_v31, %v2014_v25 }
 0x347   :  { %v2319_v41 = vmul.f32 %v2318_v33, %v2245_v34 }
 0x349   :  { %v2320_v37 = vmul.f32 %v2319_v41, %v2314_v35 }
 0x34b   :  { %3098 = vmatmul.mubr.f32.vlgmr.msra.gmra.mxu1 %v2320_v37  ;;  %3133 = vmatmul.mubr.f32.vlgmr.msra.gmra.mxu0 %v2320_v37 }
 0x34c   :  { %3136 = vmatpush3.msra.mxu1 %v2511_v38  ;;  %3167 = vmatprep.mubr.msk.f32.mxu1 %vm3342_vm0, %v3341_v36  ;;  %vm2589_vm0 = vcmask 74752  }
 0x34d   :  { %3137 = vmatprep.subr.mxu1 %v3341_v36 }
 0x34e   :  { %3138 = vmatpush3.msra.mxu1 %v2510_v39 }
 0x34f   :  { %3139 = vmatprep.subr.mxu1 %v3341_v36 }
 0x350   :  { %3140 = vmatpush3.msra.mxu1 %v2509_v40 }
 0x351   :  { %3141 = vmatprep.subr.mxu1 %v3341_v36 }
 0x352   :  { %3142 = vmatpush3.msra.mxu1 %v2508_v42 }
 0x353   :  { %3143 = vmatprep.subr.mxu1 %v3341_v36 }
 0x354   :  { %3144 = vmatpush3.msra.mxu1 %v2507_v43 }
 0x355   :  { %3145 = vmatprep.subr.mxu1 %v3341_v36 }
 0x356   :  { %3146 = vmatpush3.msra.mxu1 %v2506_v58 }
 0x357   :  { %3147 = vmatprep.subr.mxu1 %v3341_v36 }
 0x358   :  { %3148 = vmatpush3.msra.mxu1 %v2505_v44 }
 0x359   :  { %3149 = vmatprep.subr.mxu1 %v3341_v36 }
 0x35a   :  { %3150 = vmatpush3.msra.mxu1 %v2504_v45 }
 0x35b   :  { %3151 = vmatprep.subr.mxu1 %v3341_v36 }
 0x35c   :  { %3152 = vmatpush3.msra.mxu1 %v2503_v46 }
 0x35d   :  { %3153 = vmatprep.subr.mxu1 %v3341_v36 }
 0x35e   :  { %3154 = vmatpush3.msra.mxu1 %v2502_v47 }
 0x35f   :  { %3155 = vmatprep.subr.mxu1 %v3341_v36 }
 0x360   :  { %3156 = vmatpush3.msra.mxu1 %v2501_v48 }
 0x361   :  { %3157 = vmatprep.subr.mxu1 %v3341_v36 }
 0x362   :  { %3158 = vmatpush3.msra.mxu1 %v2500_v49 }
 0x363   :  { %3159 = vmatprep.subr.mxu1 %v3341_v36 }
 0x364   :  { %3160 = vmatpush3.msra.mxu1 %v2499_v50 }
 0x365   :  { %3161 = vmatprep.subr.mxu1 %v3341_v36 }
 0x366   :  { %3162 = vmatpush3.msra.mxu1 %v2498_v51 }
 0x367   :  { %3163 = vmatprep.subr.mxu1 %v3341_v36 }
 0x368   :  { %3164 = vmatpush3.msra.mxu1 %v2497_v52 }
 0x369   :  { %3165 = vmatprep.subr.mxu1 %v3341_v36 }
 0x36a   :  { %3166 = vmatpush3.msra.mxu1 %v2496_v53 }
 0x40b   :  { %v2403_v54 = vpop.f32.mrf.mxu1  ;;  %v2489_v55 = vpop.f32.mrf.mxu0 }
 0x40c   :  { %v2493_v56 = vmul.f32 %v2403_v54, %v2403_v54  ;;  %v2494_v57 = vmul.f32 %v2489_v55, %v2489_v55 }
 0x40d   :  { %v3099_v59 = vpop.f32.mrf.mxu1  ;;  %v3134_v60 = vpop.f32.mrf.mxu0 }
 0x40e   :  { %v2495_v61 = vadd.f32 %v2494_v57, %v2493_v56 }
 0x410   :  { %3168 = vmatmul.mubr.f32.vlgmr.msra.gmra.mxu1 %v2495_v61 }
 0x4d0   :  { %v2585_v36 = vpop.f32.mrf.mxu1 }
 0x4d1   :  { %v2586_v0 = vadd.f32 %v2759_v62, %v2585_v36 }
 0x4d2   :  { %v3169_v1 = vpop.f32.mrf.mxu1 }
 0x4d3   :  { %2590 = vst.msk [vmem:[#allocation3] sm:$0x3] %vm2589_vm0, %v2586_v0 }
 0x4d4   :  { %3329 = shalt.err (!%p3326_p4)
}
 0x4d5   :  { %2600 = dma.vmem_to_hbm [thread:$0]  %s2598_s21, 32, %s4257_s11, [#allocation4]  }
 0x4d6   :  { %3338 = dma.done.wait [#allocation4], 32  }
 0x4d7   :  { %3339 = vsyncadd [#allocation4], 4294967264 }
 0x4d8   :  { %2604 = vsyncpa [#allocation4], 1 }

</bundles_post_ra>
